<compile_context>
chip_gen: v7x
topology: tpu7x:2x2x1
jax: 0.10.0
libtpu: 0.0.40
codegen_flags: <defaults>
</compile_context>

<pallas_src>
import functools
import math

import jax
import jax.numpy as jnp
from jax.experimental import pallas as pl
from jax.experimental.pallas import tpu as pltpu

_BN_EPS = 1e-5


# ----------------------------------------------------------------------------- kernel
def _bottle2neck_kernel(
    xt_ref,                                   # (B, T, C)  channel-last input (= residual)
    w1_ref, b1_ref, g1_ref, be1_ref,          # conv1: (C, WS), biases/BN as (1, WS)
    wbr_ref, bbr_ref, gbr_ref, bebr_ref,      # branches: (nums*K, W, W), (nums, 1, W) x3
    w3_ref, b3_ref, g3_ref, be3_ref,          # conv3: (WS, P), (1, P) x3
    sw1_ref, sb1_ref, sw2_ref, sb2_ref,       # SE: (P, Bn), (1, Bn), (Bn, P), (1, P)
    o_ref,                                    # (B, T, P)
    xp_ref,                                   # VMEM (B, T + 2*pad, W) f32  time-padded scratch
    slab_ref,                                 # VMEM (B*T, WS) f32          channel slab scratch
    *, B, T, C, W, scale, K, dil, pad):
    f32 = jnp.float32
    nums = scale - 1

    def bn_cols(y, g, b):
        # training-mode BN over the rows (N = B*T) per channel, biased variance.
        mean = jnp.mean(y, axis=0, keepdims=True)
        var = jnp.mean((y - mean) ** 2, axis=0, keepdims=True)
        return (y - mean) * jax.lax.rsqrt(var + _BN_EPS) * g + b

    x = xt_ref[...].astype(f32)                                   # (B, T, C)
    xf = x.reshape(B * T, C)

    # ---- conv1 (1x1) + ReLU + BN1 -------------------------------------------------
    h = jnp.dot(xf, w1_ref[...].astype(f32), preferred_element_type=f32) + b1_ref[...]
    h = bn_cols(jnp.maximum(h, 0.0), g1_ref[...], be1_ref[...])   # (B*T, WS)

    # The slab collects branch outputs at lane offset i*W; initializing it with h also
    # seeds the final (untouched) group spx[scale-1] at its lane offset.
    slab_ref[...] = h

    # ---- hierarchical (Res2Net) branch chain --------------------------------------
    # Zero the time-padded scratch once: the interior [pad:pad+T] is overwritten every
    # branch, the pad rows stay zero (this replaces concat-based zero padding).
    xp_ref[...] = jnp.zeros_like(xp_ref)

    sp = None
    for i in range(nums):                                         # static, sequential chain
        spx_i = h[:, i * W:(i + 1) * W]                           # (B*T, W)
        sp = spx_i if i == 0 else sp + spx_i                      # no zero-add on branch 0
        xp_ref[:, pad:pad + T, :] = sp.reshape(B, T, W)
        xp = xp_ref[...]                                          # one load; slice taps in-register

        acc = jnp.zeros((B * T, W), f32) + bbr_ref[i]             # bias (1, W) broadcast
        for tap in range(K):                                      # dilated conv = K shifted matmuls
            xs = xp[:, tap * dil:tap * dil + T, :].reshape(B * T, W)
            acc = acc + jnp.dot(xs, wbr_ref[i * K + tap].astype(f32),
                                preferred_element_type=f32)

        y = bn_cols(jnp.maximum(acc, 0.0), gbr_ref[i], bebr_ref[i])
        slab_ref[:, i * W:(i + 1) * W] = y                        # lane-offset write into slab
        sp = y

    # ---- conv3 (1x1) + ReLU + BN3 -------------------------------------------------
    hc = slab_ref[...]                                            # (B*T, WS)
    h3 = jnp.dot(hc, w3_ref[...].astype(f32), preferred_element_type=f32) + b3_ref[...]
    h3 = bn_cols(jnp.maximum(h3, 0.0), g3_ref[...], be3_ref[...]) # (B*T, P)

    # ---- SE gate + residual ---------------------------------------------------------
    P = h3.shape[-1]
    h3d = h3.reshape(B, T, P)
    m = jnp.mean(h3d, axis=1)                                     # AdaptiveAvgPool1d(1) -> (B, P)
    s = jnp.dot(m, sw1_ref[...].astype(f32), preferred_element_type=f32) + sb1_ref[...]
    s = jnp.maximum(s, 0.0)
    s = jnp.dot(s, sw2_ref[...].astype(f32), preferred_element_type=f32) + sb2_ref[...]
    s = pl.reciprocal(1.0 + jnp.exp(-s), approx=False)            # sigmoid (exp on EUP)
    o_ref[...] = (h3d * s[:, None, :] + x).astype(o_ref.dtype)


# ----------------------------------------------------------------------------- wrapper
def bottle2neck_forward(x, p, *, kernel_size, dilation, scale, width):
    """x: (B, C, T) NCL, as in PyTorch. Returns (B, C, T)."""
    B, C, T = x.shape
    W = width
    WS = W * scale
    K = kernel_size
    dil = dilation
    pad = (kernel_size // 2) * dilation
    nums = scale - 1
    planes = p['conv3_w'].shape[0]

    xt = jnp.transpose(x, (0, 2, 1))                              # NCL -> NLC (once)

    # Weight layout prep (pure relayout; fuses into the surrounding jit).
    row = lambda v: v.reshape(1, -1)
    w1 = p['conv1_w'][:, :, 0].T                                  # (C, WS)
    w3 = p['conv3_w'][:, :, 0].T                                  # (WS, planes)
    sw1 = p['se_w1'][:, :, 0].T                                   # (planes, bottleneck)
    sw2 = p['se_w2'][:, :, 0].T                                   # (bottleneck, planes)
    wbr = jnp.stack([jnp.transpose(p['convs_w'][i], (2, 1, 0)) for i in range(nums)],
                    axis=0).reshape(nums * K, W, W)               # (nums*K, Win, Wout)
    bbr = jnp.stack(p['convs_b'])[:, None, :]                     # (nums, 1, W)
    gbr = jnp.stack(p['bns_g'])[:, None, :]
    bebr = jnp.stack(p['bns_b'])[:, None, :]

    ins = [xt,
           w1, row(p['conv1_b']), row(p['bn1_g']), row(p['bn1_b']),
           wbr, bbr, gbr, bebr,
           w3, row(p['conv3_b']), row(p['bn3_g']), row(p['bn3_b']),
           sw1, row(p['se_b1']), sw2, row(p['se_b2'])]

    kern = functools.partial(_bottle2neck_kernel, B=B, T=T, C=C, W=W,
                             scale=scale, K=K, dil=dil, pad=pad)

    y = pl.pallas_call(
        kern,
        grid=(1,),
        in_specs=[pl.BlockSpec(a.shape, lambda i, _n=a.ndim: (0,) * _n) for a in ins],
        out_specs=pl.BlockSpec((B, T, planes), lambda i: (0, 0, 0)),
        out_shape=jax.ShapeDtypeStruct((B, T, planes), x.dtype),
        scratch_shapes=[pltpu.VMEM((B, T + 2 * pad, W), jnp.float32),
                        pltpu.VMEM((B * T, WS), jnp.float32)],
        compiler_params=pltpu.CompilerParams(dimension_semantics=("arbitrary",)),
    )(*ins)

    return jnp.transpose(y, (0, 2, 1))                            # back to NCL


# ----------------------------------------------------------------------------- reference
def torch_like_ref(x, p, *, kernel_size, dilation, scale, width):
    """Pure-JAX mirror of the PyTorch forward, in NCL layout, for validation."""
    def conv1d(v, w, b, pad=0, dil=1):
        y = jax.lax.conv_general_dilated(v, w, window_strides=(1,), padding=[(pad, pad)],
                                         rhs_dilation=(dil,),
                                         dimension_numbers=('NCH', 'OIH', 'NCH'))
        return y + b[None, :, None]

    def bn(v, g, be):
        mean = jnp.mean(v, axis=(0, 2), keepdims=True)
        var = jnp.mean((v - mean) ** 2, axis=(0, 2), keepdims=True)
        return (v - mean) * jax.lax.rsqrt(var + _BN_EPS) * g[None, :, None] + be[None, :, None]

    pad = math.floor(kernel_size / 2) * dilation
    residual = x
    out = bn(jnp.maximum(conv1d(x, p['conv1_w'], p['conv1_b']), 0.0), p['bn1_g'], p['bn1_b'])
    spx = [out[:, i * width:(i + 1) * width, :] for i in range(scale)]
    outs, sp = [], None
    for i in range(scale - 1):
        sp = spx[i] if i == 0 else sp + spx[i]
        sp = bn(jnp.maximum(conv1d(sp, p['convs_w'][i], p['convs_b'][i], pad=pad, dil=dilation), 0.0),
                p['bns_g'][i], p['bns_b'][i])
        outs.append(sp)
    outs.append(spx[scale - 1])
    out = jnp.concatenate(outs, axis=1)
    out = bn(jnp.maximum(conv1d(out, p['conv3_w'], p['conv3_b']), 0.0), p['bn3_g'], p['bn3_b'])
    m = jnp.mean(out, axis=2, keepdims=True)
    s = jnp.maximum(conv1d(m, p['se_w1'], p['se_b1']), 0.0)
    s = 1.0 / (1.0 + jnp.exp(-conv1d(s, p['se_w2'], p['se_b2'])))
    return out * s + residual


# ----------------------------------------------------------------------------- params
def init_params(key, inplanes, planes, kernel_size, scale, width, se_bottleneck=128):
    ks = iter(jax.random.split(key, 64))
    nrm = lambda shape, s=0.2: s * jax.random.normal(next(ks), shape, jnp.float32)
    nums = scale - 1
    return {
        'conv1_w': nrm((width * scale, inplanes, 1)),
        'conv1_b': nrm((width * scale,), 0.1),
        'bn1_g': 1.0 + nrm((width * scale,), 0.1),
        'bn1_b': nrm((width * scale,), 0.1),
        'convs_w': [nrm((width, width, kernel_size)) for _ in range(nums)],
        'convs_b': [nrm((width,), 0.1) for _ in range(nums)],
        'bns_g': [1.0 + nrm((width,), 0.1) for _ in range(nums)],
        'bns_b': [nrm((width,), 0.1) for _ in range(nums)],
        'conv3_w': nrm((planes, width * scale, 1)),
        'conv3_b': nrm((planes,), 0.1),
        'bn3_g': 1.0 + nrm((planes,), 0.1),
        'bn3_b': nrm((planes,), 0.1),
        'se_w1': nrm((se_bottleneck, planes, 1)),
        'se_b1': nrm((se_bottleneck,), 0.1),
        'se_w2': nrm((planes, se_bottleneck, 1)),
        'se_b2': nrm((planes,), 0.1),
    }


# ----------------------------------------------------------------------------- main
if __name__ == "__main__":
    inplanes = planes = 32          # residual add requires inplanes == planes
    kernel_size, dilation, scale = 3, 2, 8
    width = int(math.floor(planes / scale))   # 4
    B, T = 2, 16

    key = jax.random.PRNGKey(0)
    kp, kx = jax.random.split(key)
    params = init_params(kp, inplanes, planes, kernel_size, scale, width)
    x = jax.random.normal(kx, (B, inplanes, T), jnp.float32)

    fwd = jax.jit(functools.partial(bottle2neck_forward, kernel_size=kernel_size,
                                    dilation=dilation, scale=scale, width=width))
    y = jax.block_until_ready(fwd(x, params))

    y_ref = torch_like_ref(x, params, kernel_size=kernel_size, dilation=dilation,
                           scale=scale, width=width)
    assert y.shape == (B, planes, T)
    assert bool(jnp.allclose(y, y_ref, rtol=5e-3, atol=5e-3)), "mismatch vs pure-JAX reference"

    print("KERNEL_OK")
</pallas_src>

<mosaic_0001>
module attributes {stable_mosaic.version = 11 : i64} {
  func.func @_bottle2neck_kernel(%arg0: i32, %arg1: memref<2x16x32xf32, #tpu.memory_space<vmem>>, %arg2: memref<32x32xf32, #tpu.memory_space<vmem>>, %arg3: memref<1x32xf32, #tpu.memory_space<vmem>>, %arg4: memref<1x32xf32, #tpu.memory_space<vmem>>, %arg5: memref<1x32xf32, #tpu.memory_space<vmem>>, %arg6: memref<21x4x4xf32, #tpu.memory_space<vmem>>, %arg7: memref<7x1x4xf32, #tpu.memory_space<vmem>>, %arg8: memref<7x1x4xf32, #tpu.memory_space<vmem>>, %arg9: memref<7x1x4xf32, #tpu.memory_space<vmem>>, %arg10: memref<32x32xf32, #tpu.memory_space<vmem>>, %arg11: memref<1x32xf32, #tpu.memory_space<vmem>>, %arg12: memref<1x32xf32, #tpu.memory_space<vmem>>, %arg13: memref<1x32xf32, #tpu.memory_space<vmem>>, %arg14: memref<32x128xf32, #tpu.memory_space<vmem>>, %arg15: memref<1x128xf32, #tpu.memory_space<vmem>>, %arg16: memref<128x32xf32, #tpu.memory_space<vmem>>, %arg17: memref<1x32xf32, #tpu.memory_space<vmem>>, %arg18: memref<2x16x32xf32, #tpu.memory_space<vmem>>, %arg19: memref<2x20x4xf32, #tpu.memory_space<vmem>>, %arg20: memref<32x32xf32, #tpu.memory_space<vmem>>) attributes {dimension_semantics = [#tpu.dimension_semantics<arbitrary>], iteration_bounds = array<i64: 1>, scalar_prefetch = 0 : i64, scratch_operands = 2 : i64, tpu.core_type = #tpu.core_type<tc>, window_params = [{pipeline_mode = #tpu.pipeline_mode<synchronous>, transform_indices = @transform_0, window_bounds = array<i64: 2, 16, 32>}, {pipeline_mode = #tpu.pipeline_mode<synchronous>, transform_indices = @transform_1, window_bounds = array<i64: 32, 32>}, {pipeline_mode = #tpu.pipeline_mode<synchronous>, transform_indices = @transform_2, window_bounds = array<i64: 1, 32>}, {pipeline_mode = #tpu.pipeline_mode<synchronous>, transform_indices = @transform_3, window_bounds = array<i64: 1, 32>}, {pipeline_mode = #tpu.pipeline_mode<synchronous>, transform_indices = @transform_4, window_bounds = array<i64: 1, 32>}, {pipeline_mode = #tpu.pipeline_mode<synchronous>, transform_indices = @transform_5, window_bounds = array<i64: 21, 4, 4>}, {pipeline_mode = #tpu.pipeline_mode<synchronous>, transform_indices = @transform_6, window_bounds = array<i64: 7, 1, 4>}, {pipeline_mode = #tpu.pipeline_mode<synchronous>, transform_indices = @transform_7, window_bounds = array<i64: 7, 1, 4>}, {pipeline_mode = #tpu.pipeline_mode<synchronous>, transform_indices = @transform_8, window_bounds = array<i64: 7, 1, 4>}, {pipeline_mode = #tpu.pipeline_mode<synchronous>, transform_indices = @transform_9, window_bounds = array<i64: 32, 32>}, {pipeline_mode = #tpu.pipeline_mode<synchronous>, transform_indices = @transform_10, window_bounds = array<i64: 1, 32>}, {pipeline_mode = #tpu.pipeline_mode<synchronous>, transform_indices = @transform_11, window_bounds = array<i64: 1, 32>}, {pipeline_mode = #tpu.pipeline_mode<synchronous>, transform_indices = @transform_12, window_bounds = array<i64: 1, 32>}, {pipeline_mode = #tpu.pipeline_mode<synchronous>, transform_indices = @transform_13, window_bounds = array<i64: 32, 128>}, {pipeline_mode = #tpu.pipeline_mode<synchronous>, transform_indices = @transform_14, window_bounds = array<i64: 1, 128>}, {pipeline_mode = #tpu.pipeline_mode<synchronous>, transform_indices = @transform_15, window_bounds = array<i64: 128, 32>}, {pipeline_mode = #tpu.pipeline_mode<synchronous>, transform_indices = @transform_16, window_bounds = array<i64: 1, 32>}, {pipeline_mode = #tpu.pipeline_mode<synchronous>, transform_indices = @transform_17, window_bounds = array<i64: 2, 16, 32>}]} {
    %c0 = arith.constant 0 : index
    %c0_0 = arith.constant 0 : index
    %c0_1 = arith.constant 0 : index
    %0 = vector.load %arg1[%c0, %c0_0, %c0_1] : memref<2x16x32xf32, #tpu.memory_space<vmem>>, vector<2x16x32xf32>
    %1 = vector.shape_cast %0 : vector<2x16x32xf32> to vector<32x32xf32>
    %c0_2 = arith.constant 0 : index
    %c0_3 = arith.constant 0 : index
    %2 = vector.load %arg2[%c0_2, %c0_3] : memref<32x32xf32, #tpu.memory_space<vmem>>, vector<32x32xf32>
    %cst = arith.constant dense<0.000000e+00> : vector<32x32xf32>
    %3 = tpu.matmul %1, %2, %cst {dimension_numbers = #tpu.dot_dimension_numbers<[1], [0], [0], [1], [0, 0, 1, 1], [], []>} : vector<32x32xf32>, vector<32x32xf32>, vector<32x32xf32> -> vector<32x32xf32>
    %c0_4 = arith.constant 0 : index
    %c0_5 = arith.constant 0 : index
    %4 = vector.load %arg3[%c0_4, %c0_5] : memref<1x32xf32, #tpu.memory_space<vmem>>, vector<1x32xf32>
    %5 = vector.broadcast %4 : vector<1x32xf32> to vector<32x32xf32>
    %6 = arith.addf %3, %5 : vector<32x32xf32>
    %cst_6 = arith.constant 0.000000e+00 : f32
    %7 = vector.broadcast %cst_6 : f32 to vector<32x32xf32>
    %8 = arith.maximumf %6, %7 : vector<32x32xf32>
    %c0_7 = arith.constant 0 : index
    %c0_8 = arith.constant 0 : index
    %9 = vector.load %arg4[%c0_7, %c0_8] : memref<1x32xf32, #tpu.memory_space<vmem>>, vector<1x32xf32>
    %c0_9 = arith.constant 0 : index
    %c0_10 = arith.constant 0 : index
    %10 = vector.load %arg5[%c0_9, %c0_10] : memref<1x32xf32, #tpu.memory_space<vmem>>, vector<1x32xf32>
    %cst_11 = arith.constant dense<0.000000e+00> : vector<32xf32>
    %11 = vector.multi_reduction <add>, %8, %cst_11 [0] : vector<32x32xf32> to vector<32xf32>
    %12 = vector.shape_cast %11 : vector<32xf32> to vector<1x32xf32>
    %cst_12 = arith.constant 3.200000e+01 : f32
    %13 = vector.broadcast %cst_12 : f32 to vector<1x32xf32>
    %14 = arith.divf %12, %13 : vector<1x32xf32>
    %15 = vector.broadcast %14 : vector<1x32xf32> to vector<32x32xf32>
    %16 = arith.subf %8, %15 : vector<32x32xf32>
    %17 = arith.mulf %16, %16 : vector<32x32xf32>
    %cst_13 = arith.constant dense<0.000000e+00> : vector<32xf32>
    %18 = vector.multi_reduction <add>, %17, %cst_13 [0] : vector<32x32xf32> to vector<32xf32>
    %19 = vector.shape_cast %18 : vector<32xf32> to vector<1x32xf32>
    %cst_14 = arith.constant 3.200000e+01 : f32
    %20 = vector.broadcast %cst_14 : f32 to vector<1x32xf32>
    %21 = arith.divf %19, %20 : vector<1x32xf32>
    %22 = vector.broadcast %14 : vector<1x32xf32> to vector<32x32xf32>
    %23 = arith.subf %8, %22 : vector<32x32xf32>
    %cst_15 = arith.constant 9.99999974E-6 : f32
    %24 = vector.broadcast %cst_15 : f32 to vector<1x32xf32>
    %25 = arith.addf %21, %24 : vector<1x32xf32>
    %26 = math.rsqrt %25 : vector<1x32xf32>
    %27 = vector.broadcast %26 : vector<1x32xf32> to vector<32x32xf32>
    %28 = arith.mulf %23, %27 : vector<32x32xf32>
    %29 = vector.broadcast %9 : vector<1x32xf32> to vector<32x32xf32>
    %30 = arith.mulf %28, %29 : vector<32x32xf32>
    %31 = vector.broadcast %10 : vector<1x32xf32> to vector<32x32xf32>
    %32 = arith.addf %30, %31 : vector<32x32xf32>
    %c0_16 = arith.constant 0 : index
    %c0_17 = arith.constant 0 : index
    %33 = vector.load %arg20[%c0_16, %c0_17] : memref<32x32xf32, #tpu.memory_space<vmem>>, vector<32x32xf32>
    tpu.vector_store %arg20[%c0_16, %c0_17], %32 {strides = array<i32>} : memref<32x32xf32, #tpu.memory_space<vmem>>, vector<32x32xf32>,
    %cst_18 = arith.constant 0.000000e+00 : f32
    %34 = vector.broadcast %cst_18 : f32 to vector<2x20x4xf32>
    %c0_19 = arith.constant 0 : index
    %c0_20 = arith.constant 0 : index
    %c0_21 = arith.constant 0 : index
    %35 = vector.load %arg19[%c0_19, %c0_20, %c0_21] : memref<2x20x4xf32, #tpu.memory_space<vmem>>, vector<2x20x4xf32>
    tpu.vector_store %arg19[%c0_19, %c0_20, %c0_21], %34 {strides = array<i32>} : memref<2x20x4xf32, #tpu.memory_space<vmem>>, vector<2x20x4xf32>,
    %36 = vector.extract_strided_slice %32 {offsets = [0, 0], sizes = [32, 4], strides = [1, 1]} : vector<32x32xf32> to vector<32x4xf32>
    %37 = vector.shape_cast %36 : vector<32x4xf32> to vector<2x16x4xf32>
    %c0_22 = arith.constant 0 : index
    %c2 = arith.constant 2 : index
    %c0_23 = arith.constant 0 : index
    %38 = vector.load %arg19[%c0_22, %c2, %c0_23] : memref<2x20x4xf32, #tpu.memory_space<vmem>>, vector<2x16x4xf32>
    tpu.vector_store %arg19[%c0_22, %c2, %c0_23], %37 {strides = array<i32>} : memref<2x20x4xf32, #tpu.memory_space<vmem>>, vector<2x16x4xf32>,
    %c0_24 = arith.constant 0 : index
    %c0_25 = arith.constant 0 : index
    %c0_26 = arith.constant 0 : index
    %39 = vector.load %arg19[%c0_24, %c0_25, %c0_26] : memref<2x20x4xf32, #tpu.memory_space<vmem>>, vector<2x20x4xf32>
    %cst_27 = arith.constant 0.000000e+00 : f32
    %40 = vector.broadcast %cst_27 : f32 to vector<32x4xf32>
    %c0_28 = arith.constant 0 : index
    %c0_29 = arith.constant 0 : index
    %c0_30 = arith.constant 0 : index
    %41 = vector.load %arg7[%c0_28, %c0_29, %c0_30] : memref<7x1x4xf32, #tpu.memory_space<vmem>>, vector<1x1x4xf32>
    %42 = vector.shape_cast %41 : vector<1x1x4xf32> to vector<1x4xf32>
    %43 = vector.broadcast %42 : vector<1x4xf32> to vector<32x4xf32>
    %44 = arith.addf %40, %43 : vector<32x4xf32>
    %45 = vector.extract_strided_slice %39 {offsets = [0, 0, 0], sizes = [2, 16, 4], strides = [1, 1, 1]} : vector<2x20x4xf32> to vector<2x16x4xf32>
    %46 = vector.shape_cast %45 : vector<2x16x4xf32> to vector<32x4xf32>
    %c0_31 = arith.constant 0 : index
    %c0_32 = arith.constant 0 : index
    %c0_33 = arith.constant 0 : index
    %47 = vector.load %arg6[%c0_31, %c0_32, %c0_33] : memref<21x4x4xf32, #tpu.memory_space<vmem>>, vector<1x4x4xf32>
    %48 = vector.shape_cast %47 : vector<1x4x4xf32> to vector<4x4xf32>
    %cst_34 = arith.constant dense<0.000000e+00> : vector<32x4xf32>
    %49 = tpu.matmul %46, %48, %cst_34 {dimension_numbers = #tpu.dot_dimension_numbers<[1], [0], [0], [1], [0, 0, 1, 1], [], []>} : vector<32x4xf32>, vector<4x4xf32>, vector<32x4xf32> -> vector<32x4xf32>
    %50 = arith.addf %44, %49 : vector<32x4xf32>
    %51 = vector.extract_strided_slice %39 {offsets = [0, 2, 0], sizes = [2, 16, 4], strides = [1, 1, 1]} : vector<2x20x4xf32> to vector<2x16x4xf32>
    %52 = vector.shape_cast %51 : vector<2x16x4xf32> to vector<32x4xf32>
    %c1 = arith.constant 1 : index
    %c0_35 = arith.constant 0 : index
    %c0_36 = arith.constant 0 : index
    %53 = vector.load %arg6[%c1, %c0_35, %c0_36] : memref<21x4x4xf32, #tpu.memory_space<vmem>>, vector<1x4x4xf32>
    %54 = vector.shape_cast %53 : vector<1x4x4xf32> to vector<4x4xf32>
    %cst_37 = arith.constant dense<0.000000e+00> : vector<32x4xf32>
    %55 = tpu.matmul %52, %54, %cst_37 {dimension_numbers = #tpu.dot_dimension_numbers<[1], [0], [0], [1], [0, 0, 1, 1], [], []>} : vector<32x4xf32>, vector<4x4xf32>, vector<32x4xf32> -> vector<32x4xf32>
    %56 = arith.addf %50, %55 : vector<32x4xf32>
    %57 = vector.extract_strided_slice %39 {offsets = [0, 4, 0], sizes = [2, 16, 4], strides = [1, 1, 1]} : vector<2x20x4xf32> to vector<2x16x4xf32>
    %58 = vector.shape_cast %57 : vector<2x16x4xf32> to vector<32x4xf32>
    %c2_38 = arith.constant 2 : index
    %c0_39 = arith.constant 0 : index
    %c0_40 = arith.constant 0 : index
    %59 = vector.load %arg6[%c2_38, %c0_39, %c0_40] : memref<21x4x4xf32, #tpu.memory_space<vmem>>, vector<1x4x4xf32>
    %60 = vector.shape_cast %59 : vector<1x4x4xf32> to vector<4x4xf32>
    %cst_41 = arith.constant dense<0.000000e+00> : vector<32x4xf32>
    %61 = tpu.matmul %58, %60, %cst_41 {dimension_numbers = #tpu.dot_dimension_numbers<[1], [0], [0], [1], [0, 0, 1, 1], [], []>} : vector<32x4xf32>, vector<4x4xf32>, vector<32x4xf32> -> vector<32x4xf32>
    %62 = arith.addf %56, %61 : vector<32x4xf32>
    %cst_42 = arith.constant 0.000000e+00 : f32
    %63 = vector.broadcast %cst_42 : f32 to vector<32x4xf32>
    %64 = arith.maximumf %62, %63 : vector<32x4xf32>
    %c0_43 = arith.constant 0 : index
    %c0_44 = arith.constant 0 : index
    %c0_45 = arith.constant 0 : index
    %65 = vector.load %arg8[%c0_43, %c0_44, %c0_45] : memref<7x1x4xf32, #tpu.memory_space<vmem>>, vector<1x1x4xf32>
    %66 = vector.shape_cast %65 : vector<1x1x4xf32> to vector<1x4xf32>
    %c0_46 = arith.constant 0 : index
    %c0_47 = arith.constant 0 : index
    %c0_48 = arith.constant 0 : index
    %67 = vector.load %arg9[%c0_46, %c0_47, %c0_48] : memref<7x1x4xf32, #tpu.memory_space<vmem>>, vector<1x1x4xf32>
    %68 = vector.shape_cast %67 : vector<1x1x4xf32> to vector<1x4xf32>
    %cst_49 = arith.constant dense<0.000000e+00> : vector<4xf32>
    %69 = vector.multi_reduction <add>, %64, %cst_49 [0] : vector<32x4xf32> to vector<4xf32>
    %70 = vector.shape_cast %69 : vector<4xf32> to vector<1x4xf32>
    %cst_50 = arith.constant 3.200000e+01 : f32
    %71 = vector.broadcast %cst_50 : f32 to vector<1x4xf32>
    %72 = arith.divf %70, %71 : vector<1x4xf32>
    %73 = vector.broadcast %72 : vector<1x4xf32> to vector<32x4xf32>
    %74 = arith.subf %64, %73 : vector<32x4xf32>
    %75 = arith.mulf %74, %74 : vector<32x4xf32>
    %cst_51 = arith.constant dense<0.000000e+00> : vector<4xf32>
    %76 = vector.multi_reduction <add>, %75, %cst_51 [0] : vector<32x4xf32> to vector<4xf32>
    %77 = vector.shape_cast %76 : vector<4xf32> to vector<1x4xf32>
    %cst_52 = arith.constant 3.200000e+01 : f32
    %78 = vector.broadcast %cst_52 : f32 to vector<1x4xf32>
    %79 = arith.divf %77, %78 : vector<1x4xf32>
    %80 = vector.broadcast %72 : vector<1x4xf32> to vector<32x4xf32>
    %81 = arith.subf %64, %80 : vector<32x4xf32>
    %cst_53 = arith.constant 9.99999974E-6 : f32
    %82 = vector.broadcast %cst_53 : f32 to vector<1x4xf32>
    %83 = arith.addf %79, %82 : vector<1x4xf32>
    %84 = math.rsqrt %83 : vector<1x4xf32>
    %85 = vector.broadcast %84 : vector<1x4xf32> to vector<32x4xf32>
    %86 = arith.mulf %81, %85 : vector<32x4xf32>
    %87 = vector.broadcast %66 : vector<1x4xf32> to vector<32x4xf32>
    %88 = arith.mulf %86, %87 : vector<32x4xf32>
    %89 = vector.broadcast %68 : vector<1x4xf32> to vector<32x4xf32>
    %90 = arith.addf %88, %89 : vector<32x4xf32>
    %c0_54 = arith.constant 0 : index
    %c0_55 = arith.constant 0 : index
    %91 = vector.load %arg20[%c0_54, %c0_55] : memref<32x32xf32, #tpu.memory_space<vmem>>, vector<32x4xf32>
    tpu.vector_store %arg20[%c0_54, %c0_55], %90 {strides = array<i32>} : memref<32x32xf32, #tpu.memory_space<vmem>>, vector<32x4xf32>,
    %92 = vector.extract_strided_slice %32 {offsets = [0, 4], sizes = [32, 4], strides = [1, 1]} : vector<32x32xf32> to vector<32x4xf32>
    %93 = arith.addf %90, %92 : vector<32x4xf32>
    %94 = vector.shape_cast %93 : vector<32x4xf32> to vector<2x16x4xf32>
    %c0_56 = arith.constant 0 : index
    %c2_57 = arith.constant 2 : index
    %c0_58 = arith.constant 0 : index
    %95 = vector.load %arg19[%c0_56, %c2_57, %c0_58] : memref<2x20x4xf32, #tpu.memory_space<vmem>>, vector<2x16x4xf32>
    tpu.vector_store %arg19[%c0_56, %c2_57, %c0_58], %94 {strides = array<i32>} : memref<2x20x4xf32, #tpu.memory_space<vmem>>, vector<2x16x4xf32>,
    %c0_59 = arith.constant 0 : index
    %c0_60 = arith.constant 0 : index
    %c0_61 = arith.constant 0 : index
    %96 = vector.load %arg19[%c0_59, %c0_60, %c0_61] : memref<2x20x4xf32, #tpu.memory_space<vmem>>, vector<2x20x4xf32>
    %cst_62 = arith.constant 0.000000e+00 : f32
    %97 = vector.broadcast %cst_62 : f32 to vector<32x4xf32>
    %c1_63 = arith.constant 1 : index
    %c0_64 = arith.constant 0 : index
    %c0_65 = arith.constant 0 : index
    %98 = vector.load %arg7[%c1_63, %c0_64, %c0_65] : memref<7x1x4xf32, #tpu.memory_space<vmem>>, vector<1x1x4xf32>
    %99 = vector.shape_cast %98 : vector<1x1x4xf32> to vector<1x4xf32>
    %100 = vector.broadcast %99 : vector<1x4xf32> to vector<32x4xf32>
    %101 = arith.addf %97, %100 : vector<32x4xf32>
    %102 = vector.extract_strided_slice %96 {offsets = [0, 0, 0], sizes = [2, 16, 4], strides = [1, 1, 1]} : vector<2x20x4xf32> to vector<2x16x4xf32>
    %103 = vector.shape_cast %102 : vector<2x16x4xf32> to vector<32x4xf32>
    %c3 = arith.constant 3 : index
    %c0_66 = arith.constant 0 : index
    %c0_67 = arith.constant 0 : index
    %104 = vector.load %arg6[%c3, %c0_66, %c0_67] : memref<21x4x4xf32, #tpu.memory_space<vmem>>, vector<1x4x4xf32>
    %105 = vector.shape_cast %104 : vector<1x4x4xf32> to vector<4x4xf32>
    %cst_68 = arith.constant dense<0.000000e+00> : vector<32x4xf32>
    %106 = tpu.matmul %103, %105, %cst_68 {dimension_numbers = #tpu.dot_dimension_numbers<[1], [0], [0], [1], [0, 0, 1, 1], [], []>} : vector<32x4xf32>, vector<4x4xf32>, vector<32x4xf32> -> vector<32x4xf32>
    %107 = arith.addf %101, %106 : vector<32x4xf32>
    %108 = vector.extract_strided_slice %96 {offsets = [0, 2, 0], sizes = [2, 16, 4], strides = [1, 1, 1]} : vector<2x20x4xf32> to vector<2x16x4xf32>
    %109 = vector.shape_cast %108 : vector<2x16x4xf32> to vector<32x4xf32>
    %c4 = arith.constant 4 : index
    %c0_69 = arith.constant 0 : index
    %c0_70 = arith.constant 0 : index
    %110 = vector.load %arg6[%c4, %c0_69, %c0_70] : memref<21x4x4xf32, #tpu.memory_space<vmem>>, vector<1x4x4xf32>
    %111 = vector.shape_cast %110 : vector<1x4x4xf32> to vector<4x4xf32>
    %cst_71 = arith.constant dense<0.000000e+00> : vector<32x4xf32>
    %112 = tpu.matmul %109, %111, %cst_71 {dimension_numbers = #tpu.dot_dimension_numbers<[1], [0], [0], [1], [0, 0, 1, 1], [], []>} : vector<32x4xf32>, vector<4x4xf32>, vector<32x4xf32> -> vector<32x4xf32>
    %113 = arith.addf %107, %112 : vector<32x4xf32>
    %114 = vector.extract_strided_slice %96 {offsets = [0, 4, 0], sizes = [2, 16, 4], strides = [1, 1, 1]} : vector<2x20x4xf32> to vector<2x16x4xf32>
    %115 = vector.shape_cast %114 : vector<2x16x4xf32> to vector<32x4xf32>
    %c5 = arith.constant 5 : index
    %c0_72 = arith.constant 0 : index
    %c0_73 = arith.constant 0 : index
    %116 = vector.load %arg6[%c5, %c0_72, %c0_73] : memref<21x4x4xf32, #tpu.memory_space<vmem>>, vector<1x4x4xf32>
    %117 = vector.shape_cast %116 : vector<1x4x4xf32> to vector<4x4xf32>
    %cst_74 = arith.constant dense<0.000000e+00> : vector<32x4xf32>
    %118 = tpu.matmul %115, %117, %cst_74 {dimension_numbers = #tpu.dot_dimension_numbers<[1], [0], [0], [1], [0, 0, 1, 1], [], []>} : vector<32x4xf32>, vector<4x4xf32>, vector<32x4xf32> -> vector<32x4xf32>
    %119 = arith.addf %113, %118 : vector<32x4xf32>
    %cst_75 = arith.constant 0.000000e+00 : f32
    %120 = vector.broadcast %cst_75 : f32 to vector<32x4xf32>
    %121 = arith.maximumf %119, %120 : vector<32x4xf32>
    %c1_76 = arith.constant 1 : index
    %c0_77 = arith.constant 0 : index
    %c0_78 = arith.constant 0 : index
    %122 = vector.load %arg8[%c1_76, %c0_77, %c0_78] : memref<7x1x4xf32, #tpu.memory_space<vmem>>, vector<1x1x4xf32>
    %123 = vector.shape_cast %122 : vector<1x1x4xf32> to vector<1x4xf32>
    %c1_79 = arith.constant 1 : index
    %c0_80 = arith.constant 0 : index
    %c0_81 = arith.constant 0 : index
    %124 = vector.load %arg9[%c1_79, %c0_80, %c0_81] : memref<7x1x4xf32, #tpu.memory_space<vmem>>, vector<1x1x4xf32>
    %125 = vector.shape_cast %124 : vector<1x1x4xf32> to vector<1x4xf32>
    %cst_82 = arith.constant dense<0.000000e+00> : vector<4xf32>
    %126 = vector.multi_reduction <add>, %121, %cst_82 [0] : vector<32x4xf32> to vector<4xf32>
    %127 = vector.shape_cast %126 : vector<4xf32> to vector<1x4xf32>
    %cst_83 = arith.constant 3.200000e+01 : f32
    %128 = vector.broadcast %cst_83 : f32 to vector<1x4xf32>
    %129 = arith.divf %127, %128 : vector<1x4xf32>
    %130 = vector.broadcast %129 : vector<1x4xf32> to vector<32x4xf32>
    %131 = arith.subf %121, %130 : vector<32x4xf32>
    %132 = arith.mulf %131, %131 : vector<32x4xf32>
    %cst_84 = arith.constant dense<0.000000e+00> : vector<4xf32>
    %133 = vector.multi_reduction <add>, %132, %cst_84 [0] : vector<32x4xf32> to vector<4xf32>
    %134 = vector.shape_cast %133 : vector<4xf32> to vector<1x4xf32>
    %cst_85 = arith.constant 3.200000e+01 : f32
    %135 = vector.broadcast %cst_85 : f32 to vector<1x4xf32>
    %136 = arith.divf %134, %135 : vector<1x4xf32>
    %137 = vector.broadcast %129 : vector<1x4xf32> to vector<32x4xf32>
    %138 = arith.subf %121, %137 : vector<32x4xf32>
    %cst_86 = arith.constant 9.99999974E-6 : f32
    %139 = vector.broadcast %cst_86 : f32 to vector<1x4xf32>
    %140 = arith.addf %136, %139 : vector<1x4xf32>
    %141 = math.rsqrt %140 : vector<1x4xf32>
    %142 = vector.broadcast %141 : vector<1x4xf32> to vector<32x4xf32>
    %143 = arith.mulf %138, %142 : vector<32x4xf32>
    %144 = vector.broadcast %123 : vector<1x4xf32> to vector<32x4xf32>
    %145 = arith.mulf %143, %144 : vector<32x4xf32>
    %146 = vector.broadcast %125 : vector<1x4xf32> to vector<32x4xf32>
    %147 = arith.addf %145, %146 : vector<32x4xf32>
    %c0_87 = arith.constant 0 : index
    %c4_88 = arith.constant 4 : index
    %148 = vector.load %arg20[%c0_87, %c4_88] : memref<32x32xf32, #tpu.memory_space<vmem>>, vector<32x4xf32>
    tpu.vector_store %arg20[%c0_87, %c4_88], %147 {strides = array<i32>} : memref<32x32xf32, #tpu.memory_space<vmem>>, vector<32x4xf32>,
    %149 = vector.extract_strided_slice %32 {offsets = [0, 8], sizes = [32, 4], strides = [1, 1]} : vector<32x32xf32> to vector<32x4xf32>
    %150 = arith.addf %147, %149 : vector<32x4xf32>
    %151 = vector.shape_cast %150 : vector<32x4xf32> to vector<2x16x4xf32>
    %c0_89 = arith.constant 0 : index
    %c2_90 = arith.constant 2 : index
    %c0_91 = arith.constant 0 : index
    %152 = vector.load %arg19[%c0_89, %c2_90, %c0_91] : memref<2x20x4xf32, #tpu.memory_space<vmem>>, vector<2x16x4xf32>
    tpu.vector_store %arg19[%c0_89, %c2_90, %c0_91], %151 {strides = array<i32>} : memref<2x20x4xf32, #tpu.memory_space<vmem>>, vector<2x16x4xf32>,
    %c0_92 = arith.constant 0 : index
    %c0_93 = arith.constant 0 : index
    %c0_94 = arith.constant 0 : index
    %153 = vector.load %arg19[%c0_92, %c0_93, %c0_94] : memref<2x20x4xf32, #tpu.memory_space<vmem>>, vector<2x20x4xf32>
    %cst_95 = arith.constant 0.000000e+00 : f32
    %154 = vector.broadcast %cst_95 : f32 to vector<32x4xf32>
    %c2_96 = arith.constant 2 : index
    %c0_97 = arith.constant 0 : index
    %c0_98 = arith.constant 0 : index
    %155 = vector.load %arg7[%c2_96, %c0_97, %c0_98] : memref<7x1x4xf32, #tpu.memory_space<vmem>>, vector<1x1x4xf32>
    %156 = vector.shape_cast %155 : vector<1x1x4xf32> to vector<1x4xf32>
    %157 = vector.broadcast %156 : vector<1x4xf32> to vector<32x4xf32>
    %158 = arith.addf %154, %157 : vector<32x4xf32>
    %159 = vector.extract_strided_slice %153 {offsets = [0, 0, 0], sizes = [2, 16, 4], strides = [1, 1, 1]} : vector<2x20x4xf32> to vector<2x16x4xf32>
    %160 = vector.shape_cast %159 : vector<2x16x4xf32> to vector<32x4xf32>
    %c6 = arith.constant 6 : index
    %c0_99 = arith.constant 0 : index
    %c0_100 = arith.constant 0 : index
    %161 = vector.load %arg6[%c6, %c0_99, %c0_100] : memref<21x4x4xf32, #tpu.memory_space<vmem>>, vector<1x4x4xf32>
    %162 = vector.shape_cast %161 : vector<1x4x4xf32> to vector<4x4xf32>
    %cst_101 = arith.constant dense<0.000000e+00> : vector<32x4xf32>
    %163 = tpu.matmul %160, %162, %cst_101 {dimension_numbers = #tpu.dot_dimension_numbers<[1], [0], [0], [1], [0, 0, 1, 1], [], []>} : vector<32x4xf32>, vector<4x4xf32>, vector<32x4xf32> -> vector<32x4xf32>
    %164 = arith.addf %158, %163 : vector<32x4xf32>
    %165 = vector.extract_strided_slice %153 {offsets = [0, 2, 0], sizes = [2, 16, 4], strides = [1, 1, 1]} : vector<2x20x4xf32> to vector<2x16x4xf32>
    %166 = vector.shape_cast %165 : vector<2x16x4xf32> to vector<32x4xf32>
    %c7 = arith.constant 7 : index
    %c0_102 = arith.constant 0 : index
    %c0_103 = arith.constant 0 : index
    %167 = vector.load %arg6[%c7, %c0_102, %c0_103] : memref<21x4x4xf32, #tpu.memory_space<vmem>>, vector<1x4x4xf32>
    %168 = vector.shape_cast %167 : vector<1x4x4xf32> to vector<4x4xf32>
    %cst_104 = arith.constant dense<0.000000e+00> : vector<32x4xf32>
    %169 = tpu.matmul %166, %168, %cst_104 {dimension_numbers = #tpu.dot_dimension_numbers<[1], [0], [0], [1], [0, 0, 1, 1], [], []>} : vector<32x4xf32>, vector<4x4xf32>, vector<32x4xf32> -> vector<32x4xf32>
    %170 = arith.addf %164, %169 : vector<32x4xf32>
    %171 = vector.extract_strided_slice %153 {offsets = [0, 4, 0], sizes = [2, 16, 4], strides = [1, 1, 1]} : vector<2x20x4xf32> to vector<2x16x4xf32>
    %172 = vector.shape_cast %171 : vector<2x16x4xf32> to vector<32x4xf32>
    %c8 = arith.constant 8 : index
    %c0_105 = arith.constant 0 : index
    %c0_106 = arith.constant 0 : index
    %173 = vector.load %arg6[%c8, %c0_105, %c0_106] : memref<21x4x4xf32, #tpu.memory_space<vmem>>, vector<1x4x4xf32>
    %174 = vector.shape_cast %173 : vector<1x4x4xf32> to vector<4x4xf32>
    %cst_107 = arith.constant dense<0.000000e+00> : vector<32x4xf32>
    %175 = tpu.matmul %172, %174, %cst_107 {dimension_numbers = #tpu.dot_dimension_numbers<[1], [0], [0], [1], [0, 0, 1, 1], [], []>} : vector<32x4xf32>, vector<4x4xf32>, vector<32x4xf32> -> vector<32x4xf32>
    %176 = arith.addf %170, %175 : vector<32x4xf32>
    %cst_108 = arith.constant 0.000000e+00 : f32
    %177 = vector.broadcast %cst_108 : f32 to vector<32x4xf32>
    %178 = arith.maximumf %176, %177 : vector<32x4xf32>
    %c2_109 = arith.constant 2 : index
    %c0_110 = arith.constant 0 : index
    %c0_111 = arith.constant 0 : index
    %179 = vector.load %arg8[%c2_109, %c0_110, %c0_111] : memref<7x1x4xf32, #tpu.memory_space<vmem>>, vector<1x1x4xf32>
    %180 = vector.shape_cast %179 : vector<1x1x4xf32> to vector<1x4xf32>
    %c2_112 = arith.constant 2 : index
    %c0_113 = arith.constant 0 : index
    %c0_114 = arith.constant 0 : index
    %181 = vector.load %arg9[%c2_112, %c0_113, %c0_114] : memref<7x1x4xf32, #tpu.memory_space<vmem>>, vector<1x1x4xf32>
    %182 = vector.shape_cast %181 : vector<1x1x4xf32> to vector<1x4xf32>
    %cst_115 = arith.constant dense<0.000000e+00> : vector<4xf32>
    %183 = vector.multi_reduction <add>, %178, %cst_115 [0] : vector<32x4xf32> to vector<4xf32>
    %184 = vector.shape_cast %183 : vector<4xf32> to vector<1x4xf32>
    %cst_116 = arith.constant 3.200000e+01 : f32
    %185 = vector.broadcast %cst_116 : f32 to vector<1x4xf32>
    %186 = arith.divf %184, %185 : vector<1x4xf32>
    %187 = vector.broadcast %186 : vector<1x4xf32> to vector<32x4xf32>
    %188 = arith.subf %178, %187 : vector<32x4xf32>
    %189 = arith.mulf %188, %188 : vector<32x4xf32>
    %cst_117 = arith.constant dense<0.000000e+00> : vector<4xf32>
    %190 = vector.multi_reduction <add>, %189, %cst_117 [0] : vector<32x4xf32> to vector<4xf32>
    %191 = vector.shape_cast %190 : vector<4xf32> to vector<1x4xf32>
    %cst_118 = arith.constant 3.200000e+01 : f32
    %192 = vector.broadcast %cst_118 : f32 to vector<1x4xf32>
    %193 = arith.divf %191, %192 : vector<1x4xf32>
    %194 = vector.broadcast %186 : vector<1x4xf32> to vector<32x4xf32>
    %195 = arith.subf %178, %194 : vector<32x4xf32>
    %cst_119 = arith.constant 9.99999974E-6 : f32
    %196 = vector.broadcast %cst_119 : f32 to vector<1x4xf32>
    %197 = arith.addf %193, %196 : vector<1x4xf32>
    %198 = math.rsqrt %197 : vector<1x4xf32>
    %199 = vector.broadcast %198 : vector<1x4xf32> to vector<32x4xf32>
    %200 = arith.mulf %195, %199 : vector<32x4xf32>
    %201 = vector.broadcast %180 : vector<1x4xf32> to vector<32x4xf32>
    %202 = arith.mulf %200, %201 : vector<32x4xf32>
    %203 = vector.broadcast %182 : vector<1x4xf32> to vector<32x4xf32>
    %204 = arith.addf %202, %203 : vector<32x4xf32>
    %c0_120 = arith.constant 0 : index
    %c8_121 = arith.constant 8 : index
    %205 = vector.load %arg20[%c0_120, %c8_121] : memref<32x32xf32, #tpu.memory_space<vmem>>, vector<32x4xf32>
    tpu.vector_store %arg20[%c0_120, %c8_121], %204 {strides = array<i32>} : memref<32x32xf32, #tpu.memory_space<vmem>>, vector<32x4xf32>,
    %206 = vector.extract_strided_slice %32 {offsets = [0, 12], sizes = [32, 4], strides = [1, 1]} : vector<32x32xf32> to vector<32x4xf32>
    %207 = arith.addf %204, %206 : vector<32x4xf32>
    %208 = vector.shape_cast %207 : vector<32x4xf32> to vector<2x16x4xf32>
    %c0_122 = arith.constant 0 : index
    %c2_123 = arith.constant 2 : index
    %c0_124 = arith.constant 0 : index
    %209 = vector.load %arg19[%c0_122, %c2_123, %c0_124] : memref<2x20x4xf32, #tpu.memory_space<vmem>>, vector<2x16x4xf32>
    tpu.vector_store %arg19[%c0_122, %c2_123, %c0_124], %208 {strides = array<i32>} : memref<2x20x4xf32, #tpu.memory_space<vmem>>, vector<2x16x4xf32>,
    %c0_125 = arith.constant 0 : index
    %c0_126 = arith.constant 0 : index
    %c0_127 = arith.constant 0 : index
    %210 = vector.load %arg19[%c0_125, %c0_126, %c0_127] : memref<2x20x4xf32, #tpu.memory_space<vmem>>, vector<2x20x4xf32>
    %cst_128 = arith.constant 0.000000e+00 : f32
    %211 = vector.broadcast %cst_128 : f32 to vector<32x4xf32>
    %c3_129 = arith.constant 3 : index
    %c0_130 = arith.constant 0 : index
    %c0_131 = arith.constant 0 : index
    %212 = vector.load %arg7[%c3_129, %c0_130, %c0_131] : memref<7x1x4xf32, #tpu.memory_space<vmem>>, vector<1x1x4xf32>
    %213 = vector.shape_cast %212 : vector<1x1x4xf32> to vector<1x4xf32>
    %214 = vector.broadcast %213 : vector<1x4xf32> to vector<32x4xf32>
    %215 = arith.addf %211, %214 : vector<32x4xf32>
    %216 = vector.extract_strided_slice %210 {offsets = [0, 0, 0], sizes = [2, 16, 4], strides = [1, 1, 1]} : vector<2x20x4xf32> to vector<2x16x4xf32>
    %217 = vector.shape_cast %216 : vector<2x16x4xf32> to vector<32x4xf32>
    %c9 = arith.constant 9 : index
    %c0_132 = arith.constant 0 : index
    %c0_133 = arith.constant 0 : index
    %218 = vector.load %arg6[%c9, %c0_132, %c0_133] : memref<21x4x4xf32, #tpu.memory_space<vmem>>, vector<1x4x4xf32>
    %219 = vector.shape_cast %218 : vector<1x4x4xf32> to vector<4x4xf32>
    %cst_134 = arith.constant dense<0.000000e+00> : vector<32x4xf32>
    %220 = tpu.matmul %217, %219, %cst_134 {dimension_numbers = #tpu.dot_dimension_numbers<[1], [0], [0], [1], [0, 0, 1, 1], [], []>} : vector<32x4xf32>, vector<4x4xf32>, vector<32x4xf32> -> vector<32x4xf32>
    %221 = arith.addf %215, %220 : vector<32x4xf32>
    %222 = vector.extract_strided_slice %210 {offsets = [0, 2, 0], sizes = [2, 16, 4], strides = [1, 1, 1]} : vector<2x20x4xf32> to vector<2x16x4xf32>
    %223 = vector.shape_cast %222 : vector<2x16x4xf32> to vector<32x4xf32>
    %c10 = arith.constant 10 : index
    %c0_135 = arith.constant 0 : index
    %c0_136 = arith.constant 0 : index
    %224 = vector.load %arg6[%c10, %c0_135, %c0_136] : memref<21x4x4xf32, #tpu.memory_space<vmem>>, vector<1x4x4xf32>
    %225 = vector.shape_cast %224 : vector<1x4x4xf32> to vector<4x4xf32>
    %cst_137 = arith.constant dense<0.000000e+00> : vector<32x4xf32>
    %226 = tpu.matmul %223, %225, %cst_137 {dimension_numbers = #tpu.dot_dimension_numbers<[1], [0], [0], [1], [0, 0, 1, 1], [], []>} : vector<32x4xf32>, vector<4x4xf32>, vector<32x4xf32> -> vector<32x4xf32>
    %227 = arith.addf %221, %226 : vector<32x4xf32>
    %228 = vector.extract_strided_slice %210 {offsets = [0, 4, 0], sizes = [2, 16, 4], strides = [1, 1, 1]} : vector<2x20x4xf32> to vector<2x16x4xf32>
    %229 = vector.shape_cast %228 : vector<2x16x4xf32> to vector<32x4xf32>
    %c11 = arith.constant 11 : index
    %c0_138 = arith.constant 0 : index
    %c0_139 = arith.constant 0 : index
    %230 = vector.load %arg6[%c11, %c0_138, %c0_139] : memref<21x4x4xf32, #tpu.memory_space<vmem>>, vector<1x4x4xf32>
    %231 = vector.shape_cast %230 : vector<1x4x4xf32> to vector<4x4xf32>
    %cst_140 = arith.constant dense<0.000000e+00> : vector<32x4xf32>
    %232 = tpu.matmul %229, %231, %cst_140 {dimension_numbers = #tpu.dot_dimension_numbers<[1], [0], [0], [1], [0, 0, 1, 1], [], []>} : vector<32x4xf32>, vector<4x4xf32>, vector<32x4xf32> -> vector<32x4xf32>
    %233 = arith.addf %227, %232 : vector<32x4xf32>
    %cst_141 = arith.constant 0.000000e+00 : f32
    %234 = vector.broadcast %cst_141 : f32 to vector<32x4xf32>
    %235 = arith.maximumf %233, %234 : vector<32x4xf32>
    %c3_142 = arith.constant 3 : index
    %c0_143 = arith.constant 0 : index
    %c0_144 = arith.constant 0 : index
    %236 = vector.load %arg8[%c3_142, %c0_143, %c0_144] : memref<7x1x4xf32, #tpu.memory_space<vmem>>, vector<1x1x4xf32>
    %237 = vector.shape_cast %236 : vector<1x1x4xf32> to vector<1x4xf32>
    %c3_145 = arith.constant 3 : index
    %c0_146 = arith.constant 0 : index
    %c0_147 = arith.constant 0 : index
    %238 = vector.load %arg9[%c3_145, %c0_146, %c0_147] : memref<7x1x4xf32, #tpu.memory_space<vmem>>, vector<1x1x4xf32>
    %239 = vector.shape_cast %238 : vector<1x1x4xf32> to vector<1x4xf32>
    %cst_148 = arith.constant dense<0.000000e+00> : vector<4xf32>
    %240 = vector.multi_reduction <add>, %235, %cst_148 [0] : vector<32x4xf32> to vector<4xf32>
    %241 = vector.shape_cast %240 : vector<4xf32> to vector<1x4xf32>
    %cst_149 = arith.constant 3.200000e+01 : f32
    %242 = vector.broadcast %cst_149 : f32 to vector<1x4xf32>
    %243 = arith.divf %241, %242 : vector<1x4xf32>
    %244 = vector.broadcast %243 : vector<1x4xf32> to vector<32x4xf32>
    %245 = arith.subf %235, %244 : vector<32x4xf32>
    %246 = arith.mulf %245, %245 : vector<32x4xf32>
    %cst_150 = arith.constant dense<0.000000e+00> : vector<4xf32>
    %247 = vector.multi_reduction <add>, %246, %cst_150 [0] : vector<32x4xf32> to vector<4xf32>
    %248 = vector.shape_cast %247 : vector<4xf32> to vector<1x4xf32>
    %cst_151 = arith.constant 3.200000e+01 : f32
    %249 = vector.broadcast %cst_151 : f32 to vector<1x4xf32>
    %250 = arith.divf %248, %249 : vector<1x4xf32>
    %251 = vector.broadcast %243 : vector<1x4xf32> to vector<32x4xf32>
    %252 = arith.subf %235, %251 : vector<32x4xf32>
    %cst_152 = arith.constant 9.99999974E-6 : f32
    %253 = vector.broadcast %cst_152 : f32 to vector<1x4xf32>
    %254 = arith.addf %250, %253 : vector<1x4xf32>
    %255 = math.rsqrt %254 : vector<1x4xf32>
    %256 = vector.broadcast %255 : vector<1x4xf32> to vector<32x4xf32>
    %257 = arith.mulf %252, %256 : vector<32x4xf32>
    %258 = vector.broadcast %237 : vector<1x4xf32> to vector<32x4xf32>
    %259 = arith.mulf %257, %258 : vector<32x4xf32>
    %260 = vector.broadcast %239 : vector<1x4xf32> to vector<32x4xf32>
    %261 = arith.addf %259, %260 : vector<32x4xf32>
    %c0_153 = arith.constant 0 : index
    %c12 = arith.constant 12 : index
    %262 = vector.load %arg20[%c0_153, %c12] : memref<32x32xf32, #tpu.memory_space<vmem>>, vector<32x4xf32>
    tpu.vector_store %arg20[%c0_153, %c12], %261 {strides = array<i32>} : memref<32x32xf32, #tpu.memory_space<vmem>>, vector<32x4xf32>,
    %263 = vector.extract_strided_slice %32 {offsets = [0, 16], sizes = [32, 4], strides = [1, 1]} : vector<32x32xf32> to vector<32x4xf32>
    %264 = arith.addf %261, %263 : vector<32x4xf32>
    %265 = vector.shape_cast %264 : vector<32x4xf32> to vector<2x16x4xf32>
    %c0_154 = arith.constant 0 : index
    %c2_155 = arith.constant 2 : index
    %c0_156 = arith.constant 0 : index
    %266 = vector.load %arg19[%c0_154, %c2_155, %c0_156] : memref<2x20x4xf32, #tpu.memory_space<vmem>>, vector<2x16x4xf32>
    tpu.vector_store %arg19[%c0_154, %c2_155, %c0_156], %265 {strides = array<i32>} : memref<2x20x4xf32, #tpu.memory_space<vmem>>, vector<2x16x4xf32>,
    %c0_157 = arith.constant 0 : index
    %c0_158 = arith.constant 0 : index
    %c0_159 = arith.constant 0 : index
    %267 = vector.load %arg19[%c0_157, %c0_158, %c0_159] : memref<2x20x4xf32, #tpu.memory_space<vmem>>, vector<2x20x4xf32>
    %cst_160 = arith.constant 0.000000e+00 : f32
    %268 = vector.broadcast %cst_160 : f32 to vector<32x4xf32>
    %c4_161 = arith.constant 4 : index
    %c0_162 = arith.constant 0 : index
    %c0_163 = arith.constant 0 : index
    %269 = vector.load %arg7[%c4_161, %c0_162, %c0_163] : memref<7x1x4xf32, #tpu.memory_space<vmem>>, vector<1x1x4xf32>
    %270 = vector.shape_cast %269 : vector<1x1x4xf32> to vector<1x4xf32>
    %271 = vector.broadcast %270 : vector<1x4xf32> to vector<32x4xf32>
    %272 = arith.addf %268, %271 : vector<32x4xf32>
    %273 = vector.extract_strided_slice %267 {offsets = [0, 0, 0], sizes = [2, 16, 4], strides = [1, 1, 1]} : vector<2x20x4xf32> to vector<2x16x4xf32>
    %274 = vector.shape_cast %273 : vector<2x16x4xf32> to vector<32x4xf32>
    %c12_164 = arith.constant 12 : index
    %c0_165 = arith.constant 0 : index
    %c0_166 = arith.constant 0 : index
    %275 = vector.load %arg6[%c12_164, %c0_165, %c0_166] : memref<21x4x4xf32, #tpu.memory_space<vmem>>, vector<1x4x4xf32>
    %276 = vector.shape_cast %275 : vector<1x4x4xf32> to vector<4x4xf32>
    %cst_167 = arith.constant dense<0.000000e+00> : vector<32x4xf32>
    %277 = tpu.matmul %274, %276, %cst_167 {dimension_numbers = #tpu.dot_dimension_numbers<[1], [0], [0], [1], [0, 0, 1, 1], [], []>} : vector<32x4xf32>, vector<4x4xf32>, vector<32x4xf32> -> vector<32x4xf32>
    %278 = arith.addf %272, %277 : vector<32x4xf32>
    %279 = vector.extract_strided_slice %267 {offsets = [0, 2, 0], sizes = [2, 16, 4], strides = [1, 1, 1]} : vector<2x20x4xf32> to vector<2x16x4xf32>
    %280 = vector.shape_cast %279 : vector<2x16x4xf32> to vector<32x4xf32>
    %c13 = arith.constant 13 : index
    %c0_168 = arith.constant 0 : index
    %c0_169 = arith.constant 0 : index
    %281 = vector.load %arg6[%c13, %c0_168, %c0_169] : memref<21x4x4xf32, #tpu.memory_space<vmem>>, vector<1x4x4xf32>
    %282 = vector.shape_cast %281 : vector<1x4x4xf32> to vector<4x4xf32>
    %cst_170 = arith.constant dense<0.000000e+00> : vector<32x4xf32>
    %283 = tpu.matmul %280, %282, %cst_170 {dimension_numbers = #tpu.dot_dimension_numbers<[1], [0], [0], [1], [0, 0, 1, 1], [], []>} : vector<32x4xf32>, vector<4x4xf32>, vector<32x4xf32> -> vector<32x4xf32>
    %284 = arith.addf %278, %283 : vector<32x4xf32>
    %285 = vector.extract_strided_slice %267 {offsets = [0, 4, 0], sizes = [2, 16, 4], strides = [1, 1, 1]} : vector<2x20x4xf32> to vector<2x16x4xf32>
    %286 = vector.shape_cast %285 : vector<2x16x4xf32> to vector<32x4xf32>
    %c14 = arith.constant 14 : index
    %c0_171 = arith.constant 0 : index
    %c0_172 = arith.constant 0 : index
    %287 = vector.load %arg6[%c14, %c0_171, %c0_172] : memref<21x4x4xf32, #tpu.memory_space<vmem>>, vector<1x4x4xf32>
    %288 = vector.shape_cast %287 : vector<1x4x4xf32> to vector<4x4xf32>
    %cst_173 = arith.constant dense<0.000000e+00> : vector<32x4xf32>
    %289 = tpu.matmul %286, %288, %cst_173 {dimension_numbers = #tpu.dot_dimension_numbers<[1], [0], [0], [1], [0, 0, 1, 1], [], []>} : vector<32x4xf32>, vector<4x4xf32>, vector<32x4xf32> -> vector<32x4xf32>
    %290 = arith.addf %284, %289 : vector<32x4xf32>
    %cst_174 = arith.constant 0.000000e+00 : f32
    %291 = vector.broadcast %cst_174 : f32 to vector<32x4xf32>
    %292 = arith.maximumf %290, %291 : vector<32x4xf32>
    %c4_175 = arith.constant 4 : index
    %c0_176 = arith.constant 0 : index
    %c0_177 = arith.constant 0 : index
    %293 = vector.load %arg8[%c4_175, %c0_176, %c0_177] : memref<7x1x4xf32, #tpu.memory_space<vmem>>, vector<1x1x4xf32>
    %294 = vector.shape_cast %293 : vector<1x1x4xf32> to vector<1x4xf32>
    %c4_178 = arith.constant 4 : index
    %c0_179 = arith.constant 0 : index
    %c0_180 = arith.constant 0 : index
    %295 = vector.load %arg9[%c4_178, %c0_179, %c0_180] : memref<7x1x4xf32, #tpu.memory_space<vmem>>, vector<1x1x4xf32>
    %296 = vector.shape_cast %295 : vector<1x1x4xf32> to vector<1x4xf32>
    %cst_181 = arith.constant dense<0.000000e+00> : vector<4xf32>
    %297 = vector.multi_reduction <add>, %292, %cst_181 [0] : vector<32x4xf32> to vector<4xf32>
    %298 = vector.shape_cast %297 : vector<4xf32> to vector<1x4xf32>
    %cst_182 = arith.constant 3.200000e+01 : f32
    %299 = vector.broadcast %cst_182 : f32 to vector<1x4xf32>
    %300 = arith.divf %298, %299 : vector<1x4xf32>
    %301 = vector.broadcast %300 : vector<1x4xf32> to vector<32x4xf32>
    %302 = arith.subf %292, %301 : vector<32x4xf32>
    %303 = arith.mulf %302, %302 : vector<32x4xf32>
    %cst_183 = arith.constant dense<0.000000e+00> : vector<4xf32>
    %304 = vector.multi_reduction <add>, %303, %cst_183 [0] : vector<32x4xf32> to vector<4xf32>
    %305 = vector.shape_cast %304 : vector<4xf32> to vector<1x4xf32>
    %cst_184 = arith.constant 3.200000e+01 : f32
    %306 = vector.broadcast %cst_184 : f32 to vector<1x4xf32>
    %307 = arith.divf %305, %306 : vector<1x4xf32>
    %308 = vector.broadcast %300 : vector<1x4xf32> to vector<32x4xf32>
    %309 = arith.subf %292, %308 : vector<32x4xf32>
    %cst_185 = arith.constant 9.99999974E-6 : f32
    %310 = vector.broadcast %cst_185 : f32 to vector<1x4xf32>
    %311 = arith.addf %307, %310 : vector<1x4xf32>
    %312 = math.rsqrt %311 : vector<1x4xf32>
    %313 = vector.broadcast %312 : vector<1x4xf32> to vector<32x4xf32>
    %314 = arith.mulf %309, %313 : vector<32x4xf32>
    %315 = vector.broadcast %294 : vector<1x4xf32> to vector<32x4xf32>
    %316 = arith.mulf %314, %315 : vector<32x4xf32>
    %317 = vector.broadcast %296 : vector<1x4xf32> to vector<32x4xf32>
    %318 = arith.addf %316, %317 : vector<32x4xf32>
    %c0_186 = arith.constant 0 : index
    %c16 = arith.constant 16 : index
    %319 = vector.load %arg20[%c0_186, %c16] : memref<32x32xf32, #tpu.memory_space<vmem>>, vector<32x4xf32>
    tpu.vector_store %arg20[%c0_186, %c16], %318 {strides = array<i32>} : memref<32x32xf32, #tpu.memory_space<vmem>>, vector<32x4xf32>,
    %320 = vector.extract_strided_slice %32 {offsets = [0, 20], sizes = [32, 4], strides = [1, 1]} : vector<32x32xf32> to vector<32x4xf32>
    %321 = arith.addf %318, %320 : vector<32x4xf32>
    %322 = vector.shape_cast %321 : vector<32x4xf32> to vector<2x16x4xf32>
    %c0_187 = arith.constant 0 : index
    %c2_188 = arith.constant 2 : index
    %c0_189 = arith.constant 0 : index
    %323 = vector.load %arg19[%c0_187, %c2_188, %c0_189] : memref<2x20x4xf32, #tpu.memory_space<vmem>>, vector<2x16x4xf32>
    tpu.vector_store %arg19[%c0_187, %c2_188, %c0_189], %322 {strides = array<i32>} : memref<2x20x4xf32, #tpu.memory_space<vmem>>, vector<2x16x4xf32>,
    %c0_190 = arith.constant 0 : index
    %c0_191 = arith.constant 0 : index
    %c0_192 = arith.constant 0 : index
    %324 = vector.load %arg19[%c0_190, %c0_191, %c0_192] : memref<2x20x4xf32, #tpu.memory_space<vmem>>, vector<2x20x4xf32>
    %cst_193 = arith.constant 0.000000e+00 : f32
    %325 = vector.broadcast %cst_193 : f32 to vector<32x4xf32>
    %c5_194 = arith.constant 5 : index
    %c0_195 = arith.constant 0 : index
    %c0_196 = arith.constant 0 : index
    %326 = vector.load %arg7[%c5_194, %c0_195, %c0_196] : memref<7x1x4xf32, #tpu.memory_space<vmem>>, vector<1x1x4xf32>
    %327 = vector.shape_cast %326 : vector<1x1x4xf32> to vector<1x4xf32>
    %328 = vector.broadcast %327 : vector<1x4xf32> to vector<32x4xf32>
    %329 = arith.addf %325, %328 : vector<32x4xf32>
    %330 = vector.extract_strided_slice %324 {offsets = [0, 0, 0], sizes = [2, 16, 4], strides = [1, 1, 1]} : vector<2x20x4xf32> to vector<2x16x4xf32>
    %331 = vector.shape_cast %330 : vector<2x16x4xf32> to vector<32x4xf32>
    %c15 = arith.constant 15 : index
    %c0_197 = arith.constant 0 : index
    %c0_198 = arith.constant 0 : index
    %332 = vector.load %arg6[%c15, %c0_197, %c0_198] : memref<21x4x4xf32, #tpu.memory_space<vmem>>, vector<1x4x4xf32>
    %333 = vector.shape_cast %332 : vector<1x4x4xf32> to vector<4x4xf32>
    %cst_199 = arith.constant dense<0.000000e+00> : vector<32x4xf32>
    %334 = tpu.matmul %331, %333, %cst_199 {dimension_numbers = #tpu.dot_dimension_numbers<[1], [0], [0], [1], [0, 0, 1, 1], [], []>} : vector<32x4xf32>, vector<4x4xf32>, vector<32x4xf32> -> vector<32x4xf32>
    %335 = arith.addf %329, %334 : vector<32x4xf32>
    %336 = vector.extract_strided_slice %324 {offsets = [0, 2, 0], sizes = [2, 16, 4], strides = [1, 1, 1]} : vector<2x20x4xf32> to vector<2x16x4xf32>
    %337 = vector.shape_cast %336 : vector<2x16x4xf32> to vector<32x4xf32>
    %c16_200 = arith.constant 16 : index
    %c0_201 = arith.constant 0 : index
    %c0_202 = arith.constant 0 : index
    %338 = vector.load %arg6[%c16_200, %c0_201, %c0_202] : memref<21x4x4xf32, #tpu.memory_space<vmem>>, vector<1x4x4xf32>
    %339 = vector.shape_cast %338 : vector<1x4x4xf32> to vector<4x4xf32>
    %cst_203 = arith.constant dense<0.000000e+00> : vector<32x4xf32>
    %340 = tpu.matmul %337, %339, %cst_203 {dimension_numbers = #tpu.dot_dimension_numbers<[1], [0], [0], [1], [0, 0, 1, 1], [], []>} : vector<32x4xf32>, vector<4x4xf32>, vector<32x4xf32> -> vector<32x4xf32>
    %341 = arith.addf %335, %340 : vector<32x4xf32>
    %342 = vector.extract_strided_slice %324 {offsets = [0, 4, 0], sizes = [2, 16, 4], strides = [1, 1, 1]} : vector<2x20x4xf32> to vector<2x16x4xf32>
    %343 = vector.shape_cast %342 : vector<2x16x4xf32> to vector<32x4xf32>
    %c17 = arith.constant 17 : index
    %c0_204 = arith.constant 0 : index
    %c0_205 = arith.constant 0 : index
    %344 = vector.load %arg6[%c17, %c0_204, %c0_205] : memref<21x4x4xf32, #tpu.memory_space<vmem>>, vector<1x4x4xf32>
    %345 = vector.shape_cast %344 : vector<1x4x4xf32> to vector<4x4xf32>
    %cst_206 = arith.constant dense<0.000000e+00> : vector<32x4xf32>
    %346 = tpu.matmul %343, %345, %cst_206 {dimension_numbers = #tpu.dot_dimension_numbers<[1], [0], [0], [1], [0, 0, 1, 1], [], []>} : vector<32x4xf32>, vector<4x4xf32>, vector<32x4xf32> -> vector<32x4xf32>
    %347 = arith.addf %341, %346 : vector<32x4xf32>
    %cst_207 = arith.constant 0.000000e+00 : f32
    %348 = vector.broadcast %cst_207 : f32 to vector<32x4xf32>
    %349 = arith.maximumf %347, %348 : vector<32x4xf32>
    %c5_208 = arith.constant 5 : index
    %c0_209 = arith.constant 0 : index
    %c0_210 = arith.constant 0 : index
    %350 = vector.load %arg8[%c5_208, %c0_209, %c0_210] : memref<7x1x4xf32, #tpu.memory_space<vmem>>, vector<1x1x4xf32>
    %351 = vector.shape_cast %350 : vector<1x1x4xf32> to vector<1x4xf32>
    %c5_211 = arith.constant 5 : index
    %c0_212 = arith.constant 0 : index
    %c0_213 = arith.constant 0 : index
    %352 = vector.load %arg9[%c5_211, %c0_212, %c0_213] : memref<7x1x4xf32, #tpu.memory_space<vmem>>, vector<1x1x4xf32>
    %353 = vector.shape_cast %352 : vector<1x1x4xf32> to vector<1x4xf32>
    %cst_214 = arith.constant dense<0.000000e+00> : vector<4xf32>
    %354 = vector.multi_reduction <add>, %349, %cst_214 [0] : vector<32x4xf32> to vector<4xf32>
    %355 = vector.shape_cast %354 : vector<4xf32> to vector<1x4xf32>
    %cst_215 = arith.constant 3.200000e+01 : f32
    %356 = vector.broadcast %cst_215 : f32 to vector<1x4xf32>
    %357 = arith.divf %355, %356 : vector<1x4xf32>
    %358 = vector.broadcast %357 : vector<1x4xf32> to vector<32x4xf32>
    %359 = arith.subf %349, %358 : vector<32x4xf32>
    %360 = arith.mulf %359, %359 : vector<32x4xf32>
    %cst_216 = arith.constant dense<0.000000e+00> : vector<4xf32>
    %361 = vector.multi_reduction <add>, %360, %cst_216 [0] : vector<32x4xf32> to vector<4xf32>
    %362 = vector.shape_cast %361 : vector<4xf32> to vector<1x4xf32>
    %cst_217 = arith.constant 3.200000e+01 : f32
    %363 = vector.broadcast %cst_217 : f32 to vector<1x4xf32>
    %364 = arith.divf %362, %363 : vector<1x4xf32>
    %365 = vector.broadcast %357 : vector<1x4xf32> to vector<32x4xf32>
    %366 = arith.subf %349, %365 : vector<32x4xf32>
    %cst_218 = arith.constant 9.99999974E-6 : f32
    %367 = vector.broadcast %cst_218 : f32 to vector<1x4xf32>
    %368 = arith.addf %364, %367 : vector<1x4xf32>
    %369 = math.rsqrt %368 : vector<1x4xf32>
    %370 = vector.broadcast %369 : vector<1x4xf32> to vector<32x4xf32>
    %371 = arith.mulf %366, %370 : vector<32x4xf32>
    %372 = vector.broadcast %351 : vector<1x4xf32> to vector<32x4xf32>
    %373 = arith.mulf %371, %372 : vector<32x4xf32>
    %374 = vector.broadcast %353 : vector<1x4xf32> to vector<32x4xf32>
    %375 = arith.addf %373, %374 : vector<32x4xf32>
    %c0_219 = arith.constant 0 : index
    %c20 = arith.constant 20 : index
    %376 = vector.load %arg20[%c0_219, %c20] : memref<32x32xf32, #tpu.memory_space<vmem>>, vector<32x4xf32>
    tpu.vector_store %arg20[%c0_219, %c20], %375 {strides = array<i32>} : memref<32x32xf32, #tpu.memory_space<vmem>>, vector<32x4xf32>,
    %377 = vector.extract_strided_slice %32 {offsets = [0, 24], sizes = [32, 4], strides = [1, 1]} : vector<32x32xf32> to vector<32x4xf32>
    %378 = arith.addf %375, %377 : vector<32x4xf32>
    %379 = vector.shape_cast %378 : vector<32x4xf32> to vector<2x16x4xf32>
    %c0_220 = arith.constant 0 : index
    %c2_221 = arith.constant 2 : index
    %c0_222 = arith.constant 0 : index
    %380 = vector.load %arg19[%c0_220, %c2_221, %c0_222] : memref<2x20x4xf32, #tpu.memory_space<vmem>>, vector<2x16x4xf32>
    tpu.vector_store %arg19[%c0_220, %c2_221, %c0_222], %379 {strides = array<i32>} : memref<2x20x4xf32, #tpu.memory_space<vmem>>, vector<2x16x4xf32>,
    %c0_223 = arith.constant 0 : index
    %c0_224 = arith.constant 0 : index
    %c0_225 = arith.constant 0 : index
    %381 = vector.load %arg19[%c0_223, %c0_224, %c0_225] : memref<2x20x4xf32, #tpu.memory_space<vmem>>, vector<2x20x4xf32>
    %cst_226 = arith.constant 0.000000e+00 : f32
    %382 = vector.broadcast %cst_226 : f32 to vector<32x4xf32>
    %c6_227 = arith.constant 6 : index
    %c0_228 = arith.constant 0 : index
    %c0_229 = arith.constant 0 : index
    %383 = vector.load %arg7[%c6_227, %c0_228, %c0_229] : memref<7x1x4xf32, #tpu.memory_space<vmem>>, vector<1x1x4xf32>
    %384 = vector.shape_cast %383 : vector<1x1x4xf32> to vector<1x4xf32>
    %385 = vector.broadcast %384 : vector<1x4xf32> to vector<32x4xf32>
    %386 = arith.addf %382, %385 : vector<32x4xf32>
    %387 = vector.extract_strided_slice %381 {offsets = [0, 0, 0], sizes = [2, 16, 4], strides = [1, 1, 1]} : vector<2x20x4xf32> to vector<2x16x4xf32>
    %388 = vector.shape_cast %387 : vector<2x16x4xf32> to vector<32x4xf32>
    %c18 = arith.constant 18 : index
    %c0_230 = arith.constant 0 : index
    %c0_231 = arith.constant 0 : index
    %389 = vector.load %arg6[%c18, %c0_230, %c0_231] : memref<21x4x4xf32, #tpu.memory_space<vmem>>, vector<1x4x4xf32>
    %390 = vector.shape_cast %389 : vector<1x4x4xf32> to vector<4x4xf32>
    %cst_232 = arith.constant dense<0.000000e+00> : vector<32x4xf32>
    %391 = tpu.matmul %388, %390, %cst_232 {dimension_numbers = #tpu.dot_dimension_numbers<[1], [0], [0], [1], [0, 0, 1, 1], [], []>} : vector<32x4xf32>, vector<4x4xf32>, vector<32x4xf32> -> vector<32x4xf32>
    %392 = arith.addf %386, %391 : vector<32x4xf32>
    %393 = vector.extract_strided_slice %381 {offsets = [0, 2, 0], sizes = [2, 16, 4], strides = [1, 1, 1]} : vector<2x20x4xf32> to vector<2x16x4xf32>
    %394 = vector.shape_cast %393 : vector<2x16x4xf32> to vector<32x4xf32>
    %c19 = arith.constant 19 : index
    %c0_233 = arith.constant 0 : index
    %c0_234 = arith.constant 0 : index
    %395 = vector.load %arg6[%c19, %c0_233, %c0_234] : memref<21x4x4xf32, #tpu.memory_space<vmem>>, vector<1x4x4xf32>
    %396 = vector.shape_cast %395 : vector<1x4x4xf32> to vector<4x4xf32>
    %cst_235 = arith.constant dense<0.000000e+00> : vector<32x4xf32>
    %397 = tpu.matmul %394, %396, %cst_235 {dimension_numbers = #tpu.dot_dimension_numbers<[1], [0], [0], [1], [0, 0, 1, 1], [], []>} : vector<32x4xf32>, vector<4x4xf32>, vector<32x4xf32> -> vector<32x4xf32>
    %398 = arith.addf %392, %397 : vector<32x4xf32>
    %399 = vector.extract_strided_slice %381 {offsets = [0, 4, 0], sizes = [2, 16, 4], strides = [1, 1, 1]} : vector<2x20x4xf32> to vector<2x16x4xf32>
    %400 = vector.shape_cast %399 : vector<2x16x4xf32> to vector<32x4xf32>
    %c20_236 = arith.constant 20 : index
    %c0_237 = arith.constant 0 : index
    %c0_238 = arith.constant 0 : index
    %401 = vector.load %arg6[%c20_236, %c0_237, %c0_238] : memref<21x4x4xf32, #tpu.memory_space<vmem>>, vector<1x4x4xf32>
    %402 = vector.shape_cast %401 : vector<1x4x4xf32> to vector<4x4xf32>
    %cst_239 = arith.constant dense<0.000000e+00> : vector<32x4xf32>
    %403 = tpu.matmul %400, %402, %cst_239 {dimension_numbers = #tpu.dot_dimension_numbers<[1], [0], [0], [1], [0, 0, 1, 1], [], []>} : vector<32x4xf32>, vector<4x4xf32>, vector<32x4xf32> -> vector<32x4xf32>
    %404 = arith.addf %398, %403 : vector<32x4xf32>
    %cst_240 = arith.constant 0.000000e+00 : f32
    %405 = vector.broadcast %cst_240 : f32 to vector<32x4xf32>
    %406 = arith.maximumf %404, %405 : vector<32x4xf32>
    %c6_241 = arith.constant 6 : index
    %c0_242 = arith.constant 0 : index
    %c0_243 = arith.constant 0 : index
    %407 = vector.load %arg8[%c6_241, %c0_242, %c0_243] : memref<7x1x4xf32, #tpu.memory_space<vmem>>, vector<1x1x4xf32>
    %408 = vector.shape_cast %407 : vector<1x1x4xf32> to vector<1x4xf32>
    %c6_244 = arith.constant 6 : index
    %c0_245 = arith.constant 0 : index
    %c0_246 = arith.constant 0 : index
    %409 = vector.load %arg9[%c6_244, %c0_245, %c0_246] : memref<7x1x4xf32, #tpu.memory_space<vmem>>, vector<1x1x4xf32>
    %410 = vector.shape_cast %409 : vector<1x1x4xf32> to vector<1x4xf32>
    %cst_247 = arith.constant dense<0.000000e+00> : vector<4xf32>
    %411 = vector.multi_reduction <add>, %406, %cst_247 [0] : vector<32x4xf32> to vector<4xf32>
    %412 = vector.shape_cast %411 : vector<4xf32> to vector<1x4xf32>
    %cst_248 = arith.constant 3.200000e+01 : f32
    %413 = vector.broadcast %cst_248 : f32 to vector<1x4xf32>
    %414 = arith.divf %412, %413 : vector<1x4xf32>
    %415 = vector.broadcast %414 : vector<1x4xf32> to vector<32x4xf32>
    %416 = arith.subf %406, %415 : vector<32x4xf32>
    %417 = arith.mulf %416, %416 : vector<32x4xf32>
    %cst_249 = arith.constant dense<0.000000e+00> : vector<4xf32>
    %418 = vector.multi_reduction <add>, %417, %cst_249 [0] : vector<32x4xf32> to vector<4xf32>
    %419 = vector.shape_cast %418 : vector<4xf32> to vector<1x4xf32>
    %cst_250 = arith.constant 3.200000e+01 : f32
    %420 = vector.broadcast %cst_250 : f32 to vector<1x4xf32>
    %421 = arith.divf %419, %420 : vector<1x4xf32>
    %422 = vector.broadcast %414 : vector<1x4xf32> to vector<32x4xf32>
    %423 = arith.subf %406, %422 : vector<32x4xf32>
    %cst_251 = arith.constant 9.99999974E-6 : f32
    %424 = vector.broadcast %cst_251 : f32 to vector<1x4xf32>
    %425 = arith.addf %421, %424 : vector<1x4xf32>
    %426 = math.rsqrt %425 : vector<1x4xf32>
    %427 = vector.broadcast %426 : vector<1x4xf32> to vector<32x4xf32>
    %428 = arith.mulf %423, %427 : vector<32x4xf32>
    %429 = vector.broadcast %408 : vector<1x4xf32> to vector<32x4xf32>
    %430 = arith.mulf %428, %429 : vector<32x4xf32>
    %431 = vector.broadcast %410 : vector<1x4xf32> to vector<32x4xf32>
    %432 = arith.addf %430, %431 : vector<32x4xf32>
    %c0_252 = arith.constant 0 : index
    %c24 = arith.constant 24 : index
    %433 = vector.load %arg20[%c0_252, %c24] : memref<32x32xf32, #tpu.memory_space<vmem>>, vector<32x4xf32>
    tpu.vector_store %arg20[%c0_252, %c24], %432 {strides = array<i32>} : memref<32x32xf32, #tpu.memory_space<vmem>>, vector<32x4xf32>,
    %c0_253 = arith.constant 0 : index
    %c0_254 = arith.constant 0 : index
    %434 = vector.load %arg20[%c0_253, %c0_254] : memref<32x32xf32, #tpu.memory_space<vmem>>, vector<32x32xf32>
    %c0_255 = arith.constant 0 : index
    %c0_256 = arith.constant 0 : index
    %435 = vector.load %arg10[%c0_255, %c0_256] : memref<32x32xf32, #tpu.memory_space<vmem>>, vector<32x32xf32>
    %cst_257 = arith.constant dense<0.000000e+00> : vector<32x32xf32>
    %436 = tpu.matmul %434, %435, %cst_257 {dimension_numbers = #tpu.dot_dimension_numbers<[1], [0], [0], [1], [0, 0, 1, 1], [], []>} : vector<32x32xf32>, vector<32x32xf32>, vector<32x32xf32> -> vector<32x32xf32>
    %c0_258 = arith.constant 0 : index
    %c0_259 = arith.constant 0 : index
    %437 = vector.load %arg11[%c0_258, %c0_259] : memref<1x32xf32, #tpu.memory_space<vmem>>, vector<1x32xf32>
    %438 = vector.broadcast %437 : vector<1x32xf32> to vector<32x32xf32>
    %439 = arith.addf %436, %438 : vector<32x32xf32>
    %cst_260 = arith.constant 0.000000e+00 : f32
    %440 = vector.broadcast %cst_260 : f32 to vector<32x32xf32>
    %441 = arith.maximumf %439, %440 : vector<32x32xf32>
    %c0_261 = arith.constant 0 : index
    %c0_262 = arith.constant 0 : index
    %442 = vector.load %arg12[%c0_261, %c0_262] : memref<1x32xf32, #tpu.memory_space<vmem>>, vector<1x32xf32>
    %c0_263 = arith.constant 0 : index
    %c0_264 = arith.constant 0 : index
    %443 = vector.load %arg13[%c0_263, %c0_264] : memref<1x32xf32, #tpu.memory_space<vmem>>, vector<1x32xf32>
    %cst_265 = arith.constant dense<0.000000e+00> : vector<32xf32>
    %444 = vector.multi_reduction <add>, %441, %cst_265 [0] : vector<32x32xf32> to vector<32xf32>
    %445 = vector.shape_cast %444 : vector<32xf32> to vector<1x32xf32>
    %cst_266 = arith.constant 3.200000e+01 : f32
    %446 = vector.broadcast %cst_266 : f32 to vector<1x32xf32>
    %447 = arith.divf %445, %446 : vector<1x32xf32>
    %448 = vector.broadcast %447 : vector<1x32xf32> to vector<32x32xf32>
    %449 = arith.subf %441, %448 : vector<32x32xf32>
    %450 = arith.mulf %449, %449 : vector<32x32xf32>
    %cst_267 = arith.constant dense<0.000000e+00> : vector<32xf32>
    %451 = vector.multi_reduction <add>, %450, %cst_267 [0] : vector<32x32xf32> to vector<32xf32>
    %452 = vector.shape_cast %451 : vector<32xf32> to vector<1x32xf32>
    %cst_268 = arith.constant 3.200000e+01 : f32
    %453 = vector.broadcast %cst_268 : f32 to vector<1x32xf32>
    %454 = arith.divf %452, %453 : vector<1x32xf32>
    %455 = vector.broadcast %447 : vector<1x32xf32> to vector<32x32xf32>
    %456 = arith.subf %441, %455 : vector<32x32xf32>
    %cst_269 = arith.constant 9.99999974E-6 : f32
    %457 = vector.broadcast %cst_269 : f32 to vector<1x32xf32>
    %458 = arith.addf %454, %457 : vector<1x32xf32>
    %459 = math.rsqrt %458 : vector<1x32xf32>
    %460 = vector.broadcast %459 : vector<1x32xf32> to vector<32x32xf32>
    %461 = arith.mulf %456, %460 : vector<32x32xf32>
    %462 = vector.broadcast %442 : vector<1x32xf32> to vector<32x32xf32>
    %463 = arith.mulf %461, %462 : vector<32x32xf32>
    %464 = vector.broadcast %443 : vector<1x32xf32> to vector<32x32xf32>
    %465 = arith.addf %463, %464 : vector<32x32xf32>
    %466 = vector.shape_cast %465 : vector<32x32xf32> to vector<2x16x32xf32>
    %cst_270 = arith.constant dense<0.000000e+00> : vector<2x32xf32>
    %467 = vector.multi_reduction <add>, %466, %cst_270 [1] : vector<2x16x32xf32> to vector<2x32xf32>
    %cst_271 = arith.constant 1.600000e+01 : f32
    %468 = vector.broadcast %cst_271 : f32 to vector<2x32xf32>
    %469 = arith.divf %467, %468 : vector<2x32xf32>
    %c0_272 = arith.constant 0 : index
    %c0_273 = arith.constant 0 : index
    %470 = vector.load %arg14[%c0_272, %c0_273] : memref<32x128xf32, #tpu.memory_space<vmem>>, vector<32x128xf32>
    %cst_274 = arith.constant dense<0.000000e+00> : vector<2x128xf32>
    %471 = tpu.matmul %469, %470, %cst_274 {dimension_numbers = #tpu.dot_dimension_numbers<[1], [0], [0], [1], [0, 0, 1, 1], [], []>} : vector<2x32xf32>, vector<32x128xf32>, vector<2x128xf32> -> vector<2x128xf32>
    %c0_275 = arith.constant 0 : index
    %c0_276 = arith.constant 0 : index
    %472 = vector.load %arg15[%c0_275, %c0_276] : memref<1x128xf32, #tpu.memory_space<vmem>>, vector<1x128xf32>
    %473 = vector.broadcast %472 : vector<1x128xf32> to vector<2x128xf32>
    %474 = arith.addf %471, %473 : vector<2x128xf32>
    %cst_277 = arith.constant 0.000000e+00 : f32
    %475 = vector.broadcast %cst_277 : f32 to vector<2x128xf32>
    %476 = arith.maximumf %474, %475 : vector<2x128xf32>
    %c0_278 = arith.constant 0 : index
    %c0_279 = arith.constant 0 : index
    %477 = vector.load %arg16[%c0_278, %c0_279] : memref<128x32xf32, #tpu.memory_space<vmem>>, vector<128x32xf32>
    %cst_280 = arith.constant dense<0.000000e+00> : vector<2x32xf32>
    %478 = tpu.matmul %476, %477, %cst_280 {dimension_numbers = #tpu.dot_dimension_numbers<[1], [0], [0], [1], [0, 0, 1, 1], [], []>} : vector<2x128xf32>, vector<128x32xf32>, vector<2x32xf32> -> vector<2x32xf32>
    %c0_281 = arith.constant 0 : index
    %c0_282 = arith.constant 0 : index
    %479 = vector.load %arg17[%c0_281, %c0_282] : memref<1x32xf32, #tpu.memory_space<vmem>>, vector<1x32xf32>
    %480 = vector.broadcast %479 : vector<1x32xf32> to vector<2x32xf32>
    %481 = arith.addf %478, %480 : vector<2x32xf32>
    %cst_283 = arith.constant 0.000000e+00 : f32
    %482 = vector.broadcast %cst_283 : f32 to vector<2x32xf32>
    %483 = arith.subf %482, %481 : vector<2x32xf32>
    %484 = math.exp %483 : vector<2x32xf32>
    %cst_284 = arith.constant 1.000000e+00 : f32
    %485 = vector.broadcast %cst_284 : f32 to vector<2x32xf32>
    %486 = arith.addf %485, %484 : vector<2x32xf32>
    %487 = tpu.reciprocal %486 : vector<2x32xf32> -> vector<2x32xf32>
    %488 = vector.shape_cast %487 : vector<2x32xf32> to vector<2x1x32xf32>
    %489 = vector.broadcast %488 : vector<2x1x32xf32> to vector<2x16x32xf32>
    %490 = arith.mulf %466, %489 : vector<2x16x32xf32>
    %491 = arith.addf %490, %0 : vector<2x16x32xf32>
    %c0_285 = arith.constant 0 : index
    %c0_286 = arith.constant 0 : index
    %c0_287 = arith.constant 0 : index
    %492 = vector.load %arg18[%c0_285, %c0_286, %c0_287] : memref<2x16x32xf32, #tpu.memory_space<vmem>>, vector<2x16x32xf32>
    tpu.vector_store %arg18[%c0_285, %c0_286, %c0_287], %491 {strides = array<i32>} : memref<2x16x32xf32, #tpu.memory_space<vmem>>, vector<2x16x32xf32>,
    return
  }
  func.func @transform_0(%arg0: i32) -> (i32, i32, i32) {
    %c0_i32 = arith.constant 0 : i32
    %c0_i32_0 = arith.constant 0 : i32
    %c0_i32_1 = arith.constant 0 : i32
    %c0_i32_2 = arith.constant 0 : i32
    return %c0_i32, %c0_i32_0, %c0_i32_1 : i32, i32, i32
  }
  func.func @transform_1(%arg0: i32) -> (i32, i32) {
    %c0_i32 = arith.constant 0 : i32
    %c0_i32_0 = arith.constant 0 : i32
    %c0_i32_1 = arith.constant 0 : i32
    return %c0_i32, %c0_i32_0 : i32, i32
  }
  func.func @transform_2(%arg0: i32) -> (i32, i32) {
    %c0_i32 = arith.constant 0 : i32
    %c0_i32_0 = arith.constant 0 : i32
    %c0_i32_1 = arith.constant 0 : i32
    return %c0_i32, %c0_i32_0 : i32, i32
  }
  func.func @transform_3(%arg0: i32) -> (i32, i32) {
    %c0_i32 = arith.constant 0 : i32
    %c0_i32_0 = arith.constant 0 : i32
    %c0_i32_1 = arith.constant 0 : i32
    return %c0_i32, %c0_i32_0 : i32, i32
  }
  func.func @transform_4(%arg0: i32) -> (i32, i32) {
    %c0_i32 = arith.constant 0 : i32
    %c0_i32_0 = arith.constant 0 : i32
    %c0_i32_1 = arith.constant 0 : i32
    return %c0_i32, %c0_i32_0 : i32, i32
  }
  func.func @transform_5(%arg0: i32) -> (i32, i32, i32) {
    %c0_i32 = arith.constant 0 : i32
    %c0_i32_0 = arith.constant 0 : i32
    %c0_i32_1 = arith.constant 0 : i32
    %c0_i32_2 = arith.constant 0 : i32
    return %c0_i32, %c0_i32_0, %c0_i32_1 : i32, i32, i32
  }
  func.func @transform_6(%arg0: i32) -> (i32, i32, i32) {
    %c0_i32 = arith.constant 0 : i32
    %c0_i32_0 = arith.constant 0 : i32
    %c0_i32_1 = arith.constant 0 : i32
    %c0_i32_2 = arith.constant 0 : i32
    return %c0_i32, %c0_i32_0, %c0_i32_1 : i32, i32, i32
  }
  func.func @transform_7(%arg0: i32) -> (i32, i32, i32) {
    %c0_i32 = arith.constant 0 : i32
    %c0_i32_0 = arith.constant 0 : i32
    %c0_i32_1 = arith.constant 0 : i32
    %c0_i32_2 = arith.constant 0 : i32
    return %c0_i32, %c0_i32_0, %c0_i32_1 : i32, i32, i32
  }
  func.func @transform_8(%arg0: i32) -> (i32, i32, i32) {
    %c0_i32 = arith.constant 0 : i32
    %c0_i32_0 = arith.constant 0 : i32
    %c0_i32_1 = arith.constant 0 : i32
    %c0_i32_2 = arith.constant 0 : i32
    return %c0_i32, %c0_i32_0, %c0_i32_1 : i32, i32, i32
  }
  func.func @transform_9(%arg0: i32) -> (i32, i32) {
    %c0_i32 = arith.constant 0 : i32
    %c0_i32_0 = arith.constant 0 : i32
    %c0_i32_1 = arith.constant 0 : i32
    return %c0_i32, %c0_i32_0 : i32, i32
  }
  func.func @transform_10(%arg0: i32) -> (i32, i32) {
    %c0_i32 = arith.constant 0 : i32
    %c0_i32_0 = arith.constant 0 : i32
    %c0_i32_1 = arith.constant 0 : i32
    return %c0_i32, %c0_i32_0 : i32, i32
  }
  func.func @transform_11(%arg0: i32) -> (i32, i32) {
    %c0_i32 = arith.constant 0 : i32
    %c0_i32_0 = arith.constant 0 : i32
    %c0_i32_1 = arith.constant 0 : i32
    return %c0_i32, %c0_i32_0 : i32, i32
  }
  func.func @transform_12(%arg0: i32) -> (i32, i32) {
    %c0_i32 = arith.constant 0 : i32
    %c0_i32_0 = arith.constant 0 : i32
    %c0_i32_1 = arith.constant 0 : i32
    return %c0_i32, %c0_i32_0 : i32, i32
  }
  func.func @transform_13(%arg0: i32) -> (i32, i32) {
    %c0_i32 = arith.constant 0 : i32
    %c0_i32_0 = arith.constant 0 : i32
    %c0_i32_1 = arith.constant 0 : i32
    return %c0_i32, %c0_i32_0 : i32, i32
  }
  func.func @transform_14(%arg0: i32) -> (i32, i32) {
    %c0_i32 = arith.constant 0 : i32
    %c0_i32_0 = arith.constant 0 : i32
    %c0_i32_1 = arith.constant 0 : i32
    return %c0_i32, %c0_i32_0 : i32, i32
  }
  func.func @transform_15(%arg0: i32) -> (i32, i32) {
    %c0_i32 = arith.constant 0 : i32
    %c0_i32_0 = arith.constant 0 : i32
    %c0_i32_1 = arith.constant 0 : i32
    return %c0_i32, %c0_i32_0 : i32, i32
  }
  func.func @transform_16(%arg0: i32) -> (i32, i32) {
    %c0_i32 = arith.constant 0 : i32
    %c0_i32_0 = arith.constant 0 : i32
    %c0_i32_1 = arith.constant 0 : i32
    return %c0_i32, %c0_i32_0 : i32, i32
  }
  func.func @transform_17(%arg0: i32) -> (i32, i32, i32) {
    %c0_i32 = arith.constant 0 : i32
    %c0_i32_0 = arith.constant 0 : i32
    %c0_i32_1 = arith.constant 0 : i32
    %c0_i32_2 = arith.constant 0 : i32
    return %c0_i32, %c0_i32_0, %c0_i32_1 : i32, i32, i32
  }
}

</mosaic_0001>

<bundles_post_ra>
// kernel: bottle2neck_forward.1
= control target key start
LH: loop header
LB: loop body
LE: loop exit
PB: predicated region body
PF: predicated region fallthrough
CT: control target
= control target key end

     0   :  { %s5486_s0 = inlined_call_operand.vmem [shape: f32[2,16,32], index: 0, kind: input, shape index: {}]   ;;  %s5487_s1 = inlined_call_operand.vmem [shape: f32[32,32], index: 1, kind: input, shape index: {}]   ;;  %s5488_s2 = inlined_call_operand.vmem [shape: f32[1,32], index: 2, kind: input, shape index: {}]   ;;  %s5489_s3 = inlined_call_operand.vmem [shape: f32[1,32], index: 3, kind: input, shape index: {}]   ;;  %s5490_s4 = inlined_call_operand.vmem [shape: f32[1,32], index: 4, kind: input, shape index: {}]   ;;  %s5491_s5 = inlined_call_operand.vmem [shape: f32[21,4,4], index: 5, kind: input, shape index: {}]   ;;  %s5492_s6 = inlined_call_operand.vmem [shape: f32[7,1,4], index: 6, kind: input, shape index: {}]   ;;  %s5493_s7 = inlined_call_operand.vmem [shape: f32[7,1,4], index: 7, kind: input, shape index: {}]   ;;  %s5494_s8 = inlined_call_operand.vmem [shape: f32[7,1,4], index: 8, kind: input, shape index: {}]   ;;  %s5495_s9 = inlined_call_operand.vmem [shape: f32[32,32], index: 9, kind: input, shape index: {}]   ;;  %s5496_s10 = inlined_call_operand.vmem [shape: f32[1,32], index: 10, kind: input, shape index: {}]   ;;  %s5497_s11 = inlined_call_operand.vmem [shape: f32[1,32], index: 11, kind: input, shape index: {}]   ;;  %s5498_s12 = inlined_call_operand.vmem [shape: f32[1,32], index: 12, kind: input, shape index: {}]   ;;  %s5499_s13 = inlined_call_operand.vmem [shape: f32[32,128], index: 13, kind: input, shape index: {}]   ;;  %s5500_s14 = inlined_call_operand.vmem [shape: f32[1,128], index: 14, kind: input, shape index: {}]   ;;  %s5501_s15 = inlined_call_operand.vmem [shape: f32[128,32], index: 15, kind: input, shape index: {}]   ;;  %s5502_s16 = inlined_call_operand.vmem [shape: f32[1,32], index: 16, kind: input, shape index: {}]   ;;  %s5503_s17 = inlined_call_operand.hbm [shape: f32[2,16,32], index: 17, kind: output, shape index: {}]  }
   0x1   :  { %5506 = sst [smem:[#allocation7_spill]] %s5486_s0 }
   0x2   :  { %5507 = sst [smem:[#allocation8_spill]] %s5487_s1 }
   0x3   :  { %s5508_s26 = sld [smem:[#allocation8_spill]]  ;;  %vm72_vm0 = vcmask 261120   ;;  %s5509_s20 = sld [smem:[#allocation7_spill]] }
   0x9   :  { %v61_v0 = vld [vmem:[%s5508_s26] sm:$0xff]  ;;  %v62_v1 = vld [vmem:[%s5508_s26 + $0x8] sm:$0xff]  ;;  %v63_v2 = vld [vmem:[%s5508_s26 + $0x10] sm:$0xff] }
   0xa   :  { %v4440_v3 = vpack.c.bf16 %v62_v1, %v61_v0  ;;  %v64_v4 = vld [vmem:[%s5508_s26 + $0x18] sm:$0xff]  ;;  %v57_v5 = vld [vmem:[%s5509_s20] sm:$0xff] }
   0xb   :  { %v4444_v6 = vpack.c.bf16 %v64_v4, %v63_v2  ;;  %4206 = vmatprep.mubr.msk.f32.mxu0 %vm72_vm0, %v57_v5 }
   0xc   :  { %22 = vsyncpa [#allocation5], 0  ;;  %4441 = vmatprep.subr.bf16.mxu0 %v4440_v3  ;;  %v58_v7 = vld [vmem:[%s5509_s20 + $0x8] sm:$0xff]  ;;  %v59_v8 = vld [vmem:[%s5509_s20 + $0x10] sm:$0xff]  ;;  %vm243_vm1 = vcmask 31744   ;;  %vm246_vm2 = vcmask 27648  }
   0xd   :  { %4443 = vmatpush3.bf16.msra.mxu0 %v4440_v3  ;;  %v60_v9 = vld [vmem:[%s5509_s20 + $0x18] sm:$0xff]  ;;  %v4640_v10 = vmov 0.0   ;;  %v269_v11 = vld [vmem:[%s5491_s5] sm:$0xf]  ;;  %vm282_vm3 = vcmask 1043456   ;;  %vm377_vm4 = vcmask 1045504  }
   0xe   :  { %4445 = vmatprep.subr.bf16.mxu0 %v4444_v6  ;;  %244 = vst.msk [vmem:[#allocation2] sm:$0xff] %vm243_vm1, %v4640_v10  ;;  %245 = vst.msk [vmem:[#allocation2 + $0x8] sm:$0xff] %vm243_vm1, %v4640_v10  ;;  %v4794_v12 = vld [vmem:[%s5491_s5 + $0x4] sm:$0xf]  ;;  %v4805_v13 = vld [vmem:[%s5491_s5 + $0x8] sm:$0xf] }
   0xf   :  { %247 = vst.msk [vmem:[#allocation2 + $0x10] sm:$0xf] %vm246_vm2, %v4640_v10  ;;  %250 = vst.msk [vmem:[#allocation2 + $0x28] sm:$0xf] %vm246_vm2, %v4640_v10  ;;  %4486 = vmatprep.subr.msk.mxu1 %vm282_vm3, %v4794_v12  ;;  %v3874_v14 = vld [vmem:[%s5488_s2] ss:$0 sm:$0xff] }
  0x10   :  { %248 = vst.msk [vmem:[#allocation2 + $0x18] sm:$0xff] %vm243_vm1, %v4640_v10  ;;  %249 = vst.msk [vmem:[#allocation2 + $0x20] sm:$0xff] %vm243_vm1, %v4640_v10  ;;  %4487 = vmatpush3.msk.msra.mxu1 %vm282_vm3, %v4794_v12  ;;  %v3879_v1 = vld [vmem:[%s5489_s3] ss:$0 sm:$0xff]  ;;  %s4641_s3 = smov 124   ;;  %s4643_s24 = smov 116  }
  0x11   :  { %4447 = vmatpush3.bf16.msra.mxu0 %v4444_v6  ;;  %4228 = vmatprep.subr.msk.mxu1 %vm282_vm3, %v4805_v13  ;;  %v3880_v6 = vld [vmem:[%s5490_s4] ss:$0 sm:$0xff]  ;;  %s4642_s4 = smov 120   ;;  %s4644_s25 = smov 112   ;;  %vm1131_vm5 = vcmask 64544   ;;  %vm1589_vm6 = vcmask 97344  }
  0x12   :  { %4212 = vmatprep.subr.msk.mxu0 %vm282_vm3, %v269_v11  ;;  %s4645_s26 = smov 108   ;;  %s4646_s27 = smov 104   ;;  %vm2047_vm7 = vcmask 130144   ;;  %vm2505_vm8 = vcmask 162944   ;;  %vm2963_vm9 = vcmask 195744   ;;  %vm3421_vm10 = vcmask 228544  }
  0x13   :  { %s4647_s19 = smov 4   ;;  %s4648_s29 = smov 8   ;;  %vm4654_vm11 = vmmov 0   ;;  %vm3640_vm12 = vcmask 1041409  }
  0x14   :  { %4207 = vmatmul.mubr.msk.f32.vlgmr.msra.gmra.mrb[0].mxu0 %vm72_vm0, %v58_v7  ;;  %s4651_s21 = smov 20  }
  0x15   :  { %4209 = vmatprep.mubr.msk.f32.mxu0 %vm72_vm0, %v59_v8  ;;  %4213 = vmatpush3.msk.msra.mxu0 %vm282_vm3, %v269_v11 }
  0x16   :  { %4220 = vmatprep.subr.msk.mxu0 %vm282_vm3, %v4794_v12 }
  0x18   :  { %4210 = vmatmul.mubr.msk.f32.gmra.mrb[2].mxu0 %vm72_vm0, %v60_v9 }
  0xe7   :  { %v4208_v15 = vpop.f32.mrb[0].mxu0 }
  0xe8   :  { %v157_v16 = vadd.f32 %v4208_v15, %v3874_v14  ;;  %v151_v17 = vpop.f32.mrb[1].mxu0 }
  0xe9   :  { %v152_v18 = vadd.f32 %v3874_v14, %v151_v17 }
  0xea   :  { %v171_v19 = vmax.f32 %v157_v16, 0.0 }
  0xeb   :  { %v170_v20 = vmax.f32 %v152_v18, 0.0  ;;  %v4211_v21 = vpop.f32.mrb[2].mxu0 }
  0xec   :  { %v177_v22 = vsel %vm72_vm0, %v171_v19, 0.0  ;;  %v167_v23 = vadd.f32 %v4211_v21, %v3874_v14  ;;  %v161_v24 = vpop.f32.mrb[3].mxu0 }
  0xed   :  { %v176_v25 = vsel %vm72_vm0, %v170_v20, 0.0  ;;  %v162_v26 = vadd.f32 %v3874_v14, %v161_v24 }
  0xee   :  { %v178_v27 = vadd.f32 %v177_v22, %v176_v25  ;;  %v173_v28 = vmax.f32 %v167_v23, 0.0 }
  0xef   :  { %v172_v29 = vmax.f32 %v162_v26, 0.0 }
  0xf0   :  { %v181_v32 = vsel %vm72_vm0, %v173_v28, 0.0 }
  0xf1   :  { %v179_v30 = vsel %vm72_vm0, %v172_v29, 0.0 }
  0xf2   :  { %v180_v31 = vadd.f32 %v179_v30, %v178_v27 }
  0xf4   :  { %v182_v33 = vadd.f32 %v181_v32, %v180_v31 }
  0xf6   :  { %v183_v34 = vrot.slane %v182_v33, 4 }
  0xf8   :  { %v184_v35 = vadd.f32 %v183_v34, %v182_v33 }
  0xfa   :  { %v185_v36 = vrot.slane %v184_v35, 2 }
  0xfc   :  { %v186_v37 = vadd.f32 %v185_v36, %v184_v35 }
  0xfe   :  { %v187_v38 = vrot.slane %v186_v37, 1 }
 0x100   :  { %v188_v39 = vadd.f32 %v187_v38, %v186_v37 }
 0x102   :  { %v190_v40 = vmul.f32 0.03125, %v188_v39 }
 0x104   :  { %v191_v41 = vsub.f32 %v170_v20, %v190_v40  ;;  %v192_v42 = vsub.f32 %v171_v19, %v190_v40  ;;  %v193_v43 = vsub.f32 %v172_v29, %v190_v40  ;;  %v194_v44 = vsub.f32 %v173_v28, %v190_v40 }
 0x106   :  { %v195_v45 = vmul.f32 %v191_v41, %v191_v41  ;;  %v196_v46 = vmul.f32 %v192_v42, %v192_v42  ;;  %v197_v47 = vmul.f32 %v193_v43, %v193_v43  ;;  %v198_v48 = vmul.f32 %v194_v44, %v194_v44 }
 0x108   :  { %v199_v49 = vsel %vm72_vm0, %v195_v45, 0.0  ;;  %v200_v50 = vsel %vm72_vm0, %v196_v46, 0.0  ;;  %v202_v52 = vsel %vm72_vm0, %v197_v47, 0.0  ;;  %v204_v54 = vsel %vm72_vm0, %v198_v48, 0.0  ;;  %v3881_v46 = vld [vmem:[%s5492_s6] ss:$0 sm:$0xff] }
 0x109   :  { %v201_v51 = vadd.f32 %v200_v50, %v199_v49 }
 0x10b   :  { %v203_v53 = vadd.f32 %v202_v52, %v201_v51 }
 0x10d   :  { %v205_v55 = vadd.f32 %v204_v54, %v203_v53 }
 0x10f   :  { %v206_v56 = vrot.slane %v205_v55, 4 }
 0x111   :  { %v207_v57 = vadd.f32 %v206_v56, %v205_v55 }
 0x113   :  { %v208_v58 = vrot.slane %v207_v57, 2 }
 0x115   :  { %v209_v59 = vadd.f32 %v208_v58, %v207_v57 }
 0x117   :  { %v210_v60 = vrot.slane %v209_v59, 1 }
 0x119   :  { %v211_v61 = vadd.f32 %v210_v60, %v209_v59 }
 0x11b   :  { %v212_v62 = vmul.f32 0.03125, %v211_v61 }
 0x11d   :  { %v213_v63 = vadd.f32 1e-05, %v212_v62 }
 0x11f   :  { %4590 = vrsqrt.f32 %v213_v63 }
 0x129   :  { %v4591_v0 = vpop.eup %4590 }
 0x12a   :  { %v215_v2 = vmul.f32 %v4591_v0, %v191_v41  ;;  %v216_v3 = vmul.f32 %v4591_v0, %v192_v42  ;;  %v217_v4 = vmul.f32 %v4591_v0, %v193_v43  ;;  %v218_v5 = vmul.f32 %v4591_v0, %v194_v44  ;;  %v3903_v42 = vld [vmem:[%s5491_s5 + $0xc] sm:$0xf]  ;;  %v4906_v43 = vld [vmem:[%s5491_s5 + $0x10] sm:$0xf] }
 0x12c   :  { %v225_v7 = vmul.f32 %v3879_v1, %v215_v2  ;;  %v226_v8 = vmul.f32 %v3879_v1, %v216_v3  ;;  %v227_v9 = vmul.f32 %v3879_v1, %v217_v4  ;;  %v228_v11 = vmul.f32 %v3879_v1, %v218_v5 }
 0x12e   :  { %v4826_v14 = vadd.f32 %v3880_v6, %v225_v7  ;;  %v4828_v15 = vadd.f32 %v3880_v6, %v226_v8  ;;  %v4830_v16 = vadd.f32 %v3880_v6, %v227_v9  ;;  %v4832_v17 = vadd.f32 %v3880_v6, %v228_v11 }
 0x130   :  { %251 = vst.msk [vmem:[#allocation2 + $0x2] sm:$0xff] %vm243_vm1, %v4826_v14  ;;  %252 = vst.msk [vmem:[#allocation2 + $0xa] sm:$0xff] %vm243_vm1, %v4828_v15  ;;  %682 = vrot.lane.b32.xlu1 %v4830_v16, %s4641_s3  ;;  %678 = vrot.lane.b32.xlu0 %v4826_v14, %s4641_s3 }
 0x131   :  { %253 = vst.msk [vmem:[#allocation2 + $0x1a] sm:$0xff] %vm243_vm1, %v4830_v16  ;;  %254 = vst.msk [vmem:[#allocation2 + $0x22] sm:$0xff] %vm243_vm1, %v4832_v17 }
 0x132   :  { %239 = vst.msk [vmem:[#allocation3] sm:$0xff] %vm72_vm0, %v4826_v14  ;;  %240 = vst.msk [vmem:[#allocation3 + $0x8] sm:$0xff] %vm72_vm0, %v4828_v15 }
 0x133   :  { %241 = vst.msk [vmem:[#allocation3 + $0x10] sm:$0xff] %vm72_vm0, %v4830_v16  ;;  %242 = vst.msk [vmem:[#allocation3 + $0x18] sm:$0xff] %vm72_vm0, %v4832_v17 }
 0x134   :  { %684 = vrot.lane.b32.xlu1 %v4832_v17, %s4641_s3  ;;  %680 = vrot.lane.b32.xlu0 %v4828_v15, %s4641_s3  ;;  %s4650_s3 = smov 16  }
 0x137   :  { %v255_v18 = vld [vmem:[#allocation2] sm:$0xff]  ;;  %v256_v19 = vld [vmem:[#allocation2 + $0x8] sm:$0xff]  ;;  %v257_v26 = vld [vmem:[#allocation2 + $0x10] sm:$0xf] }
 0x138   :  { %v258_v20 = vld [vmem:[#allocation2 + $0x18] sm:$0xff]  ;;  %1138 = vrot.lane.b32.xlu1 %v4828_v15, %s4642_s4  ;;  %1136 = vrot.lane.b32.xlu0 %v4826_v14, %s4642_s4  ;;  %v259_v21 = vld [vmem:[#allocation2 + $0x20] sm:$0xff]  ;;  %v260_v23 = vld [vmem:[#allocation2 + $0x28] sm:$0xf]  ;;  %v490_v27 = vrot.slane %v255_v18, 4  ;;  %v491_v28 = vrot.slane %v256_v19, 4 }
 0x139   :  { %v383_v22 = vrot.slane %v258_v20, 2  ;;  %4214 = vmatprep.mubr.msk.f32.mxu0 %vm243_vm1, %v255_v18  ;;  %v384_v24 = vrot.slane %v259_v21, 2  ;;  %v386_v25 = vrot.slane %v260_v23, 2  ;;  %v378_v29 = vrot.slane %v255_v18, 2 }
 0x13a   :  { %4215 = vmatmul.mubr.msk.f32.vlgmr.msra.gmra.mrb[4].mxu0 %vm243_vm1, %v256_v19  ;;  %v379_v30 = vrot.slane %v256_v19, 2  ;;  %v493_v33 = vrot.slane %v257_v26, 4  ;;  %v381_v34 = vrot.slane %v257_v26, 2  ;;  %v495_v35 = vrot.slane %v258_v20, 4 }
 0x13b   :  { %4221 = vmatpush3.msk.msra.mxu0 %vm282_vm3, %v4794_v12  ;;  %4217 = vmatprep.mubr.msk.f32.mxu0 %vm243_vm1, %v258_v20  ;;  %v385_v31 = vsel %vm377_vm4, %v383_v22, %v384_v24  ;;  %v387_v32 = vsel %vm377_vm4, %v384_v24, %v386_v25  ;;  %v496_v36 = vrot.slane %v259_v21, 4  ;;  %v492_v12 = vsel %vm282_vm3, %v490_v27, %v491_v28 }
 0x13c   :  { %4225 = vmatprep.mubr.msk.f32.mxu1 %vm243_vm1, %v385_v31  ;;  %1142 = vrot.lane.b32.xlu1 %v4832_v17, %s4642_s4  ;;  %v380_v37 = vsel %vm377_vm4, %v378_v29, %v379_v30  ;;  %v494_v38 = vsel %vm282_vm3, %v491_v28, %v493_v33  ;;  %v498_v39 = vrot.slane %v260_v23, 4 }
 0x13d   :  { %4226 = vmatmul.mubr.msk.f32.vlgmr.msra.gmra.mrb[0].mxu1 %vm243_vm1, %v387_v32  ;;  %1140 = vrot.lane.b32.xlu0 %v4830_v16, %s4642_s4  ;;  %v497_v40 = vsel %vm282_vm3, %v495_v35, %v496_v36 }
 0x13e   :  { %4218 = vmatmul.mubr.msk.f32.gmra.mrb[6].mxu0 %vm243_vm1, %v259_v21  ;;  %4229 = vmatpush3.msk.msra.mxu1 %vm282_vm3, %v4805_v13  ;;  %v382_v13 = vsel %vm377_vm4, %v379_v30, %v381_v34  ;;  %v499_v41 = vsel %vm282_vm3, %v496_v36, %v498_v39 }
 0x13f   :  { %4230 = vmatprep.mubr.msk.f32.mxu1 %vm243_vm1, %v492_v12  ;;  %4222 = vmatprep.mubr.msk.f32.mxu0 %vm243_vm1, %v380_v37 }
 0x140   :  { %1596 = vrot.lane.b32.xlu1 %v4828_v15, %s4643_s24  ;;  %4236 = vmatprep.subr.msk.mxu0 %vm282_vm3, %v3903_v42 }
 0x141   :  { %1594 = vrot.lane.b32.xlu0 %v4826_v14, %s4643_s24  ;;  %4231 = vmatmul.mubr.msk.f32.vlgmr.msra.gmra.mrb[2].mxu1 %vm243_vm1, %v494_v38 }
 0x142   :  { %4223 = vmatmul.mubr.msk.f32.vlgmr.msra.gmra.mrb[4].mxu0 %vm243_vm1, %v382_v13  ;;  %4233 = vmatprep.mubr.msk.f32.mxu1 %vm243_vm1, %v497_v40 }
 0x143   :  { %4237 = vmatpush3.msk.msra.mxu0 %vm282_vm3, %v3903_v42  ;;  %v3899_v42 = vld [vmem:[%s5493_s7] ss:$0 sm:$0xff] }
 0x144   :  { %1600 = vrot.lane.b32.xlu1 %v4832_v17, %s4643_s24  ;;  %4244 = vmatprep.subr.msk.mxu0 %vm282_vm3, %v4906_v43 }
 0x145   :  { %1598 = vrot.lane.b32.xlu0 %v4830_v16, %s4643_s24  ;;  %4234 = vmatmul.mubr.msk.f32.gmra.mrb[0].mxu1 %vm243_vm1, %v499_v41 }
 0x148   :  { %2054 = vrot.lane.b32.xlu1 %v4828_v15, %s4644_s25 }
 0x149   :  { %2052 = vrot.lane.b32.xlu0 %v4826_v14, %s4644_s25 }
 0x14c   :  { %2058 = vrot.lane.b32.xlu1 %v4832_v17, %s4644_s25 }
 0x14d   :  { %2056 = vrot.lane.b32.xlu0 %v4830_v16, %s4644_s25  ;;  %s4649_s25 = smov 12  }
 0x150   :  { %2512 = vrot.lane.b32.xlu1 %v4828_v15, %s4645_s26 }
 0x151   :  { %2510 = vrot.lane.b32.xlu0 %v4826_v14, %s4645_s26 }
 0x154   :  { %2516 = vrot.lane.b32.xlu1 %v4832_v17, %s4645_s26 }
 0x155   :  { %2514 = vrot.lane.b32.xlu0 %v4830_v16, %s4645_s26 }
 0x158   :  { %2970 = vrot.lane.b32.xlu1 %v4828_v15, %s4646_s27 }
 0x159   :  { %2968 = vrot.lane.b32.xlu0 %v4826_v14, %s4646_s27 }
 0x15c   :  { %2974 = vrot.lane.b32.xlu1 %v4832_v17, %s4646_s27 }
 0x15d   :  { %2972 = vrot.lane.b32.xlu0 %v4830_v16, %s4646_s27 }
 0x1a2   :  { %v683_v40 = vpop.permute.xlu1 %682  ;;  %v679_v41 = vpop.permute.xlu0 %678 }
 0x211   :  { %v4219_v44 = vpop.f32.mrb[6].mxu0 }
 0x212   :  { %v362_v45 = vpop.f32.mrb[7].mxu0  ;;  %v374_v52 = vadd.f32 %v4219_v44, %v3881_v46 }
 0x213   :  { %v373_v54 = vadd.f32 %v3881_v46, %v362_v45 }
 0x214   :  { %v4232_v47 = vpop.f32.mrb[2].mxu1 }
 0x215   :  { %v4224_v48 = vpop.f32.mrb[4].mxu0  ;;  %v579_v49 = vpop.f32.mrb[3].mxu1 }
 0x216   :  { %v4488_v50 = vadd.f32 %v4224_v48, %v3881_v46  ;;  %v467_v51 = vpop.f32.mrb[5].mxu0  ;;  %v3900_v48 = vld [vmem:[%s5494_s8] ss:$0 sm:$0xff] }
 0x217   :  { %v4490_v53 = vadd.f32 %v3881_v46, %v467_v51 }
 0x218   :  { %v4489_v55 = vadd.f32 %v4488_v50, %v4232_v47  ;;  %v4235_v56 = vpop.f32.mrb[0].mxu1 }
 0x219   :  { %v4491_v57 = vadd.f32 %v4490_v53, %v579_v49  ;;  %v4493_v58 = vadd.f32 %v4235_v56, %v374_v52  ;;  %v589_v59 = vpop.f32.mrb[1].mxu1 }
 0x21a   :  { %v603_v60 = vmax.f32 %v4489_v55, 0.0  ;;  %v4495_v61 = vadd.f32 %v589_v59, %v373_v54 }
 0x21b   :  { %v602_v62 = vmax.f32 %v4491_v57, 0.0  ;;  %v605_v2 = vmax.f32 %v4493_v58, 0.0  ;;  %v685_v57 = vpop.permute.xlu1 %684  ;;  %v681_v58 = vpop.permute.xlu0 %680 }
 0x21c   :  { %v609_v63 = vsel %vm243_vm1, %v603_v60, 0.0  ;;  %v604_v0 = vmax.f32 %v4495_v61, 0.0 }
 0x21d   :  { %v608_v1 = vsel %vm243_vm1, %v602_v62, 0.0  ;;  %v613_v6 = vsel %vm243_vm1, %v605_v2, 0.0 }
 0x21e   :  { %v610_v3 = vadd.f32 %v609_v63, %v608_v1  ;;  %v611_v4 = vsel %vm243_vm1, %v604_v0, 0.0  ;;  %v3915_v1 = vld [vmem:[%s5491_s5 + $0x14] sm:$0xf] }
 0x220   :  { %v612_v5 = vadd.f32 %v611_v4, %v610_v3 }
 0x222   :  { %v614_v7 = vadd.f32 %v613_v6, %v612_v5 }
 0x224   :  { %v615_v8 = vrot.slane %v614_v7, 4 }
 0x226   :  { %v616_v9 = vadd.f32 %v615_v8, %v614_v7 }
 0x228   :  { %v617_v11 = vrot.slane %v616_v9, 2 }
 0x22a   :  { %v618_v14 = vadd.f32 %v617_v11, %v616_v9 }
 0x22c   :  { %v619_v15 = vrot.slane %v618_v14, 1 }
 0x22e   :  { %v620_v16 = vadd.f32 %v619_v15, %v618_v14 }
 0x230   :  { %v621_v17 = vmul.f32 0.03125, %v620_v16 }
 0x232   :  { %v622_v18 = vsub.f32 %v602_v62, %v621_v17  ;;  %v623_v19 = vsub.f32 %v603_v60, %v621_v17  ;;  %v624_v20 = vsub.f32 %v604_v0, %v621_v17  ;;  %v625_v21 = vsub.f32 %v605_v2, %v621_v17 }
 0x234   :  { %v626_v22 = vmul.f32 %v622_v18, %v622_v18  ;;  %v627_v23 = vmul.f32 %v623_v19, %v623_v19  ;;  %v628_v24 = vmul.f32 %v624_v20, %v624_v20  ;;  %v629_v25 = vmul.f32 %v625_v21, %v625_v21 }
 0x236   :  { %v630_v26 = vsel %vm243_vm1, %v626_v22, 0.0  ;;  %v631_v27 = vsel %vm243_vm1, %v627_v23, 0.0  ;;  %v633_v29 = vsel %vm243_vm1, %v628_v24, 0.0  ;;  %v635_v31 = vsel %vm243_vm1, %v629_v25, 0.0 }
 0x237   :  { %v632_v28 = vadd.f32 %v631_v27, %v630_v26 }
 0x239   :  { %v634_v30 = vadd.f32 %v633_v29, %v632_v28  ;;  %v3927_v28 = vld [vmem:[%s5491_s5 + $0x18] sm:$0xf]  ;;  %v4970_v29 = vld [vmem:[%s5491_s5 + $0x1c] sm:$0xf] }
 0x23a   :  { %4260 = vmatprep.subr.msk.mxu1 %vm282_vm3, %v3927_v28 }
 0x23b   :  { %v636_v32 = vadd.f32 %v635_v31, %v634_v30  ;;  %4261 = vmatpush3.msk.msra.mxu1 %vm282_vm3, %v3927_v28  ;;  %v3902_v30 = vld [vmem:[%s5492_s6 + $0x1] ss:$0 sm:$0xff] }
 0x23c   :  { %4268 = vmatprep.subr.msk.mxu1 %vm282_vm3, %v4970_v29 }
 0x23d   :  { %v637_v33 = vrot.slane %v636_v32, 4 }
 0x23f   :  { %v638_v34 = vadd.f32 %v637_v33, %v636_v32 }
 0x241   :  { %v639_v35 = vrot.slane %v638_v34, 2 }
 0x243   :  { %v640_v36 = vadd.f32 %v639_v35, %v638_v34 }
 0x245   :  { %v641_v12 = vrot.slane %v640_v36, 1 }
 0x247   :  { %v642_v37 = vadd.f32 %v641_v12, %v640_v36 }
 0x249   :  { %v643_v38 = vmul.f32 0.03125, %v642_v37 }
 0x24b   :  { %v644_v39 = vadd.f32 1e-05, %v643_v38 }
 0x24d   :  { %4592 = vrsqrt.f32 %v644_v39 }
 0x257   :  { %v4593_v13 = vpop.eup %4592 }
 0x258   :  { %v646_v44 = vmul.f32 %v4593_v13, %v622_v18  ;;  %v647_v45 = vmul.f32 %v4593_v13, %v623_v19  ;;  %v648_v46 = vmul.f32 %v4593_v13, %v624_v20  ;;  %v649_v47 = vmul.f32 %v4593_v13, %v625_v21 }
 0x25a   :  { %v656_v49 = vmul.f32 %v3899_v42, %v646_v44  ;;  %v657_v50 = vmul.f32 %v3899_v42, %v647_v45  ;;  %v658_v51 = vmul.f32 %v3899_v42, %v648_v46  ;;  %v659_v52 = vmul.f32 %v3899_v42, %v649_v47 }
 0x25c   :  { %v666_v53 = vadd.f32 %v3900_v48, %v656_v49  ;;  %v667_v54 = vadd.f32 %v3900_v48, %v657_v50  ;;  %v668_v55 = vadd.f32 %v3900_v48, %v658_v51  ;;  %v669_v56 = vadd.f32 %v3900_v48, %v659_v52 }
 0x25e   :  { %v690_v59 = vadd.f32 %v679_v41, %v666_v53  ;;  %v691_v60 = vadd.f32 %v681_v58, %v667_v54  ;;  %v692_v61 = vadd.f32 %v683_v40, %v668_v55  ;;  %v693_v62 = vadd.f32 %v685_v57, %v669_v56  ;;  %670 = vst.msk [vmem:[#allocation3] sm:$0xff] %vm243_vm1, %v666_v53 }
 0x25f   :  { %671 = vst.msk [vmem:[#allocation3 + $0x8] sm:$0xff] %vm243_vm1, %v667_v54  ;;  %672 = vst.msk [vmem:[#allocation3 + $0x10] sm:$0xff] %vm243_vm1, %v668_v55 }
 0x260   :  { %673 = vst.msk [vmem:[#allocation3 + $0x18] sm:$0xff] %vm243_vm1, %v669_v56  ;;  %694 = vst.msk [vmem:[#allocation2 + $0x2] sm:$0xff] %vm243_vm1, %v690_v59 }
 0x261   :  { %695 = vst.msk [vmem:[#allocation2 + $0xa] sm:$0xff] %vm243_vm1, %v691_v60  ;;  %696 = vst.msk [vmem:[#allocation2 + $0x1a] sm:$0xff] %vm243_vm1, %v692_v61 }
 0x262   :  { %697 = vst.msk [vmem:[#allocation2 + $0x22] sm:$0xff] %vm243_vm1, %v693_v62 }
 0x267   :  { %v698_v63 = vld [vmem:[#allocation2] sm:$0xff] }
 0x268   :  { %v699_v0 = vld [vmem:[#allocation2 + $0x8] sm:$0xff]  ;;  %4238 = vmatprep.mubr.msk.f32.mxu0 %vm243_vm1, %v698_v63  ;;  %v701_v2 = vld [vmem:[#allocation2 + $0x18] sm:$0xff]  ;;  %v821_v3 = vrot.slane %v698_v63, 2  ;;  %v700_v5 = vld [vmem:[#allocation2 + $0x10] sm:$0xf]  ;;  %v933_v17 = vrot.slane %v698_v63, 4 }
 0x269   :  { %4239 = vmatmul.mubr.msk.f32.vlgmr.msra.gmra.mrb[8].mxu0 %vm243_vm1, %v699_v0  ;;  %v822_v4 = vrot.slane %v699_v0, 2  ;;  %v702_v6 = vld [vmem:[#allocation2 + $0x20] sm:$0xff]  ;;  %v824_v7 = vrot.slane %v700_v5, 2  ;;  %v826_v9 = vrot.slane %v701_v2, 2  ;;  %v703_v14 = vld [vmem:[#allocation2 + $0x28] sm:$0xf] }
 0x26a   :  { %4245 = vmatpush3.msk.msra.mxu0 %vm282_vm3, %v4906_v43  ;;  %4241 = vmatprep.mubr.msk.f32.mxu0 %vm243_vm1, %v701_v2  ;;  %v827_v11 = vrot.slane %v702_v6, 2  ;;  %v829_v16 = vrot.slane %v703_v14, 2  ;;  %v934_v18 = vrot.slane %v699_v0, 4  ;;  %v936_v20 = vrot.slane %v700_v5, 4 }
 0x26b   :  { %4252 = vmatprep.subr.msk.mxu0 %vm282_vm3, %v3915_v1  ;;  %v823_v8 = vsel %vm377_vm4, %v821_v3, %v822_v4  ;;  %v825_v15 = vsel %vm377_vm4, %v822_v4, %v824_v7  ;;  %v938_v22 = vrot.slane %v701_v2, 4  ;;  %v939_v23 = vrot.slane %v702_v6, 4 }
 0x26c   :  { %v828_v43 = vsel %vm377_vm4, %v826_v9, %v827_v11  ;;  %v830_v19 = vsel %vm377_vm4, %v827_v11, %v829_v16  ;;  %v935_v21 = vsel %vm282_vm3, %v933_v17, %v934_v18  ;;  %v937_v24 = vsel %vm282_vm3, %v934_v18, %v936_v20  ;;  %v1137_v18 = vpop.permute.xlu0 %1136  ;;  %v1139_v20 = vpop.permute.xlu1 %1138 }
 0x26d   :  { %4242 = vmatmul.mubr.msk.f32.gmra.mrb[10].mxu0 %vm243_vm1, %v702_v6  ;;  %v941_v25 = vrot.slane %v703_v14, 4  ;;  %v940_v26 = vsel %vm282_vm3, %v938_v22, %v939_v23 }
 0x26e   :  { %4246 = vmatprep.mubr.msk.f32.mxu0 %vm243_vm1, %v823_v8 }
 0x26f   :  { %v942_v27 = vsel %vm282_vm3, %v939_v23, %v941_v25  ;;  %v3924_v25 = vld [vmem:[%s5494_s8 + $0x1] ss:$0 sm:$0xff] }
 0x271   :  { %4247 = vmatmul.mubr.msk.f32.vlgmr.msra.gmra.mrb[8].mxu0 %vm243_vm1, %v825_v15 }
 0x272   :  { %4253 = vmatpush3.msk.msra.mxu0 %vm282_vm3, %v3915_v1  ;;  %4249 = vmatprep.mubr.msk.f32.mxu0 %vm243_vm1, %v828_v43 }
 0x275   :  { %4250 = vmatmul.mubr.msk.f32.gmra.mrb[10].mxu0 %vm243_vm1, %v830_v19  ;;  %v3923_v19 = vld [vmem:[%s5493_s7 + $0x1] ss:$0 sm:$0xff] }
 0x276   :  { %4254 = vmatprep.mubr.msk.f32.mxu0 %vm243_vm1, %v935_v21 }
 0x279   :  { %4255 = vmatmul.mubr.msk.f32.vlgmr.msra.gmra.mrb[8].mxu0 %vm243_vm1, %v937_v24 }
 0x27a   :  { %4257 = vmatprep.mubr.msk.f32.mxu0 %vm243_vm1, %v940_v26 }
 0x27d   :  { %4258 = vmatmul.mubr.msk.f32.gmra.mrb[10].mxu0 %vm243_vm1, %v942_v27 }
 0x34c   :  { %v4256_v31 = vpop.f32.mrb[8].mxu0 }
 0x34d   :  { %v4496_v32 = vadd.f32 %v4256_v31, %v3902_v30  ;;  %v1022_v33 = vpop.f32.mrb[9].mxu0 }
 0x34e   :  { %v4497_v34 = vadd.f32 %v3902_v30, %v1022_v33 }
 0x34f   :  { %v1046_v35 = vmax.f32 %v4496_v32, 0.0 }
 0x350   :  { %v1045_v36 = vmax.f32 %v4497_v34, 0.0  ;;  %v4259_v12 = vpop.f32.mrb[10].mxu0 }
 0x351   :  { %v1054_v37 = vsel %vm243_vm1, %v1046_v35, 0.0  ;;  %v4498_v38 = vadd.f32 %v4259_v12, %v3902_v30  ;;  %v1032_v39 = vpop.f32.mrb[11].mxu0 }
 0x352   :  { %v1053_v13 = vsel %vm243_vm1, %v1045_v36, 0.0  ;;  %v4499_v40 = vadd.f32 %v3902_v30, %v1032_v39 }
 0x353   :  { %v1055_v41 = vadd.f32 %v1054_v37, %v1053_v13  ;;  %v1048_v42 = vmax.f32 %v4498_v38, 0.0 }
 0x354   :  { %v1047_v44 = vmax.f32 %v4499_v40, 0.0 }
 0x355   :  { %v1058_v47 = vsel %vm243_vm1, %v1048_v42, 0.0 }
 0x356   :  { %v1056_v45 = vsel %vm243_vm1, %v1047_v44, 0.0 }
 0x357   :  { %v1057_v46 = vadd.f32 %v1056_v45, %v1055_v41  ;;  %v3939_v41 = vld [vmem:[%s5491_s5 + $0x20] sm:$0xf] }
 0x359   :  { %v1059_v48 = vadd.f32 %v1058_v47, %v1057_v46 }
 0x35b   :  { %v1060_v49 = vrot.slane %v1059_v48, 4 }
 0x35d   :  { %v1061_v50 = vadd.f32 %v1060_v49, %v1059_v48 }
 0x35f   :  { %v1062_v51 = vrot.slane %v1061_v50, 2 }
 0x361   :  { %v1063_v52 = vadd.f32 %v1062_v51, %v1061_v50 }
 0x363   :  { %v1064_v53 = vrot.slane %v1063_v52, 1 }
 0x365   :  { %v1065_v54 = vadd.f32 %v1064_v53, %v1063_v52 }
 0x367   :  { %v1066_v55 = vmul.f32 0.03125, %v1065_v54 }
 0x369   :  { %v1067_v56 = vsub.f32 %v1045_v36, %v1066_v55  ;;  %v1068_v57 = vsub.f32 %v1046_v35, %v1066_v55  ;;  %v1069_v58 = vsub.f32 %v1047_v44, %v1066_v55  ;;  %v1070_v59 = vsub.f32 %v1048_v42, %v1066_v55  ;;  %v1141_v35 = vpop.permute.xlu0 %1140  ;;  %v1143_v36 = vpop.permute.xlu1 %1142 }
 0x36b   :  { %v1071_v60 = vmul.f32 %v1067_v56, %v1067_v56  ;;  %v1072_v61 = vmul.f32 %v1068_v57, %v1068_v57  ;;  %v1073_v62 = vmul.f32 %v1069_v58, %v1069_v58  ;;  %v1074_v63 = vmul.f32 %v1070_v59, %v1070_v59 }
 0x36d   :  { %v1075_v0 = vsel %vm243_vm1, %v1071_v60, 0.0  ;;  %v1076_v1 = vsel %vm243_vm1, %v1072_v61, 0.0  ;;  %v1078_v3 = vsel %vm243_vm1, %v1073_v62, 0.0  ;;  %v1080_v5 = vsel %vm243_vm1, %v1074_v63, 0.0 }
 0x36e   :  { %v1077_v2 = vadd.f32 %v1076_v1, %v1075_v0 }
 0x370   :  { %v1079_v4 = vadd.f32 %v1078_v3, %v1077_v2  ;;  %v5022_v2 = vpop.permute.xlu1 %1596  ;;  %v5024_v3 = vpop.permute.xlu0 %1594 }
 0x372   :  { %v1081_v6 = vadd.f32 %v1080_v5, %v1079_v4 }
 0x374   :  { %v1082_v7 = vrot.slane %v1081_v6, 4  ;;  %v5026_v4 = vpop.permute.xlu1 %1600  ;;  %v5028_v5 = vpop.permute.xlu0 %1598 }
 0x376   :  { %v1083_v8 = vadd.f32 %v1082_v7, %v1081_v6 }
 0x378   :  { %v1084_v9 = vrot.slane %v1083_v8, 2  ;;  %v5030_v6 = vpop.permute.xlu1 %2054  ;;  %v5032_v7 = vpop.permute.xlu0 %2052 }
 0x37a   :  { %v1085_v11 = vadd.f32 %v1084_v9, %v1083_v8 }
 0x37c   :  { %v1086_v14 = vrot.slane %v1085_v11, 1  ;;  %v5034_v8 = vpop.permute.xlu1 %2058  ;;  %v5036_v9 = vpop.permute.xlu0 %2056 }
 0x37e   :  { %v1087_v15 = vadd.f32 %v1086_v14, %v1085_v11 }
 0x380   :  { %v1088_v16 = vmul.f32 0.03125, %v1087_v15  ;;  %v5038_v11 = vpop.permute.xlu1 %2512  ;;  %v5040_v14 = vpop.permute.xlu0 %2510 }
 0x382   :  { %v1089_v43 = vadd.f32 1e-05, %v1088_v16 }
 0x384   :  { %4594 = vrsqrt.f32 %v1089_v43  ;;  %v5042_v15 = vpop.permute.xlu1 %2516  ;;  %v5044_v16 = vpop.permute.xlu0 %2514 }
 0x388   :  { %v5046_v43 = vpop.permute.xlu1 %2970 }
 0x38e   :  { %v4595_v17 = vpop.eup %4594 }
 0x38f   :  { %v1093_v21 = vmul.f32 %v4595_v17, %v1069_v58  ;;  %v1092_v22 = vmul.f32 %v4595_v17, %v1068_v57  ;;  %v1091_v23 = vmul.f32 %v4595_v17, %v1067_v56  ;;  %v1094_v24 = vmul.f32 %v4595_v17, %v1070_v59  ;;  %v5048_v17 = vpop.permute.xlu0 %2968 }
 0x391   :  { %v1102_v26 = vmul.f32 %v3923_v19, %v1092_v22  ;;  %v1101_v27 = vmul.f32 %v3923_v19, %v1091_v23  ;;  %v1103_v28 = vmul.f32 %v3923_v19, %v1093_v21  ;;  %v1104_v30 = vmul.f32 %v3923_v19, %v1094_v24  ;;  %v3951_v24 = vld [vmem:[%s5491_s5 + $0x24] sm:$0xf] }
 0x392   :  { %4284 = vmatprep.subr.msk.mxu0 %vm282_vm3, %v3951_v24 }
 0x393   :  { %v1112_v31 = vadd.f32 %v3924_v25, %v1102_v26  ;;  %v1111_v32 = vadd.f32 %v3924_v25, %v1101_v27  ;;  %v1113_v33 = vadd.f32 %v3924_v25, %v1103_v28  ;;  %v1114_v34 = vadd.f32 %v3924_v25, %v1104_v30  ;;  %v5052_v19 = vpop.permute.xlu0 %2972  ;;  %4285 = vmatpush3.msk.msra.mxu0 %vm282_vm3, %v3951_v24  ;;  %v5062_v25 = vld [vmem:[%s5491_s5 + $0x28] sm:$0xf]  ;;  %v3926_v26 = vld [vmem:[%s5492_s6 + $0x2] ss:$0 sm:$0xff] }
 0x394   :  { %4292 = vmatprep.subr.msk.mxu0 %vm282_vm3, %v5062_v25 }
 0x395   :  { %1121 = vrot.lane.b32.xlu1 %v1112_v31, %s4647_s19  ;;  %v1149_v12 = vadd.f32 %v1139_v20, %v1112_v31  ;;  %1119 = vrot.lane.b32.xlu0 %v1111_v32, %s4647_s19  ;;  %v1148_v37 = vadd.f32 %v1137_v18, %v1111_v32  ;;  %v1150_v38 = vadd.f32 %v1141_v35, %v1113_v33  ;;  %v5050_v18 = vpop.permute.xlu1 %2974 }
 0x396   :  { %v1151_v39 = vadd.f32 %v1143_v36, %v1114_v34 }
 0x397   :  { %1153 = vst.msk [vmem:[#allocation2 + $0xa] sm:$0xff] %vm243_vm1, %v1149_v12  ;;  %1152 = vst.msk [vmem:[#allocation2 + $0x2] sm:$0xff] %vm243_vm1, %v1148_v37 }
 0x398   :  { %1154 = vst.msk [vmem:[#allocation2 + $0x1a] sm:$0xff] %vm243_vm1, %v1150_v38  ;;  %1155 = vst.msk [vmem:[#allocation2 + $0x22] sm:$0xff] %vm243_vm1, %v1151_v39 }
 0x399   :  { %1123 = vrot.lane.b32.xlu1 %v1113_v33, %s4647_s19  ;;  %1125 = vrot.lane.b32.xlu0 %v1114_v34, %s4647_s19 }
 0x39e   :  { %v1156_v13 = vld [vmem:[#allocation2] sm:$0xff]  ;;  %v1157_v40 = vld [vmem:[#allocation2 + $0x8] sm:$0xff]  ;;  %v1158_v46 = vld [vmem:[#allocation2 + $0x10] sm:$0xf] }
 0x39f   :  { %4262 = vmatprep.mubr.msk.f32.mxu1 %vm243_vm1, %v1156_v13  ;;  %v1159_v42 = vld [vmem:[#allocation2 + $0x18] sm:$0xff]  ;;  %v1279_v44 = vrot.slane %v1156_v13, 2  ;;  %v1280_v45 = vrot.slane %v1157_v40, 2  ;;  %v1160_v47 = vld [vmem:[#allocation2 + $0x20] sm:$0xff]  ;;  %v1282_v48 = vrot.slane %v1158_v46, 2  ;;  %v1391_v55 = vrot.slane %v1156_v13, 4 }
 0x3a0   :  { %4263 = vmatmul.mubr.msk.f32.vlgmr.msra.gmra.mrb[4].mxu1 %vm243_vm1, %v1157_v40  ;;  %v1284_v50 = vrot.slane %v1159_v42, 2  ;;  %v1285_v51 = vrot.slane %v1160_v47, 2  ;;  %v1161_v52 = vld [vmem:[#allocation2 + $0x28] sm:$0xf]  ;;  %v1392_v56 = vrot.slane %v1157_v40, 4  ;;  %v1394_v58 = vrot.slane %v1158_v46, 4 }
 0x3a1   :  { %4269 = vmatpush3.msk.msra.mxu1 %vm282_vm3, %v4970_v29  ;;  %4265 = vmatprep.mubr.msk.f32.mxu1 %vm243_vm1, %v1159_v42  ;;  %v1281_v49 = vsel %vm377_vm4, %v1279_v44, %v1280_v45  ;;  %v1283_v53 = vsel %vm377_vm4, %v1280_v45, %v1282_v48  ;;  %v1287_v54 = vrot.slane %v1161_v52, 2  ;;  %v1396_v60 = vrot.slane %v1159_v42, 4 }
 0x3a2   :  { %4276 = vmatprep.subr.msk.mxu1 %vm282_vm3, %v3939_v41  ;;  %v1286_v29 = vsel %vm377_vm4, %v1284_v50, %v1285_v51  ;;  %v1393_v59 = vsel %vm282_vm3, %v1391_v55, %v1392_v56  ;;  %v1397_v61 = vrot.slane %v1160_v47, 4  ;;  %v1395_v62 = vsel %vm282_vm3, %v1392_v56, %v1394_v58 }
 0x3a3   :  { %v1288_v57 = vsel %vm377_vm4, %v1285_v51, %v1287_v54  ;;  %v1399_v63 = vrot.slane %v1161_v52, 4 }
 0x3a4   :  { %4266 = vmatmul.mubr.msk.f32.gmra.mrb[6].mxu1 %vm243_vm1, %v1160_v47  ;;  %v1398_v0 = vsel %vm282_vm3, %v1396_v60, %v1397_v61 }
 0x3a5   :  { %4270 = vmatprep.mubr.msk.f32.mxu1 %vm243_vm1, %v1281_v49  ;;  %v1400_v1 = vsel %vm282_vm3, %v1397_v61, %v1399_v63 }
 0x3a8   :  { %4271 = vmatmul.mubr.msk.f32.vlgmr.msra.gmra.mrb[4].mxu1 %vm243_vm1, %v1283_v53 }
 0x3a9   :  { %4277 = vmatpush3.msk.msra.mxu1 %vm282_vm3, %v3939_v41  ;;  %4273 = vmatprep.mubr.msk.f32.mxu1 %vm243_vm1, %v1286_v29 }
 0x3ac   :  { %4274 = vmatmul.mubr.msk.f32.gmra.mrb[6].mxu1 %vm243_vm1, %v1288_v57 }
 0x3ad   :  { %4278 = vmatprep.mubr.msk.f32.mxu1 %vm243_vm1, %v1393_v59 }
 0x3b0   :  { %4279 = vmatmul.mubr.msk.f32.vlgmr.msra.gmra.mrb[4].mxu1 %vm243_vm1, %v1395_v62 }
 0x3b1   :  { %4281 = vmatprep.mubr.msk.f32.mxu1 %vm243_vm1, %v1398_v0 }
 0x3b4   :  { %4282 = vmatmul.mubr.msk.f32.gmra.mrb[6].mxu1 %vm243_vm1, %v1400_v1 }
 0x407   :  { %v1122_v20 = vpop.permute.xlu1 %1121  ;;  %v1120_v21 = vpop.permute.xlu0 %1119 }
 0x408   :  { %1133 = vst.msk [vmem:[#allocation3 + $0x8] sm:$0xff] %vm1131_vm5, %v1122_v20  ;;  %1132 = vst.msk [vmem:[#allocation3] sm:$0xff] %vm1131_vm5, %v1120_v21 }
 0x40b   :  { %v1124_v22 = vpop.permute.xlu1 %1123  ;;  %v1126_v23 = vpop.permute.xlu0 %1125 }
 0x40c   :  { %1134 = vst.msk [vmem:[#allocation3 + $0x10] sm:$0xff] %vm1131_vm5, %v1124_v22  ;;  %1135 = vst.msk [vmem:[#allocation3 + $0x18] sm:$0xff] %vm1131_vm5, %v1126_v23 }
 0x483   :  { %v4280_v27 = vpop.f32.mrb[4].mxu1 }
 0x484   :  { %v4500_v28 = vadd.f32 %v4280_v27, %v3926_v26  ;;  %v1480_v30 = vpop.f32.mrb[5].mxu1 }
 0x485   :  { %v4501_v31 = vadd.f32 %v3926_v26, %v1480_v30 }
 0x486   :  { %v1504_v32 = vmax.f32 %v4500_v28, 0.0 }
 0x487   :  { %v1503_v33 = vmax.f32 %v4501_v31, 0.0  ;;  %v4283_v34 = vpop.f32.mrb[6].mxu1 }
 0x488   :  { %v1512_v35 = vsel %vm243_vm1, %v1504_v32, 0.0  ;;  %v4502_v36 = vadd.f32 %v4283_v34, %v3926_v26  ;;  %v1490_v12 = vpop.f32.mrb[7].mxu1 }
 0x489   :  { %v1511_v37 = vsel %vm243_vm1, %v1503_v33, 0.0  ;;  %v4503_v38 = vadd.f32 %v3926_v26, %v1490_v12  ;;  %v3948_v12 = vld [vmem:[%s5494_s8 + $0x2] ss:$0 sm:$0xff] }
 0x48a   :  { %v1513_v39 = vadd.f32 %v1512_v35, %v1511_v37  ;;  %v1506_v13 = vmax.f32 %v4502_v36, 0.0 }
 0x48b   :  { %v1505_v40 = vmax.f32 %v4503_v38, 0.0 }
 0x48c   :  { %v1516_v44 = vsel %vm243_vm1, %v1506_v13, 0.0 }
 0x48d   :  { %v1514_v41 = vsel %vm243_vm1, %v1505_v40, 0.0 }
 0x48e   :  { %v1515_v42 = vadd.f32 %v1514_v41, %v1513_v39 }
 0x490   :  { %v1517_v45 = vadd.f32 %v1516_v44, %v1515_v42 }
 0x492   :  { %v1518_v46 = vrot.slane %v1517_v45, 4 }
 0x494   :  { %v1519_v47 = vadd.f32 %v1518_v46, %v1517_v45 }
 0x496   :  { %v1520_v48 = vrot.slane %v1519_v47, 2 }
 0x498   :  { %v1521_v49 = vadd.f32 %v1520_v48, %v1519_v47 }
 0x49a   :  { %v1522_v50 = vrot.slane %v1521_v49, 1 }
 0x49c   :  { %v1523_v51 = vadd.f32 %v1522_v50, %v1521_v49 }
 0x49e   :  { %v1524_v52 = vmul.f32 0.03125, %v1523_v51 }
 0x4a0   :  { %v1525_v53 = vsub.f32 %v1503_v33, %v1524_v52  ;;  %v1526_v54 = vsub.f32 %v1504_v32, %v1524_v52  ;;  %v1527_v29 = vsub.f32 %v1505_v40, %v1524_v52  ;;  %v1528_v55 = vsub.f32 %v1506_v13, %v1524_v52  ;;  %v3947_v32 = vld [vmem:[%s5493_s7 + $0x2] ss:$0 sm:$0xff] }
 0x4a2   :  { %v1529_v56 = vmul.f32 %v1525_v53, %v1525_v53  ;;  %v1530_v57 = vmul.f32 %v1526_v54, %v1526_v54  ;;  %v1531_v58 = vmul.f32 %v1527_v29, %v1527_v29  ;;  %v1532_v59 = vmul.f32 %v1528_v55, %v1528_v55 }
 0x4a4   :  { %v1533_v60 = vsel %vm243_vm1, %v1529_v56, 0.0  ;;  %v1534_v61 = vsel %vm243_vm1, %v1530_v57, 0.0  ;;  %v1536_v63 = vsel %vm243_vm1, %v1531_v58, 0.0  ;;  %v1538_v1 = vsel %vm243_vm1, %v1532_v59, 0.0 }
 0x4a5   :  { %v1535_v62 = vadd.f32 %v1534_v61, %v1533_v60 }
 0x4a7   :  { %v1537_v0 = vadd.f32 %v1536_v63, %v1535_v62 }
 0x4a9   :  { %v1539_v20 = vadd.f32 %v1538_v1, %v1537_v0 }
 0x4ab   :  { %v1540_v21 = vrot.slane %v1539_v20, 4 }
 0x4ad   :  { %v1541_v22 = vadd.f32 %v1540_v21, %v1539_v20 }
 0x4af   :  { %v1542_v23 = vrot.slane %v1541_v22, 2 }
 0x4b1   :  { %v1543_v24 = vadd.f32 %v1542_v23, %v1541_v22 }
 0x4b3   :  { %v1544_v26 = vrot.slane %v1543_v24, 1 }
 0x4b5   :  { %v1545_v27 = vadd.f32 %v1544_v26, %v1543_v24 }
 0x4b7   :  { %v1546_v28 = vmul.f32 0.03125, %v1545_v27 }
 0x4b9   :  { %v1547_v30 = vadd.f32 1e-05, %v1546_v28 }
 0x4bb   :  { %4596 = vrsqrt.f32 %v1547_v30  ;;  %v3975_v30 = vld [vmem:[%s5491_s5 + $0x30] sm:$0xf] }
 0x4bc   :  { %4308 = vmatprep.subr.msk.mxu1 %vm282_vm3, %v3975_v30 }
 0x4bd   :  { %4309 = vmatpush3.msk.msra.mxu1 %vm282_vm3, %v3975_v30 }
 0x4c5   :  { %v4597_v31 = vpop.eup %4596 }
 0x4c6   :  { %v1551_v33 = vmul.f32 %v4597_v31, %v1527_v29  ;;  %v1550_v34 = vmul.f32 %v4597_v31, %v1526_v54  ;;  %v1549_v35 = vmul.f32 %v4597_v31, %v1525_v53  ;;  %v1552_v36 = vmul.f32 %v4597_v31, %v1528_v55  ;;  %v5130_v31 = vld [vmem:[%s5491_s5 + $0x34] sm:$0xf] }
 0x4c7   :  { %4316 = vmatprep.subr.msk.mxu1 %vm282_vm3, %v5130_v31 }
 0x4c8   :  { %v1560_v37 = vmul.f32 %v3947_v32, %v1550_v34  ;;  %v1559_v38 = vmul.f32 %v3947_v32, %v1549_v35  ;;  %v1561_v39 = vmul.f32 %v3947_v32, %v1551_v33  ;;  %v1562_v13 = vmul.f32 %v3947_v32, %v1552_v36  ;;  %v3950_v32 = vld [vmem:[%s5492_s6 + $0x3] ss:$0 sm:$0xff] }
 0x4ca   :  { %v1570_v40 = vadd.f32 %v3948_v12, %v1560_v37  ;;  %v1569_v41 = vadd.f32 %v3948_v12, %v1559_v38  ;;  %v1571_v42 = vadd.f32 %v3948_v12, %v1561_v39  ;;  %v1572_v44 = vadd.f32 %v3948_v12, %v1562_v13 }
 0x4cc   :  { %1579 = vrot.lane.b32.xlu1 %v1570_v40, %s4648_s29  ;;  %v1607_v45 = vadd.f32 %v5022_v2, %v1570_v40  ;;  %1577 = vrot.lane.b32.xlu0 %v1569_v41, %s4648_s29  ;;  %v1606_v46 = vadd.f32 %v5024_v3, %v1569_v41  ;;  %v1608_v47 = vadd.f32 %v5028_v5, %v1571_v42  ;;  %v3963_v3 = vld [vmem:[%s5491_s5 + $0x2c] sm:$0xf] }
 0x4cd   :  { %v1609_v48 = vadd.f32 %v5026_v4, %v1572_v44 }
 0x4ce   :  { %1611 = vst.msk [vmem:[#allocation2 + $0xa] sm:$0xff] %vm243_vm1, %v1607_v45  ;;  %1610 = vst.msk [vmem:[#allocation2 + $0x2] sm:$0xff] %vm243_vm1, %v1606_v46 }
 0x4cf   :  { %1612 = vst.msk [vmem:[#allocation2 + $0x1a] sm:$0xff] %vm243_vm1, %v1608_v47  ;;  %1613 = vst.msk [vmem:[#allocation2 + $0x22] sm:$0xff] %vm243_vm1, %v1609_v48 }
 0x4d0   :  { %1581 = vrot.lane.b32.xlu1 %v1571_v42, %s4648_s29  ;;  %1583 = vrot.lane.b32.xlu0 %v1572_v44, %s4648_s29 }
 0x4d5   :  { %v1614_v2 = vld [vmem:[#allocation2] sm:$0xff]  ;;  %v1615_v49 = vld [vmem:[#allocation2 + $0x8] sm:$0xff]  ;;  %v1616_v51 = vld [vmem:[#allocation2 + $0x10] sm:$0xf] }
 0x4d6   :  { %4286 = vmatprep.mubr.msk.f32.mxu0 %vm243_vm1, %v1614_v2  ;;  %v1617_v4 = vld [vmem:[#allocation2 + $0x18] sm:$0xff]  ;;  %v1737_v5 = vrot.slane %v1614_v2, 2  ;;  %v1738_v50 = vrot.slane %v1615_v49, 2  ;;  %v1618_v52 = vld [vmem:[#allocation2 + $0x20] sm:$0xff]  ;;  %v1740_v53 = vrot.slane %v1616_v51, 2  ;;  %v1849_v59 = vrot.slane %v1614_v2, 4 }
 0x4d7   :  { %4287 = vmatmul.mubr.msk.f32.vlgmr.msra.gmra.mrb[12].mxu0 %vm243_vm1, %v1615_v49  ;;  %v1742_v29 = vrot.slane %v1617_v4, 2  ;;  %v1743_v55 = vrot.slane %v1618_v52, 2  ;;  %v1619_v56 = vld [vmem:[#allocation2 + $0x28] sm:$0xf]  ;;  %v1850_v60 = vrot.slane %v1615_v49, 4  ;;  %v1852_v62 = vrot.slane %v1616_v51, 4 }
 0x4d8   :  { %4293 = vmatpush3.msk.msra.mxu0 %vm282_vm3, %v5062_v25  ;;  %4289 = vmatprep.mubr.msk.f32.mxu0 %vm243_vm1, %v1617_v4  ;;  %v1739_v54 = vsel %vm377_vm4, %v1737_v5, %v1738_v50  ;;  %v1741_v57 = vsel %vm377_vm4, %v1738_v50, %v1740_v53  ;;  %v1745_v58 = vrot.slane %v1619_v56, 2  ;;  %v1854_v0 = vrot.slane %v1617_v4, 4 }
 0x4d9   :  { %4300 = vmatprep.subr.msk.mxu0 %vm282_vm3, %v3963_v3  ;;  %v1744_v25 = vsel %vm377_vm4, %v1742_v29, %v1743_v55  ;;  %v1851_v63 = vsel %vm282_vm3, %v1849_v59, %v1850_v60  ;;  %v1855_v1 = vrot.slane %v1618_v52, 4  ;;  %v1853_v20 = vsel %vm282_vm3, %v1850_v60, %v1852_v62 }
 0x4da   :  { %v1746_v61 = vsel %vm377_vm4, %v1743_v55, %v1745_v58  ;;  %v1857_v21 = vrot.slane %v1619_v56, 4 }
 0x4db   :  { %4290 = vmatmul.mubr.msk.f32.gmra.mrb[14].mxu0 %vm243_vm1, %v1618_v52  ;;  %v1856_v22 = vsel %vm282_vm3, %v1854_v0, %v1855_v1 }
 0x4dc   :  { %4294 = vmatprep.mubr.msk.f32.mxu0 %vm243_vm1, %v1739_v54  ;;  %v1858_v23 = vsel %vm282_vm3, %v1855_v1, %v1857_v21 }
 0x4df   :  { %4295 = vmatmul.mubr.msk.f32.vlgmr.msra.gmra.mrb[12].mxu0 %vm243_vm1, %v1741_v57 }
 0x4e0   :  { %4301 = vmatpush3.msk.msra.mxu0 %vm282_vm3, %v3963_v3  ;;  %4297 = vmatprep.mubr.msk.f32.mxu0 %vm243_vm1, %v1744_v25 }
 0x4e3   :  { %4298 = vmatmul.mubr.msk.f32.gmra.mrb[14].mxu0 %vm243_vm1, %v1746_v61 }
 0x4e4   :  { %4302 = vmatprep.mubr.msk.f32.mxu0 %vm243_vm1, %v1851_v63 }
 0x4e7   :  { %4303 = vmatmul.mubr.msk.f32.vlgmr.msra.gmra.mrb[12].mxu0 %vm243_vm1, %v1853_v20 }
 0x4e8   :  { %4305 = vmatprep.mubr.msk.f32.mxu0 %vm243_vm1, %v1856_v22 }
 0x4eb   :  { %4306 = vmatmul.mubr.msk.f32.gmra.mrb[14].mxu0 %vm243_vm1, %v1858_v23 }
 0x53e   :  { %v1580_v24 = vpop.permute.xlu1 %1579  ;;  %v1578_v26 = vpop.permute.xlu0 %1577 }
 0x53f   :  { %1591 = vst.msk [vmem:[#allocation3 + $0x8] sm:$0xff] %vm1589_vm6, %v1580_v24  ;;  %1590 = vst.msk [vmem:[#allocation3] sm:$0xff] %vm1589_vm6, %v1578_v26 }
 0x542   :  { %v1582_v27 = vpop.permute.xlu1 %1581  ;;  %v1584_v28 = vpop.permute.xlu0 %1583 }
 0x543   :  { %1592 = vst.msk [vmem:[#allocation3 + $0x10] sm:$0xff] %vm1589_vm6, %v1582_v27  ;;  %1593 = vst.msk [vmem:[#allocation3 + $0x18] sm:$0xff] %vm1589_vm6, %v1584_v28 }
 0x5ba   :  { %v4304_v33 = vpop.f32.mrb[12].mxu0 }
 0x5bb   :  { %v4504_v34 = vadd.f32 %v4304_v33, %v3950_v32  ;;  %v1938_v35 = vpop.f32.mrb[13].mxu0  ;;  %v3971_v33 = vld [vmem:[%s5493_s7 + $0x3] ss:$0 sm:$0xff] }
 0x5bc   :  { %v4505_v36 = vadd.f32 %v3950_v32, %v1938_v35 }
 0x5bd   :  { %v1962_v12 = vmax.f32 %v4504_v34, 0.0 }
 0x5be   :  { %v1961_v37 = vmax.f32 %v4505_v36, 0.0  ;;  %v4307_v38 = vpop.f32.mrb[14].mxu0 }
 0x5bf   :  { %v1970_v39 = vsel %vm243_vm1, %v1962_v12, 0.0  ;;  %v4506_v13 = vadd.f32 %v4307_v38, %v3950_v32  ;;  %v1948_v40 = vpop.f32.mrb[15].mxu0 }
 0x5c0   :  { %v1969_v41 = vsel %vm243_vm1, %v1961_v37, 0.0  ;;  %v4507_v42 = vadd.f32 %v3950_v32, %v1948_v40 }
 0x5c1   :  { %v1971_v44 = vadd.f32 %v1970_v39, %v1969_v41  ;;  %v1964_v45 = vmax.f32 %v4506_v13, 0.0 }
 0x5c2   :  { %v1963_v46 = vmax.f32 %v4507_v42, 0.0 }
 0x5c3   :  { %v1974_v2 = vsel %vm243_vm1, %v1964_v45, 0.0 }
 0x5c4   :  { %v1972_v47 = vsel %vm243_vm1, %v1963_v46, 0.0 }
 0x5c5   :  { %v1973_v48 = vadd.f32 %v1972_v47, %v1971_v44 }
 0x5c7   :  { %v1975_v49 = vadd.f32 %v1974_v2, %v1973_v48 }
 0x5c9   :  { %v1976_v3 = vrot.slane %v1975_v49, 4 }
 0x5cb   :  { %v1977_v4 = vadd.f32 %v1976_v3, %v1975_v49 }
 0x5cd   :  { %v1978_v5 = vrot.slane %v1977_v4, 2 }
 0x5cf   :  { %v1979_v50 = vadd.f32 %v1978_v5, %v1977_v4 }
 0x5d1   :  { %v1980_v51 = vrot.slane %v1979_v50, 1 }
 0x5d3   :  { %v1981_v52 = vadd.f32 %v1980_v51, %v1979_v50 }
 0x5d5   :  { %v1982_v53 = vmul.f32 0.03125, %v1981_v52 }
 0x5d7   :  { %v1983_v54 = vsub.f32 %v1961_v37, %v1982_v53  ;;  %v1984_v29 = vsub.f32 %v1962_v12, %v1982_v53  ;;  %v1985_v55 = vsub.f32 %v1963_v46, %v1982_v53  ;;  %v1986_v56 = vsub.f32 %v1964_v45, %v1982_v53  ;;  %v3972_v37 = vld [vmem:[%s5494_s8 + $0x3] ss:$0 sm:$0xff] }
 0x5d9   :  { %v1987_v57 = vmul.f32 %v1983_v54, %v1983_v54  ;;  %v1988_v58 = vmul.f32 %v1984_v29, %v1984_v29  ;;  %v1989_v25 = vmul.f32 %v1985_v55, %v1985_v55  ;;  %v1990_v59 = vmul.f32 %v1986_v56, %v1986_v56 }
 0x5db   :  { %v1991_v60 = vsel %vm243_vm1, %v1987_v57, 0.0  ;;  %v1992_v61 = vsel %vm243_vm1, %v1988_v58, 0.0  ;;  %v1994_v63 = vsel %vm243_vm1, %v1989_v25, 0.0  ;;  %v1996_v1 = vsel %vm243_vm1, %v1990_v59, 0.0 }
 0x5dc   :  { %v1993_v62 = vadd.f32 %v1992_v61, %v1991_v60 }
 0x5de   :  { %v1995_v0 = vadd.f32 %v1994_v63, %v1993_v62 }
 0x5e0   :  { %v1997_v20 = vadd.f32 %v1996_v1, %v1995_v0 }
 0x5e2   :  { %v1998_v21 = vrot.slane %v1997_v20, 4 }
 0x5e4   :  { %v1999_v22 = vadd.f32 %v1998_v21, %v1997_v20 }
 0x5e6   :  { %v2000_v23 = vrot.slane %v1999_v22, 2 }
 0x5e8   :  { %v2001_v24 = vadd.f32 %v2000_v23, %v1999_v22 }
 0x5ea   :  { %v2002_v26 = vrot.slane %v2001_v24, 1 }
 0x5ec   :  { %v2003_v27 = vadd.f32 %v2002_v26, %v2001_v24  ;;  %v3999_v24 = vld [vmem:[%s5491_s5 + $0x3c] sm:$0xf]  ;;  %v5194_v26 = vld [vmem:[%s5491_s5 + $0x40] sm:$0xf] }
 0x5ed   :  { %4332 = vmatprep.subr.msk.mxu0 %vm282_vm3, %v3999_v24 }
 0x5ee   :  { %v2004_v28 = vmul.f32 0.03125, %v2003_v27  ;;  %4333 = vmatpush3.msk.msra.mxu0 %vm282_vm3, %v3999_v24  ;;  %v3974_v27 = vld [vmem:[%s5492_s6 + $0x4] ss:$0 sm:$0xff] }
 0x5ef   :  { %4340 = vmatprep.subr.msk.mxu0 %vm282_vm3, %v5194_v26 }
 0x5f0   :  { %v2005_v30 = vadd.f32 1e-05, %v2004_v28 }
 0x5f2   :  { %4598 = vrsqrt.f32 %v2005_v30 }
 0x5fc   :  { %v4599_v32 = vpop.eup %4598 }
 0x5fd   :  { %v2009_v34 = vmul.f32 %v4599_v32, %v1985_v55  ;;  %v2008_v35 = vmul.f32 %v4599_v32, %v1984_v29  ;;  %v2007_v36 = vmul.f32 %v4599_v32, %v1983_v54  ;;  %v2010_v12 = vmul.f32 %v4599_v32, %v1986_v56 }
 0x5ff   :  { %v2018_v38 = vmul.f32 %v3971_v33, %v2008_v35  ;;  %v2017_v39 = vmul.f32 %v3971_v33, %v2007_v36  ;;  %v2019_v13 = vmul.f32 %v3971_v33, %v2009_v34  ;;  %v2020_v40 = vmul.f32 %v3971_v33, %v2010_v12 }
 0x601   :  { %v2028_v41 = vadd.f32 %v3972_v37, %v2018_v38  ;;  %v2027_v42 = vadd.f32 %v3972_v37, %v2017_v39  ;;  %v2029_v44 = vadd.f32 %v3972_v37, %v2019_v13  ;;  %v2030_v45 = vadd.f32 %v3972_v37, %v2020_v40 }
 0x603   :  { %2037 = vrot.lane.b32.xlu1 %v2028_v41, %s4649_s25  ;;  %v2065_v46 = vadd.f32 %v5030_v6, %v2028_v41  ;;  %2035 = vrot.lane.b32.xlu0 %v2027_v42, %s4649_s25  ;;  %v2064_v47 = vadd.f32 %v5032_v7, %v2027_v42  ;;  %v2066_v48 = vadd.f32 %v5036_v9, %v2029_v44  ;;  %v3987_v6 = vld [vmem:[%s5491_s5 + $0x38] sm:$0xf] }
 0x604   :  { %v2067_v2 = vadd.f32 %v5034_v8, %v2030_v45 }
 0x605   :  { %2069 = vst.msk [vmem:[#allocation2 + $0xa] sm:$0xff] %vm243_vm1, %v2065_v46  ;;  %2068 = vst.msk [vmem:[#allocation2 + $0x2] sm:$0xff] %vm243_vm1, %v2064_v47 }
 0x606   :  { %2070 = vst.msk [vmem:[#allocation2 + $0x1a] sm:$0xff] %vm243_vm1, %v2066_v48  ;;  %2071 = vst.msk [vmem:[#allocation2 + $0x22] sm:$0xff] %vm243_vm1, %v2067_v2 }
 0x607   :  { %2039 = vrot.lane.b32.xlu1 %v2029_v44, %s4649_s25 }
 0x60b   :  { %2041 = vrot.lane.b32.xlu1 %v2030_v45, %s4649_s25 }
 0x60c   :  { %v2072_v49 = vld [vmem:[#allocation2] sm:$0xff]  ;;  %v2073_v3 = vld [vmem:[#allocation2 + $0x8] sm:$0xff]  ;;  %v2074_v4 = vld [vmem:[#allocation2 + $0x10] sm:$0xf] }
 0x60d   :  { %4310 = vmatprep.mubr.msk.f32.mxu1 %vm243_vm1, %v2072_v49  ;;  %v2075_v7 = vld [vmem:[#allocation2 + $0x18] sm:$0xff]  ;;  %v2195_v8 = vrot.slane %v2072_v49, 2  ;;  %v2196_v9 = vrot.slane %v2073_v3, 2  ;;  %v2076_v5 = vld [vmem:[#allocation2 + $0x20] sm:$0xff]  ;;  %v2198_v50 = vrot.slane %v2074_v4, 2  ;;  %v2307_v56 = vrot.slane %v2072_v49, 4 }
 0x60e   :  { %4311 = vmatmul.mubr.msk.f32.vlgmr.msra.gmra.mrb[8].mxu1 %vm243_vm1, %v2073_v3  ;;  %v2200_v52 = vrot.slane %v2075_v7, 2  ;;  %v2201_v53 = vrot.slane %v2076_v5, 2  ;;  %v2077_v54 = vld [vmem:[#allocation2 + $0x28] sm:$0xf]  ;;  %v2308_v57 = vrot.slane %v2073_v3, 4  ;;  %v2310_v25 = vrot.slane %v2074_v4, 4 }
 0x60f   :  { %4317 = vmatpush3.msk.msra.mxu1 %vm282_vm3, %v5130_v31  ;;  %4313 = vmatprep.mubr.msk.f32.mxu1 %vm243_vm1, %v2075_v7  ;;  %v2197_v51 = vsel %vm377_vm4, %v2195_v8, %v2196_v9  ;;  %v2199_v29 = vsel %vm377_vm4, %v2196_v9, %v2198_v50  ;;  %v2203_v55 = vrot.slane %v2077_v54, 2  ;;  %v2312_v60 = vrot.slane %v2075_v7, 4 }
 0x610   :  { %4324 = vmatprep.subr.msk.mxu1 %vm282_vm3, %v3987_v6  ;;  %v2202_v31 = vsel %vm377_vm4, %v2200_v52, %v2201_v53  ;;  %v2309_v59 = vsel %vm282_vm3, %v2307_v56, %v2308_v57  ;;  %v2313_v61 = vrot.slane %v2076_v5, 4  ;;  %v2311_v62 = vsel %vm282_vm3, %v2308_v57, %v2310_v25 }
 0x611   :  { %v2204_v58 = vsel %vm377_vm4, %v2201_v53, %v2203_v55  ;;  %v2315_v63 = vrot.slane %v2077_v54, 4 }
 0x612   :  { %4314 = vmatmul.mubr.msk.f32.gmra.mrb[10].mxu1 %vm243_vm1, %v2076_v5  ;;  %v2314_v0 = vsel %vm282_vm3, %v2312_v60, %v2313_v61 }
 0x613   :  { %4318 = vmatprep.mubr.msk.f32.mxu1 %vm243_vm1, %v2197_v51  ;;  %v2316_v1 = vsel %vm282_vm3, %v2313_v61, %v2315_v63 }
 0x616   :  { %4319 = vmatmul.mubr.msk.f32.vlgmr.msra.gmra.mrb[8].mxu1 %vm243_vm1, %v2199_v29 }
 0x617   :  { %4325 = vmatpush3.msk.msra.mxu1 %vm282_vm3, %v3987_v6  ;;  %4321 = vmatprep.mubr.msk.f32.mxu1 %vm243_vm1, %v2202_v31 }
 0x61a   :  { %4322 = vmatmul.mubr.msk.f32.gmra.mrb[10].mxu1 %vm243_vm1, %v2204_v58 }
 0x61b   :  { %4326 = vmatprep.mubr.msk.f32.mxu1 %vm243_vm1, %v2309_v59 }
 0x61e   :  { %4327 = vmatmul.mubr.msk.f32.vlgmr.msra.gmra.mrb[8].mxu1 %vm243_vm1, %v2311_v62 }
 0x61f   :  { %4329 = vmatprep.mubr.msk.f32.mxu1 %vm243_vm1, %v2314_v0 }
 0x622   :  { %4330 = vmatmul.mubr.msk.f32.gmra.mrb[10].mxu1 %vm243_vm1, %v2316_v1 }
 0x675   :  { %v2038_v20 = vpop.permute.xlu1 %2037  ;;  %v2036_v21 = vpop.permute.xlu0 %2035 }
 0x676   :  { %2049 = vst.msk [vmem:[#allocation3 + $0x8] sm:$0xff] %vm2047_vm7, %v2038_v20  ;;  %2048 = vst.msk [vmem:[#allocation3] sm:$0xff] %vm2047_vm7, %v2036_v21 }
 0x679   :  { %v2040_v22 = vpop.permute.xlu1 %2039 }
 0x67a   :  { %2050 = vst.msk [vmem:[#allocation3 + $0x10] sm:$0xff] %vm2047_vm7, %v2040_v22  ;;  %v3995_v22 = vld [vmem:[%s5493_s7 + $0x4] ss:$0 sm:$0xff] }
 0x67d   :  { %v2042_v23 = vpop.permute.xlu1 %2041 }
 0x67e   :  { %2051 = vst.msk [vmem:[#allocation3 + $0x18] sm:$0xff] %vm2047_vm7, %v2042_v23 }
 0x6f1   :  { %v4328_v28 = vpop.f32.mrb[8].mxu1 }
 0x6f2   :  { %v4508_v30 = vadd.f32 %v4328_v28, %v3974_v27  ;;  %v2396_v32 = vpop.f32.mrb[9].mxu1 }
 0x6f3   :  { %v4509_v33 = vadd.f32 %v3974_v27, %v2396_v32 }
 0x6f4   :  { %v2420_v34 = vmax.f32 %v4508_v30, 0.0  ;;  %v3996_v30 = vld [vmem:[%s5494_s8 + $0x4] ss:$0 sm:$0xff] }
 0x6f5   :  { %v2419_v35 = vmax.f32 %v4509_v33, 0.0  ;;  %v4331_v36 = vpop.f32.mrb[10].mxu1 }
 0x6f6   :  { %v2428_v12 = vsel %vm243_vm1, %v2420_v34, 0.0  ;;  %v4510_v37 = vadd.f32 %v4331_v36, %v3974_v27  ;;  %v2406_v38 = vpop.f32.mrb[11].mxu1 }
 0x6f7   :  { %v2427_v39 = vsel %vm243_vm1, %v2419_v35, 0.0  ;;  %v4511_v13 = vadd.f32 %v3974_v27, %v2406_v38 }
 0x6f8   :  { %v2429_v40 = vadd.f32 %v2428_v12, %v2427_v39  ;;  %v2422_v41 = vmax.f32 %v4510_v37, 0.0 }
 0x6f9   :  { %v2421_v42 = vmax.f32 %v4511_v13, 0.0 }
 0x6fa   :  { %v2432_v46 = vsel %vm243_vm1, %v2422_v41, 0.0 }
 0x6fb   :  { %v2430_v44 = vsel %vm243_vm1, %v2421_v42, 0.0 }
 0x6fc   :  { %v2431_v45 = vadd.f32 %v2430_v44, %v2429_v40 }
 0x6fe   :  { %v2433_v47 = vadd.f32 %v2432_v46, %v2431_v45 }
 0x700   :  { %v2434_v48 = vrot.slane %v2433_v47, 4 }
 0x702   :  { %v2435_v2 = vadd.f32 %v2434_v48, %v2433_v47 }
 0x704   :  { %v2436_v49 = vrot.slane %v2435_v2, 2 }
 0x706   :  { %v2437_v3 = vadd.f32 %v2436_v49, %v2435_v2 }
 0x708   :  { %v2438_v6 = vrot.slane %v2437_v3, 1 }
 0x70a   :  { %v2439_v7 = vadd.f32 %v2438_v6, %v2437_v3 }
 0x70c   :  { %v2440_v8 = vmul.f32 0.03125, %v2439_v7 }
 0x70e   :  { %v2441_v9 = vsub.f32 %v2419_v35, %v2440_v8  ;;  %v2442_v4 = vsub.f32 %v2420_v34, %v2440_v8  ;;  %v2443_v5 = vsub.f32 %v2421_v42, %v2440_v8  ;;  %v2444_v50 = vsub.f32 %v2422_v41, %v2440_v8 }
 0x710   :  { %v2445_v51 = vmul.f32 %v2441_v9, %v2441_v9  ;;  %v2446_v52 = vmul.f32 %v2442_v4, %v2442_v4  ;;  %v2447_v53 = vmul.f32 %v2443_v5, %v2443_v5  ;;  %v2448_v54 = vmul.f32 %v2444_v50, %v2444_v50 }
 0x712   :  { %v2449_v29 = vsel %vm243_vm1, %v2445_v51, 0.0  ;;  %v2450_v55 = vsel %vm243_vm1, %v2446_v52, 0.0  ;;  %v2452_v56 = vsel %vm243_vm1, %v2447_v53, 0.0  ;;  %v2454_v58 = vsel %vm243_vm1, %v2448_v54, 0.0 }
 0x713   :  { %v2451_v31 = vadd.f32 %v2450_v55, %v2449_v29 }
 0x715   :  { %v2453_v57 = vadd.f32 %v2452_v56, %v2451_v31 }
 0x717   :  { %v2455_v25 = vadd.f32 %v2454_v58, %v2453_v57 }
 0x719   :  { %v2456_v59 = vrot.slane %v2455_v25, 4 }
 0x71b   :  { %v2457_v60 = vadd.f32 %v2456_v59, %v2455_v25  ;;  %v4023_v25 = vld [vmem:[%s5491_s5 + $0x48] sm:$0xf]  ;;  %v5258_v59 = vld [vmem:[%s5491_s5 + $0x4c] sm:$0xf] }
 0x71c   :  { %4356 = vmatprep.subr.msk.mxu1 %vm282_vm3, %v4023_v25 }
 0x71d   :  { %v2458_v61 = vrot.slane %v2457_v60, 2  ;;  %4357 = vmatpush3.msk.msra.mxu1 %vm282_vm3, %v4023_v25 }
 0x71e   :  { %4364 = vmatprep.subr.msk.mxu1 %vm282_vm3, %v5258_v59 }
 0x71f   :  { %v2459_v62 = vadd.f32 %v2458_v61, %v2457_v60  ;;  %v3998_v60 = vld [vmem:[%s5492_s6 + $0x5] ss:$0 sm:$0xff] }
 0x721   :  { %v2460_v63 = vrot.slane %v2459_v62, 1 }
 0x723   :  { %v2461_v0 = vadd.f32 %v2460_v63, %v2459_v62 }
 0x725   :  { %v2462_v1 = vmul.f32 0.03125, %v2461_v0 }
 0x727   :  { %v2463_v20 = vadd.f32 1e-05, %v2462_v1 }
 0x729   :  { %4600 = vrsqrt.f32 %v2463_v20 }
 0x733   :  { %v4601_v21 = vpop.eup %4600 }
 0x734   :  { %v2467_v23 = vmul.f32 %v4601_v21, %v2443_v5  ;;  %v2468_v24 = vmul.f32 %v4601_v21, %v2444_v50  ;;  %v2465_v27 = vmul.f32 %v4601_v21, %v2441_v9  ;;  %v2466_v28 = vmul.f32 %v4601_v21, %v2442_v4 }
 0x736   :  { %v2478_v32 = vmul.f32 %v3995_v22, %v2468_v24  ;;  %v2475_v33 = vmul.f32 %v3995_v22, %v2465_v27  ;;  %v2476_v34 = vmul.f32 %v3995_v22, %v2466_v28  ;;  %v2477_v35 = vmul.f32 %v3995_v22, %v2467_v23 }
 0x738   :  { %v2488_v36 = vadd.f32 %v3996_v30, %v2478_v32  ;;  %v2485_v12 = vadd.f32 %v3996_v30, %v2475_v33  ;;  %v2486_v37 = vadd.f32 %v3996_v30, %v2476_v34  ;;  %v2487_v38 = vadd.f32 %v3996_v30, %v2477_v35 }
 0x73a   :  { %2499 = vrot.lane.b32.xlu1 %v2488_v36, %s4650_s3  ;;  %v2525_v39 = vadd.f32 %v5042_v15, %v2488_v36  ;;  %2493 = vrot.lane.b32.xlu0 %v2485_v12, %s4650_s3  ;;  %v2522_v13 = vadd.f32 %v5040_v14, %v2485_v12  ;;  %v2523_v40 = vadd.f32 %v5038_v11, %v2486_v37  ;;  %v4011_v11 = vld [vmem:[%s5491_s5 + $0x44] sm:$0xf] }
 0x73b   :  { %v2524_v41 = vadd.f32 %v5044_v16, %v2487_v38 }
 0x73c   :  { %2529 = vst.msk [vmem:[#allocation2 + $0x22] sm:$0xff] %vm243_vm1, %v2525_v39  ;;  %2526 = vst.msk [vmem:[#allocation2 + $0x2] sm:$0xff] %vm243_vm1, %v2522_v13 }
 0x73d   :  { %2527 = vst.msk [vmem:[#allocation2 + $0xa] sm:$0xff] %vm243_vm1, %v2523_v40  ;;  %2528 = vst.msk [vmem:[#allocation2 + $0x1a] sm:$0xff] %vm243_vm1, %v2524_v41 }
 0x73e   :  { %2495 = vrot.lane.b32.xlu0 %v2486_v37, %s4650_s3 }
 0x742   :  { %2497 = vrot.lane.b32.xlu0 %v2487_v38, %s4650_s3 }
 0x743   :  { %v2530_v42 = vld [vmem:[#allocation2] sm:$0xff]  ;;  %v2535_v3 = vld [vmem:[#allocation2 + $0x28] sm:$0xf] }
 0x744   :  { %v2531_v44 = vld [vmem:[#allocation2 + $0x8] sm:$0xff]  ;;  %4334 = vmatprep.mubr.msk.f32.mxu0 %vm243_vm1, %v2530_v42  ;;  %v2653_v14 = vrot.slane %v2530_v42, 2  ;;  %v2533_v15 = vld [vmem:[#allocation2 + $0x18] sm:$0xff]  ;;  %v2532_v45 = vld [vmem:[#allocation2 + $0x10] sm:$0xf]  ;;  %v2661_v7 = vrot.slane %v2535_v3, 2 }
 0x745   :  { %4335 = vmatmul.mubr.msk.f32.vlgmr.msra.gmra.mrb[16].mxu0 %vm243_vm1, %v2531_v44  ;;  %v2654_v16 = vrot.slane %v2531_v44, 2  ;;  %v2534_v46 = vld [vmem:[#allocation2 + $0x20] sm:$0xff]  ;;  %v2656_v47 = vrot.slane %v2532_v45, 2  ;;  %v2658_v48 = vrot.slane %v2533_v15, 2  ;;  %v2765_v8 = vrot.slane %v2530_v42, 4 }
 0x746   :  { %4341 = vmatpush3.msk.msra.mxu0 %vm282_vm3, %v5194_v26  ;;  %4337 = vmatprep.mubr.msk.f32.mxu0 %vm243_vm1, %v2533_v15  ;;  %v2659_v49 = vrot.slane %v2534_v46, 2  ;;  %v2766_v9 = vrot.slane %v2531_v44, 4  ;;  %v2768_v5 = vrot.slane %v2532_v45, 4  ;;  %v2770_v50 = vrot.slane %v2533_v15, 4 }
 0x747   :  { %4348 = vmatprep.subr.msk.mxu0 %vm282_vm3, %v4011_v11  ;;  %v2655_v2 = vsel %vm377_vm4, %v2653_v14, %v2654_v16  ;;  %v2657_v6 = vsel %vm377_vm4, %v2654_v16, %v2656_v47  ;;  %v2771_v52 = vrot.slane %v2534_v46, 4  ;;  %v2773_v54 = vrot.slane %v2535_v3, 4 }
 0x748   :  { %v2660_v26 = vsel %vm377_vm4, %v2658_v48, %v2659_v49  ;;  %v2662_v4 = vsel %vm377_vm4, %v2659_v49, %v2661_v7  ;;  %v2767_v51 = vsel %vm282_vm3, %v2765_v8, %v2766_v9  ;;  %v2769_v53 = vsel %vm282_vm3, %v2766_v9, %v2768_v5 }
 0x749   :  { %4338 = vmatmul.mubr.msk.f32.gmra.mrb[18].mxu0 %vm243_vm1, %v2534_v46  ;;  %v2772_v29 = vsel %vm282_vm3, %v2770_v50, %v2771_v52  ;;  %v2774_v55 = vsel %vm282_vm3, %v2771_v52, %v2773_v54 }
 0x74a   :  { %4342 = vmatprep.mubr.msk.f32.mxu0 %vm243_vm1, %v2655_v2 }
 0x74d   :  { %4343 = vmatmul.mubr.msk.f32.vlgmr.msra.gmra.mrb[16].mxu0 %vm243_vm1, %v2657_v6 }
 0x74e   :  { %4349 = vmatpush3.msk.msra.mxu0 %vm282_vm3, %v4011_v11  ;;  %4345 = vmatprep.mubr.msk.f32.mxu0 %vm243_vm1, %v2660_v26 }
 0x751   :  { %4346 = vmatmul.mubr.msk.f32.gmra.mrb[18].mxu0 %vm243_vm1, %v2662_v4 }
 0x752   :  { %4350 = vmatprep.mubr.msk.f32.mxu0 %vm243_vm1, %v2767_v51 }
 0x755   :  { %4351 = vmatmul.mubr.msk.f32.vlgmr.msra.gmra.mrb[16].mxu0 %vm243_vm1, %v2769_v53 }
 0x756   :  { %4353 = vmatprep.mubr.msk.f32.mxu0 %vm243_vm1, %v2772_v29  ;;  %v4019_v29 = vld [vmem:[%s5493_s7 + $0x5] ss:$0 sm:$0xff] }
 0x759   :  { %4354 = vmatmul.mubr.msk.f32.gmra.mrb[18].mxu0 %vm243_vm1, %v2774_v55 }
 0x7ac   :  { %v2500_v31 = vpop.permute.xlu1 %2499  ;;  %v2494_v56 = vpop.permute.xlu0 %2493 }
 0x7ad   :  { %2509 = vst.msk [vmem:[#allocation3 + $0x18] sm:$0xff] %vm2505_vm8, %v2500_v31  ;;  %2506 = vst.msk [vmem:[#allocation3] sm:$0xff] %vm2505_vm8, %v2494_v56 }
 0x7b0   :  { %v2496_v57 = vpop.permute.xlu0 %2495 }
 0x7b1   :  { %2507 = vst.msk [vmem:[#allocation3 + $0x8] sm:$0xff] %vm2505_vm8, %v2496_v57 }
 0x7b4   :  { %v2498_v58 = vpop.permute.xlu0 %2497 }
 0x7b5   :  { %2508 = vst.msk [vmem:[#allocation3 + $0x10] sm:$0xff] %vm2505_vm8, %v2498_v58  ;;  %v4020_v58 = vld [vmem:[%s5494_s8 + $0x5] ss:$0 sm:$0xff] }
 0x828   :  { %v4352_v61 = vpop.f32.mrb[16].mxu0 }
 0x829   :  { %v4512_v62 = vadd.f32 %v4352_v61, %v3998_v60  ;;  %v2854_v63 = vpop.f32.mrb[17].mxu0 }
 0x82a   :  { %v4513_v0 = vadd.f32 %v3998_v60, %v2854_v63 }
 0x82b   :  { %v2878_v1 = vmax.f32 %v4512_v62, 0.0 }
 0x82c   :  { %v2877_v20 = vmax.f32 %v4513_v0, 0.0  ;;  %v4355_v21 = vpop.f32.mrb[18].mxu0 }
 0x82d   :  { %v2886_v22 = vsel %vm243_vm1, %v2878_v1, 0.0  ;;  %v4514_v23 = vadd.f32 %v4355_v21, %v3998_v60  ;;  %v2864_v24 = vpop.f32.mrb[19].mxu0 }
 0x82e   :  { %v2885_v27 = vsel %vm243_vm1, %v2877_v20, 0.0  ;;  %v4515_v28 = vadd.f32 %v3998_v60, %v2864_v24 }
 0x82f   :  { %v2887_v30 = vadd.f32 %v2886_v22, %v2885_v27  ;;  %v2880_v32 = vmax.f32 %v4514_v23, 0.0 }
 0x830   :  { %v2879_v33 = vmax.f32 %v4515_v28, 0.0 }
 0x831   :  { %v2890_v36 = vsel %vm243_vm1, %v2880_v32, 0.0 }
 0x832   :  { %v2888_v34 = vsel %vm243_vm1, %v2879_v33, 0.0 }
 0x833   :  { %v2889_v35 = vadd.f32 %v2888_v34, %v2887_v30 }
 0x835   :  { %v2891_v12 = vadd.f32 %v2890_v36, %v2889_v35 }
 0x837   :  { %v2892_v37 = vrot.slane %v2891_v12, 4 }
 0x839   :  { %v2893_v38 = vadd.f32 %v2892_v37, %v2891_v12 }
 0x83b   :  { %v2894_v39 = vrot.slane %v2893_v38, 2 }
 0x83d   :  { %v2895_v13 = vadd.f32 %v2894_v39, %v2893_v38 }
 0x83f   :  { %v2896_v40 = vrot.slane %v2895_v13, 1 }
 0x841   :  { %v2897_v41 = vadd.f32 %v2896_v40, %v2895_v13 }
 0x843   :  { %v2898_v42 = vmul.f32 0.03125, %v2897_v41 }
 0x845   :  { %v2899_v44 = vsub.f32 %v2877_v20, %v2898_v42  ;;  %v2900_v11 = vsub.f32 %v2878_v1, %v2898_v42  ;;  %v2901_v14 = vsub.f32 %v2879_v33, %v2898_v42  ;;  %v2902_v15 = vsub.f32 %v2880_v32, %v2898_v42 }
 0x847   :  { %v2903_v16 = vmul.f32 %v2899_v44, %v2899_v44  ;;  %v2904_v45 = vmul.f32 %v2900_v11, %v2900_v11  ;;  %v2905_v46 = vmul.f32 %v2901_v14, %v2901_v14  ;;  %v2906_v47 = vmul.f32 %v2902_v15, %v2902_v15 }
 0x849   :  { %v2907_v48 = vsel %vm243_vm1, %v2903_v16, 0.0  ;;  %v2908_v2 = vsel %vm243_vm1, %v2904_v45, 0.0  ;;  %v2910_v3 = vsel %vm243_vm1, %v2905_v46, 0.0  ;;  %v2912_v7 = vsel %vm243_vm1, %v2906_v47, 0.0 }
 0x84a   :  { %v2909_v49 = vadd.f32 %v2908_v2, %v2907_v48  ;;  %v4022_v2 = vld [vmem:[%s5492_s6 + $0x6] ss:$0 sm:$0xff] }
 0x84c   :  { %v2911_v6 = vadd.f32 %v2910_v3, %v2909_v49 }
 0x84e   :  { %v2913_v8 = vadd.f32 %v2912_v7, %v2911_v6 }
 0x850   :  { %v2914_v26 = vrot.slane %v2913_v8, 4 }
 0x852   :  { %v2915_v9 = vadd.f32 %v2914_v26, %v2913_v8 }
 0x854   :  { %v2916_v4 = vrot.slane %v2915_v9, 2 }
 0x856   :  { %v2917_v5 = vadd.f32 %v2916_v4, %v2915_v9 }
 0x858   :  { %v2918_v50 = vrot.slane %v2917_v5, 1 }
 0x85a   :  { %v2919_v51 = vadd.f32 %v2918_v50, %v2917_v5 }
 0x85c   :  { %v2920_v52 = vmul.f32 0.03125, %v2919_v51 }
 0x85e   :  { %v2921_v53 = vadd.f32 1e-05, %v2920_v52 }
 0x860   :  { %4602 = vrsqrt.f32 %v2921_v53 }
 0x86a   :  { %v4603_v54 = vpop.eup %4602 }
 0x86b   :  { %v2925_v55 = vmul.f32 %v4603_v54, %v2901_v14  ;;  %v2924_v31 = vmul.f32 %v4603_v54, %v2900_v11  ;;  %v2926_v56 = vmul.f32 %v4603_v54, %v2902_v15  ;;  %v2923_v57 = vmul.f32 %v4603_v54, %v2899_v44 }
 0x86d   :  { %v2934_v25 = vmul.f32 %v4019_v29, %v2924_v31  ;;  %v2936_v60 = vmul.f32 %v4019_v29, %v2926_v56  ;;  %v2933_v61 = vmul.f32 %v4019_v29, %v2923_v57  ;;  %v2935_v62 = vmul.f32 %v4019_v29, %v2925_v55 }
 0x86f   :  { %v2944_v63 = vadd.f32 %v4020_v58, %v2934_v25  ;;  %v5279_v0 = vadd.f32 %v4020_v58, %v2936_v60  ;;  %v2943_v1 = vadd.f32 %v4020_v58, %v2933_v61  ;;  %v2945_v20 = vadd.f32 %v4020_v58, %v2935_v62 }
 0x871   :  { %v2983_v21 = vadd.f32 %v5050_v18, %v5279_v0  ;;  %2953 = vrot.lane.b32.xlu0 %v2944_v63, %s4651_s21  ;;  %v2981_v22 = vadd.f32 %v5046_v43, %v2944_v63  ;;  %2951 = vrot.lane.b32.xlu1 %v2943_v1, %s4651_s21  ;;  %v2980_v23 = vadd.f32 %v5048_v17, %v2943_v1  ;;  %v4035_v43 = vld [vmem:[%s5491_s5 + $0x50] sm:$0xf] }
 0x872   :  { %v2982_v24 = vadd.f32 %v5052_v19, %v2945_v20 }
 0x873   :  { %2985 = vst.msk [vmem:[#allocation2 + $0xa] sm:$0xff] %vm243_vm1, %v2981_v22  ;;  %2987 = vst.msk [vmem:[#allocation2 + $0x22] sm:$0xff] %vm243_vm1, %v2983_v21 }
 0x874   :  { %2984 = vst.msk [vmem:[#allocation2 + $0x2] sm:$0xff] %vm243_vm1, %v2980_v23  ;;  %2986 = vst.msk [vmem:[#allocation2 + $0x1a] sm:$0xff] %vm243_vm1, %v2982_v24 }
 0x875   :  { %2955 = vrot.lane.b32.xlu0 %v2945_v20, %s4651_s21 }
 0x87a   :  { %v2990_v30 = vld [vmem:[#allocation2 + $0x10] sm:$0xf]  ;;  %v2993_v12 = vld [vmem:[#allocation2 + $0x28] sm:$0xf] }
 0x87b   :  { %v2988_v18 = vld [vmem:[#allocation2] sm:$0xff]  ;;  %v2989_v27 = vld [vmem:[#allocation2 + $0x8] sm:$0xff]  ;;  %v2991_v19 = vld [vmem:[#allocation2 + $0x18] sm:$0xff]  ;;  %v3114_v33 = vrot.slane %v2990_v30, 2  ;;  %v3119_v38 = vrot.slane %v2993_v12, 2  ;;  %v3226_v41 = vrot.slane %v2990_v30, 4 }
 0x87c   :  { %4358 = vmatprep.mubr.msk.f32.mxu1 %vm243_vm1, %v2988_v18  ;;  %v3111_v17 = vrot.slane %v2988_v18, 2  ;;  %v3112_v28 = vrot.slane %v2989_v27, 2  ;;  %v2992_v32 = vld [vmem:[#allocation2 + $0x20] sm:$0xff]  ;;  %v3116_v34 = vrot.slane %v2991_v19, 2  ;;  %v3223_v39 = vrot.slane %v2988_v18, 4 }
 0x87d   :  { %4359 = vmatmul.mubr.msk.f32.vlgmr.msra.gmra.mrb[12].mxu1 %vm243_vm1, %v2989_v27  ;;  %v3117_v35 = vrot.slane %v2992_v32, 2  ;;  %v3224_v13 = vrot.slane %v2989_v27, 4  ;;  %v3228_v42 = vrot.slane %v2991_v19, 4  ;;  %v3229_v44 = vrot.slane %v2992_v32, 4 }
 0x87e   :  { %4365 = vmatpush3.msk.msra.mxu1 %vm282_vm3, %v5258_v59  ;;  %4361 = vmatprep.mubr.msk.f32.mxu1 %vm243_vm1, %v2991_v19  ;;  %v3113_v36 = vsel %vm377_vm4, %v3111_v17, %v3112_v28  ;;  %v3115_v37 = vsel %vm377_vm4, %v3112_v28, %v3114_v33  ;;  %v3231_v15 = vrot.slane %v2993_v12, 4 }
 0x87f   :  { %4372 = vmatprep.subr.msk.mxu1 %vm282_vm3, %v4035_v43  ;;  %v3118_v59 = vsel %vm377_vm4, %v3116_v34, %v3117_v35  ;;  %v3120_v40 = vsel %vm377_vm4, %v3117_v35, %v3119_v38  ;;  %v3225_v11 = vsel %vm282_vm3, %v3223_v39, %v3224_v13  ;;  %v3227_v14 = vsel %vm282_vm3, %v3224_v13, %v3226_v41  ;;  %v3431_v41 = vld [vmem:[%s5495_s9 + $0x8] sm:$0xff] }
 0x880   :  { %v3230_v16 = vsel %vm282_vm3, %v3228_v42, %v3229_v44  ;;  %v3232_v45 = vsel %vm282_vm3, %v3229_v44, %v3231_v15  ;;  %v3432_v44 = vld [vmem:[%s5495_s9 + $0x10] sm:$0xff] }
 0x881   :  { %4362 = vmatmul.mubr.msk.f32.gmra.mrb[14].mxu1 %vm243_vm1, %v2992_v32 }
 0x882   :  { %4366 = vmatprep.mubr.msk.f32.mxu1 %vm243_vm1, %v3113_v36 }
 0x885   :  { %4367 = vmatmul.mubr.msk.f32.vlgmr.msra.gmra.mrb[12].mxu1 %vm243_vm1, %v3115_v37 }
 0x886   :  { %4373 = vmatpush3.msk.msra.mxu1 %vm282_vm3, %v4035_v43  ;;  %4369 = vmatprep.mubr.msk.f32.mxu1 %vm243_vm1, %v3118_v59 }
 0x889   :  { %4370 = vmatmul.mubr.msk.f32.gmra.mrb[14].mxu1 %vm243_vm1, %v3120_v40  ;;  %v3430_v40 = vld [vmem:[%s5495_s9] sm:$0xff] }
 0x88a   :  { %4374 = vmatprep.mubr.msk.f32.mxu1 %vm243_vm1, %v3225_v11  ;;  %v4448_v42 = vpack.c.bf16 %v3431_v41, %v3430_v40  ;;  %v3433_v11 = vld [vmem:[%s5495_s9 + $0x18] sm:$0xff]  ;;  %s4652_s9 = smov 24  }
 0x88c   :  { %4449 = vmatprep.subr.bf16.mxu0 %v4448_v42 }
 0x88d   :  { %4375 = vmatmul.mubr.msk.f32.vlgmr.msra.gmra.mrb[12].mxu1 %vm243_vm1, %v3227_v14  ;;  %4451 = vmatpush3.bf16.msra.mxu0 %v4448_v42  ;;  %v4452_v14 = vpack.c.bf16 %v3433_v11, %v3432_v44 }
 0x88e   :  { %4377 = vmatprep.mubr.msk.f32.mxu1 %vm243_vm1, %v3230_v16  ;;  %v4043_v16 = vld [vmem:[%s5493_s7 + $0x6] ss:$0 sm:$0xff] }
 0x88f   :  { %4453 = vmatprep.subr.bf16.mxu0 %v4452_v14 }
 0x891   :  { %4378 = vmatmul.mubr.msk.f32.gmra.mrb[14].mxu1 %vm243_vm1, %v3232_v45  ;;  %4455 = vmatpush3.bf16.msra.mxu0 %v4452_v14 }
 0x892   :  { %4437 = vmatprep.mubr.msk.f32.mxu1 %vm4654_vm11, %v4640_v10 }
 0x8e3   :  { %v2954_v46 = vpop.permute.xlu0 %2953  ;;  %v2952_v47 = vpop.permute.xlu1 %2951 }
 0x8e4   :  { %2965 = vst.msk [vmem:[#allocation3 + $0x8] sm:$0xff] %vm2963_vm9, %v2954_v46  ;;  %2964 = vst.msk [vmem:[#allocation3] sm:$0xff] %vm2963_vm9, %v2952_v47 }
 0x8e7   :  { %v2956_v48 = vpop.permute.xlu0 %2955 }
 0x8e8   :  { %2966 = vst.msk [vmem:[#allocation3 + $0x10] sm:$0xff] %vm2963_vm9, %v2956_v48 }
 0x960   :  { %v4376_v49 = vpop.f32.mrb[12].mxu1 }
 0x961   :  { %v4516_v3 = vadd.f32 %v4376_v49, %v4022_v2  ;;  %v3312_v6 = vpop.f32.mrb[13].mxu1 }
 0x962   :  { %v4517_v7 = vadd.f32 %v4022_v2, %v3312_v6 }
 0x963   :  { %v3336_v8 = vmax.f32 %v4516_v3, 0.0 }
 0x964   :  { %v3335_v26 = vmax.f32 %v4517_v7, 0.0  ;;  %v4379_v9 = vpop.f32.mrb[14].mxu1 }
 0x965   :  { %v3344_v4 = vsel %vm243_vm1, %v3336_v8, 0.0  ;;  %v4518_v5 = vadd.f32 %v4379_v9, %v4022_v2  ;;  %v3322_v50 = vpop.f32.mrb[15].mxu1 }
 0x966   :  { %v3343_v51 = vsel %vm243_vm1, %v3335_v26, 0.0  ;;  %v4519_v52 = vadd.f32 %v4022_v2, %v3322_v50  ;;  %v4044_v2 = vld [vmem:[%s5494_s8 + $0x6] ss:$0 sm:$0xff] }
 0x967   :  { %v3345_v53 = vadd.f32 %v3344_v4, %v3343_v51  ;;  %v3338_v54 = vmax.f32 %v4518_v5, 0.0 }
 0x968   :  { %v3337_v29 = vmax.f32 %v4519_v52, 0.0 }
 0x969   :  { %v3348_v56 = vsel %vm243_vm1, %v3338_v54, 0.0 }
 0x96a   :  { %v3346_v55 = vsel %vm243_vm1, %v3337_v29, 0.0 }
 0x96b   :  { %v3347_v31 = vadd.f32 %v3346_v55, %v3345_v53 }
 0x96d   :  { %v3349_v57 = vadd.f32 %v3348_v56, %v3347_v31  ;;  %v3627_v31 = vld [vmem:[%s5499_s13] sm:$0xff]  ;;  %v3628_v56 = vld [vmem:[%s5499_s13 + $0x8] sm:$0xff] }
 0x96f   :  { %v3350_v58 = vrot.slane %v3349_v57, 4 }
 0x971   :  { %v3351_v25 = vadd.f32 %v3350_v58, %v3349_v57  ;;  %v3629_v57 = vld [vmem:[%s5499_s13 + $0x10] sm:$0xff]  ;;  %v4653_v58 = vmov 0.0|0.0  }
 0x972   :  { %4456 = vmatprep.subr.bf16.mxu0 %v4653_v58  ;;  %4462 = vmatprep.subr.bf16.mxu1 %v4653_v58 }
 0x973   :  { %v3352_v60 = vrot.slane %v3351_v25, 2 }
 0x975   :  { %v3353_v61 = vadd.f32 %v3352_v60, %v3351_v25  ;;  %v4457_v25 = vpack.c.bf16 %v3628_v56, %v3627_v31  ;;  %v3630_v60 = vld [vmem:[%s5499_s13 + $0x18] sm:$0xff] }
 0x977   :  { %v3354_v62 = vrot.slane %v3353_v61, 1 }
 0x979   :  { %v3355_v63 = vadd.f32 %v3354_v62, %v3353_v61  ;;  %v4460_v61 = vpack.c.bf16 %v3630_v60, %v3629_v57  ;;  %v3715_v62 = vld [vmem:[%s5501_s15] sm:$0xff] }
 0x97b   :  { %v3356_v1 = vmul.f32 0.03125, %v3355_v63  ;;  %v3716_v63 = vld [vmem:[%s5501_s15 + $0x8] sm:$0xff] }
 0x97d   :  { %v3357_v20 = vsub.f32 %v3335_v26, %v3356_v1  ;;  %v3358_v21 = vsub.f32 %v3336_v8, %v3356_v1  ;;  %v3359_v22 = vsub.f32 %v3337_v29, %v3356_v1  ;;  %v3360_v23 = vsub.f32 %v3338_v54, %v3356_v1  ;;  %v3717_v1 = vld [vmem:[%s5501_s15 + $0x10] sm:$0xff] }
 0x97f   :  { %v3361_v24 = vmul.f32 %v3357_v20, %v3357_v20  ;;  %v3362_v18 = vmul.f32 %v3358_v21, %v3358_v21  ;;  %v3363_v27 = vmul.f32 %v3359_v22, %v3359_v22  ;;  %v3364_v43 = vmul.f32 %v3360_v23, %v3360_v23 }
 0x981   :  { %v3365_v17 = vsel %vm243_vm1, %v3361_v24, 0.0  ;;  %v3366_v19 = vsel %vm243_vm1, %v3362_v18, 0.0  ;;  %v3368_v30 = vsel %vm243_vm1, %v3363_v27, 0.0  ;;  %v3370_v33 = vsel %vm243_vm1, %v3364_v43, 0.0  ;;  %v3721_v18 = vld [vmem:[%s5501_s15 + $0x30] sm:$0xff]  ;;  %v3722_v27 = vld [vmem:[%s5501_s15 + $0x38] sm:$0xff] }
 0x982   :  { %v3367_v28 = vadd.f32 %v3366_v19, %v3365_v17  ;;  %v4472_v43 = vpack.c.bf16 %v3722_v27, %v3721_v18  ;;  %v3723_v17 = vld [vmem:[%s5501_s15 + $0x40] sm:$0xff]  ;;  %v3724_v19 = vld [vmem:[%s5501_s15 + $0x48] sm:$0xff] }
 0x984   :  { %v3369_v32 = vadd.f32 %v3368_v30, %v3367_v28  ;;  %v4475_v28 = vpack.c.bf16 %v3724_v19, %v3723_v17  ;;  %v3725_v30 = vld [vmem:[%s5501_s15 + $0x50] sm:$0xff]  ;;  %v4051_v19 = vld [vmem:[%s5498_s12] ss:$0 sm:$0xff] }
 0x986   :  { %v3371_v34 = vadd.f32 %v3370_v33, %v3369_v32  ;;  %v3726_v32 = vld [vmem:[%s5501_s15 + $0x58] sm:$0xff] }
 0x987   :  { %v4478_v33 = vpack.c.bf16 %v3726_v32, %v3725_v30 }
 0x988   :  { %v3372_v35 = vrot.slane %v3371_v34, 4 }
 0x98a   :  { %v3373_v36 = vadd.f32 %v3372_v35, %v3371_v34  ;;  %v3727_v34 = vld [vmem:[%s5501_s15 + $0x60] sm:$0xff]  ;;  %v3728_v35 = vld [vmem:[%s5501_s15 + $0x68] sm:$0xff] }
 0x98c   :  { %v3374_v12 = vrot.slane %v3373_v36, 2 }
 0x98e   :  { %v3375_v37 = vadd.f32 %v3374_v12, %v3373_v36  ;;  %v4481_v36 = vpack.c.bf16 %v3728_v35, %v3727_v34  ;;  %v4045_v12 = vld [vmem:[%s5496_s10] ss:$0 sm:$0xff] }
 0x990   :  { %v3376_v38 = vrot.slane %v3375_v37, 1 }
 0x992   :  { %v3377_v39 = vadd.f32 %v3376_v38, %v3375_v37 }
 0x994   :  { %v3378_v59 = vmul.f32 0.03125, %v3377_v39 }
 0x996   :  { %v3379_v13 = vadd.f32 1e-05, %v3378_v59 }
 0x998   :  { %4604 = vrsqrt.f32 %v3379_v13 }
 0x9a2   :  { %v4605_v15 = vpop.eup %4604 }
 0x9a3   :  { %v3383_v45 = vmul.f32 %v4605_v15, %v3359_v22  ;;  %v3382_v46 = vmul.f32 %v4605_v15, %v3358_v21  ;;  %v3381_v47 = vmul.f32 %v4605_v15, %v3357_v20  ;;  %v3384_v48 = vmul.f32 %v4605_v15, %v3360_v23  ;;  %v3719_v22 = vld [vmem:[%s5501_s15 + $0x20] sm:$0xff]  ;;  %v3720_v23 = vld [vmem:[%s5501_s15 + $0x28] sm:$0xff] }
 0x9a4   :  { %v4463_v20 = vpack.c.bf16 %v3716_v63, %v3715_v62  ;;  %v4469_v24 = vpack.c.bf16 %v3720_v23, %v3719_v22 }
 0x9a5   :  { %v3392_v49 = vmul.f32 %v4043_v16, %v3382_v46  ;;  %v3391_v3 = vmul.f32 %v4043_v16, %v3381_v47  ;;  %v3393_v8 = vmul.f32 %v4043_v16, %v3383_v45  ;;  %v3394_v9 = vmul.f32 %v4043_v16, %v3384_v48 }
 0x9a6   :  { %4464 = vmatpush3.bf16.msra.mxu1 %v4463_v20 }
 0x9a7   :  { %v3402_v6 = vadd.f32 %v4044_v2, %v3392_v49  ;;  %v3401_v7 = vadd.f32 %v4044_v2, %v3391_v3  ;;  %v3403_v26 = vadd.f32 %v4044_v2, %v3393_v8  ;;  %v3404_v4 = vadd.f32 %v4044_v2, %v3394_v9  ;;  %4465 = vmatprep.subr.bf16.mxu1 %v4653_v58 }
 0x9a9   :  { %3411 = vrot.lane.b32.xlu0 %v3402_v6, %s4652_s9  ;;  %3409 = vrot.lane.b32.xlu1 %v3401_v7, %s4652_s9 }
 0x9ad   :  { %3413 = vrot.lane.b32.xlu0 %v3403_v26, %s4652_s9  ;;  %2957 = vrot.lane.b32.xlu1 %v5279_v0, %s4651_s21 }
 0x9b1   :  { %3415 = vrot.lane.b32.xlu1 %v3404_v4, %s4652_s9 }
 0xa1b   :  { %v3412_v5 = vpop.permute.xlu0 %3411  ;;  %v3410_v50 = vpop.permute.xlu1 %3409 }
 0xa1c   :  { %3423 = vst.msk [vmem:[#allocation3 + $0x8] sm:$0xff] %vm3421_vm10, %v3412_v5  ;;  %3422 = vst.msk [vmem:[#allocation3] sm:$0xff] %vm3421_vm10, %v3410_v50 }
 0xa1f   :  { %v3414_v51 = vpop.permute.xlu0 %3413  ;;  %v2958_v52 = vpop.permute.xlu1 %2957 }
 0xa20   :  { %3424 = vst.msk [vmem:[#allocation3 + $0x10] sm:$0xff] %vm3421_vm10, %v3414_v51 }
 0xa21   :  { %2967 = vst.msk [vmem:[#allocation3 + $0x18] sm:$0xff] %vm2963_vm9, %v2958_v52 }
 0xa23   :  { %v3416_v53 = vpop.permute.xlu1 %3415  ;;  %v3426_v54 = vld [vmem:[#allocation3] sm:$0xff]  ;;  %v3427_v29 = vld [vmem:[#allocation3 + $0x8] sm:$0xff] }
 0xa24   :  { %3425 = vst.msk [vmem:[#allocation3 + $0x18] sm:$0xff] %vm3421_vm10, %v3416_v53  ;;  %4388 = vmatprep.mubr.msk.f32.mxu0 %vm72_vm0, %v3426_v54 }
 0xa25   :  { %4389 = vmatmul.mubr.msk.f32.vlgmr.msra.gmra.mrb[20].mxu0 %vm72_vm0, %v3427_v29 }
 0xa26   :  { %4458 = vmatpush3.bf16.msra.mxu0 %v4457_v25 }
 0xa27   :  { %v3428_v0 = vld [vmem:[#allocation3 + $0x10] sm:$0xff]  ;;  %4459 = vmatprep.subr.bf16.mxu0 %v4653_v58 }
 0xa28   :  { %4391 = vmatprep.mubr.msk.f32.mxu0 %vm72_vm0, %v3428_v0 }
 0xa2a   :  { %4461 = vmatpush3.bf16.msra.mxu0 %v4460_v61 }
 0xa2b   :  { %v3429_v55 = vld [vmem:[#allocation3 + $0x18] sm:$0xff] }
 0xa2c   :  { %4392 = vmatmul.mubr.msk.f32.gmra.mrb[22].mxu0 %vm72_vm0, %v3429_v55 }
 0xa2d   :  { %4402 = vmatprep.mubr.msk.f32.mxu0 %vm4654_vm11, %v4640_v10  ;;  %v3718_v10 = vld [vmem:[%s5501_s15 + $0x18] sm:$0xff] }
 0xa2e   :  { %v4466_v21 = vpack.c.bf16 %v3718_v10, %v3717_v1 }
 0xa30   :  { %4467 = vmatpush3.bf16.msra.mxu1 %v4466_v21 }
 0xa31   :  { %4468 = vmatprep.subr.bf16.mxu1 %v4653_v58 }
 0xa34   :  { %4470 = vmatpush3.bf16.msra.mxu1 %v4469_v24  ;;  %v4050_v24 = vld [vmem:[%s5497_s11] ss:$0 sm:$0xff] }
 0xa35   :  { %4471 = vmatprep.subr.bf16.mxu1 %v4653_v58 }
 0xa38   :  { %4473 = vmatpush3.bf16.msra.mxu1 %v4472_v43 }
 0xa39   :  { %4474 = vmatprep.subr.bf16.mxu1 %v4653_v58 }
 0xa3c   :  { %4476 = vmatpush3.bf16.msra.mxu1 %v4475_v28 }
 0xa3d   :  { %4477 = vmatprep.subr.bf16.mxu1 %v4653_v58 }
 0xa40   :  { %4479 = vmatpush3.bf16.msra.mxu1 %v4478_v33 }
 0xa41   :  { %4480 = vmatprep.subr.bf16.mxu1 %v4653_v58 }
 0xa44   :  { %4482 = vmatpush3.bf16.msra.mxu1 %v4481_v36 }
 0xa45   :  { %4483 = vmatprep.subr.bf16.mxu1 %v4653_v58 }
 0xaf8   :  { %v4390_v37 = vpop.f32.mrb[20].mxu0 }
 0xaf9   :  { %v3525_v38 = vadd.f32 %v4390_v37, %v4045_v12  ;;  %v3519_v39 = vpop.f32.mrb[21].mxu0 }
 0xafa   :  { %v3520_v59 = vadd.f32 %v4045_v12, %v3519_v39 }
 0xafb   :  { %v3539_v13 = vmax.f32 %v3525_v38, 0.0 }
 0xafc   :  { %v3538_v40 = vmax.f32 %v3520_v59, 0.0 }
 0xafd   :  { %v3545_v41 = vsel %vm72_vm0, %v3539_v13, 0.0 }
 0xafe   :  { %v3544_v42 = vsel %vm72_vm0, %v3538_v40, 0.0 }
 0xaff   :  { %v3546_v44 = vadd.f32 %v3545_v41, %v3544_v42  ;;  %v4393_v11 = vpop.f32.mrb[22].mxu0 }
 0xb00   :  { %v3535_v14 = vadd.f32 %v4393_v11, %v4045_v12  ;;  %v3529_v15 = vpop.f32.mrb[23].mxu0 }
 0xb01   :  { %v3530_v16 = vadd.f32 %v4045_v12, %v3529_v15 }
 0xb02   :  { %v3541_v45 = vmax.f32 %v3535_v14, 0.0 }
 0xb03   :  { %v3540_v46 = vmax.f32 %v3530_v16, 0.0 }
 0xb04   :  { %v3549_v2 = vsel %vm72_vm0, %v3541_v45, 0.0 }
 0xb05   :  { %v3547_v47 = vsel %vm72_vm0, %v3540_v46, 0.0 }
 0xb06   :  { %v3548_v48 = vadd.f32 %v3547_v47, %v3546_v44 }
 0xb08   :  { %v3550_v49 = vadd.f32 %v3549_v2, %v3548_v48 }
 0xb0a   :  { %v3551_v3 = vrot.slane %v3550_v49, 4 }
 0xb0c   :  { %v3552_v6 = vadd.f32 %v3551_v3, %v3550_v49 }
 0xb0e   :  { %v3553_v7 = vrot.slane %v3552_v6, 2 }
 0xb10   :  { %v3554_v8 = vadd.f32 %v3553_v7, %v3552_v6  ;;  %v3729_v7 = vld [vmem:[%s5501_s15 + $0x70] sm:$0xff] }
 0xb12   :  { %v3555_v26 = vrot.slane %v3554_v8, 1 }
 0xb14   :  { %v3556_v9 = vadd.f32 %v3555_v26, %v3554_v8  ;;  %v3730_v8 = vld [vmem:[%s5501_s15 + $0x78] sm:$0xff] }
 0xb15   :  { %v4484_v26 = vpack.c.bf16 %v3730_v8, %v3729_v7 }
 0xb16   :  { %v3557_v4 = vmul.f32 0.03125, %v3556_v9  ;;  %v4052_v9 = vld [vmem:[%s5500_s14] ss:$0 sm:$0xff]  ;;  %s4656_s14 = smov [#allocation4]  }
 0xb17   :  { %4485 = vmatpush3.bf16.msra.mxu1 %v4484_v26  ;;  %s3863_s15 = sshll.u32 %s4656_s14, 4  ;;  %s3864_s15 = int_to_ptr.vmem [resolvable:$true] %s3863_s15 }
 0xb18   :  { %v3558_v5 = vsub.f32 %v3538_v40, %v3557_v4  ;;  %v3559_v50 = vsub.f32 %v3539_v13, %v3557_v4  ;;  %v3560_v51 = vsub.f32 %v3540_v46, %v3557_v4  ;;  %v3561_v52 = vsub.f32 %v3541_v45, %v3557_v4  ;;  %s4616_s24 = scalar_lea.vmem %s3864_s15, 512  ;;  %p4621_p1 = scmp.lt.s32.totalorder %s3864_s15, %s3864_s15 }
 0xb19   :  { %p4617_p0 = scmp.ne.s32.totalorder %s3864_s15, %s4616_s24  ;;  %p4622_p2 = scmp.lt.s32.totalorder %s4616_s24, %s4616_s24 }
 0xb1a   :  { %v3562_v53 = vmul.f32 %v3558_v5, %v3558_v5  ;;  %v3563_v54 = vmul.f32 %v3559_v50, %v3559_v50  ;;  %v3564_v29 = vmul.f32 %v3560_v51, %v3560_v51  ;;  %v3565_v0 = vmul.f32 %v3561_v52, %v3561_v52 }
 0xb1b   :  { %p4623_p3 = por %p4622_p2, %p4621_p1 }
 0xb1c   :  { %v3566_v55 = vsel %vm72_vm0, %v3562_v53, 0.0  ;;  %v3567_v31 = vsel %vm72_vm0, %v3563_v54, 0.0  ;;  %v3569_v57 = vsel %vm72_vm0, %v3564_v29, 0.0  ;;  %v3571_v25 = vsel %vm72_vm0, %v3565_v0, 0.0 }
 0xb1d   :  { %v3568_v56 = vadd.f32 %v3567_v31, %v3566_v55  ;;  %p4624_p4 = pnand %p4623_p3, %p4617_p0 }
 0xb1f   :  { %v3570_v58 = vadd.f32 %v3569_v57, %v3568_v56  ;;  %v4655_v57 = vmov 1966171168  }
 0xb21   :  { %v3572_v60 = vadd.f32 %v3571_v25, %v3570_v58  ;;  %v3815_v58 = vunpack.c.l.s4 %v4655_v57  ;;  %v3817_v25 = vlaneseq }
 0xb23   :  { %v3573_v61 = vrot.slane %v3572_v60, 4 }
 0xb25   :  { %v3574_v62 = vadd.f32 %v3573_v61, %v3572_v60  ;;  %v3816_v60 = vunpack.c.0.s8 %v3815_v58  ;;  %v3818_v61 = vshrl.u32 %v3817_v25, 7 }
 0xb27   :  { %v3575_v63 = vrot.slane %v3574_v62, 2 }
 0xb29   :  { %v3576_v1 = vadd.f32 %v3575_v63, %v3574_v62  ;;  %v3819_v62 = vsub.s32 %v3816_v60, %v3818_v61 }
 0xb2b   :  { %v3577_v20 = vrot.slane %v3576_v1, 1 }
 0xb2d   :  { %v3578_v10 = vadd.f32 %v3577_v20, %v3576_v1  ;;  %v3838_v20 = vsub.s32 0, %v3818_v61 }
 0xb2f   :  { %v3579_v21 = vmul.f32 0.03125, %v3578_v10 }
 0xb31   :  { %v3580_v22 = vadd.f32 1e-05, %v3579_v21 }
 0xb33   :  { %4606 = vrsqrt.f32 %v3580_v22 }
 0xb3d   :  { %v4607_v23 = vpop.eup %4606 }
 0xb3e   :  { %v3582_v18 = vmul.f32 %v4607_v23, %v3558_v5  ;;  %v3583_v27 = vmul.f32 %v4607_v23, %v3559_v50  ;;  %v3584_v43 = vmul.f32 %v4607_v23, %v3560_v51  ;;  %v3585_v17 = vmul.f32 %v4607_v23, %v3561_v52  ;;  %v4054_v52 = vld [vmem:[%s5502_s16] ss:$0 sm:$0xff] }
 0xb40   :  { %v3592_v28 = vmul.f32 %v4050_v24, %v3582_v18  ;;  %v3593_v30 = vmul.f32 %v4050_v24, %v3583_v27  ;;  %v3594_v32 = vmul.f32 %v4050_v24, %v3584_v43  ;;  %v3595_v33 = vmul.f32 %v4050_v24, %v3585_v17 }
 0xb42   :  { %v3602_v34 = vadd.f32 %v4051_v19, %v3592_v28  ;;  %v3603_v35 = vadd.f32 %v4051_v19, %v3593_v30  ;;  %v5432_v36 = vadd.f32 %v4051_v19, %v3594_v32  ;;  %v5434_v12 = vadd.f32 %v4051_v19, %v3595_v33  ;;  %v4612_v19 = vld [vmem:[%s5509_s20] sm:$0xff]  ;;  %v4613_v30 = vld [vmem:[%s5509_s20 + $0x8] sm:$0xff]  ;;  %v4614_v33 = vld [vmem:[%s5509_s20 + $0x10] sm:$0xff] }
 0xb44   :  { %v3606_v37 = vsel %vm72_vm0, %v3602_v34, 0.0  ;;  %v3607_v38 = vsel %vm72_vm0, %v3603_v35, 0.0  ;;  %v3615_v39 = vsel %vm72_vm0, %v5432_v36, 0.0  ;;  %v3616_v59 = vsel %vm72_vm0, %v5434_v12, 0.0 }
 0xb45   :  { %v3617_v13 = vadd.f32 %v3616_v59, %v3615_v39  ;;  %v3608_v40 = vadd.f32 %v3607_v38, %v3606_v37 }
 0xb47   :  { %v3618_v41 = vrot.slane %v3617_v13, 4  ;;  %v3609_v42 = vrot.slane %v3608_v40, 4 }
 0xb49   :  { %v3619_v44 = vadd.f32 %v3618_v41, %v3617_v13  ;;  %v3610_v11 = vadd.f32 %v3609_v42, %v3608_v40 }
 0xb4b   :  { %v3620_v14 = vrot.slane %v3619_v44, 2  ;;  %v3611_v15 = vrot.slane %v3610_v11, 2 }
 0xb4d   :  { %v3612_v16 = vadd.f32 %v3611_v15, %v3610_v11  ;;  %v3621_v45 = vadd.f32 %v3620_v14, %v3619_v44 }
 0xb4f   :  { %v3613_v46 = vrot.slane %v3612_v16, 1  ;;  %v3622_v47 = vrot.slane %v3621_v45, 1 }
 0xb51   :  { %v3614_v48 = vadd.f32 %v3613_v46, %v3612_v16  ;;  %v3623_v2 = vadd.f32 %v3622_v47, %v3621_v45 }
 0xb53   :  { %v3625_v49 = vmul.f32 0.0625, %v3614_v48  ;;  %v3626_v3 = vmul.f32 0.0625, %v3623_v2 }
 0xb55   :  { %v3641_v6 = vsel %vm3640_vm12, %v3626_v3, %v3625_v49 }
 0xb56   :  { %4403 = vmatmul.mubr.msk.f32.vlgmr.msra.gmra.mrb[24].mxu0 %vm72_vm0, %v3641_v6 }
 0xc29   :  { %v3710_v4 = vpop.f32.mrb[24].mxu0 }
 0xc2a   :  { %v3711_v5 = vadd.f32 %v4052_v9, %v3710_v4  ;;  %v4404_v50 = vpop.f32.mrb[25].mxu0 }
 0xc2c   :  { %v3714_v51 = vmax.f32 %v3711_v5, 0.0 }
 0xc2e   :  { %4438 = vmatmul.mubr.f32.vlgmr.msra.gmra.mrb[16].mxu1 %v3714_v51 }
 0xd01   :  { %v3804_v53 = vpop.f32.mrb[16].mxu1 }
 0xd02   :  { %v3805_v54 = vadd.f32 %v4054_v52, %v3804_v53  ;;  %v4439_v29 = vpop.f32.mrb[17].mxu1 }
 0xd04   :  { %v3808_v0 = vsub.f32 0.0, %v3805_v54 }
 0xd06   :  { %v3809_v55 = vmul.f32 1.442695, %v3808_v0 }
 0xd08   :  { %4608 = vpow2.f32 %v3809_v55 }
 0xd12   :  { %v4609_v31 = vpop.eup %4608 }
 0xd13   :  { %v3811_v56 = vadd.f32 1.0, %v4609_v31 }
 0xd15   :  { %4610 = vrcp.f32 %v3811_v56 }
 0xd1f   :  { %v4611_v63 = vpop.eup %4610 }
 0xd20   :  { %v3820_v1 = vrot.slane %v4611_v63, %v3819_v62 }
 0xd22   :  { %v3821_v10 = vcombine.high %v3820_v1, %v3820_v1  ;;  %v3828_v21 = vrot.slane %v3820_v1, %v3819_v62 }
 0xd24   :  { %v3835_v22 = vrot.slane %v3821_v10, %v3819_v62  ;;  %v3839_v23 = vrot.slane %v3828_v21, %v3838_v20 }
 0xd26   :  { %v3843_v24 = vrot.slane %v3835_v22, %v3838_v20  ;;  %v3846_v18 = vmul.f32 %v3839_v23, %v3602_v34  ;;  %v3847_v27 = vmul.f32 %v3839_v23, %v3603_v35  ;;  %v4615_v35 = vld [vmem:[%s5509_s20 + $0x18] sm:$0xff] }
 0xd28   :  { %v3848_v43 = vmul.f32 %v3843_v24, %v5432_v36  ;;  %v3849_v17 = vmul.f32 %v3843_v24, %v5434_v12  ;;  %v3850_v28 = vadd.f32 %v4612_v19, %v3846_v18  ;;  %v3851_v32 = vadd.f32 %v4613_v30, %v3847_v27 }
 0xd2a   :  { %v3852_v34 = vadd.f32 %v4614_v33, %v3848_v43  ;;  %v3853_v36 = vadd.f32 %v4615_v35, %v3849_v17  ;;  %3854 = vst.msk [vmem:[#allocation4] sm:$0xff] %vm72_vm0, %v3850_v28  ;;  %3855 = vst.msk [vmem:[#allocation4 + $0x8] sm:$0xff] %vm72_vm0, %v3851_v32 }
 0xd2c   :  { %3856 = vst.msk [vmem:[#allocation4 + $0x10] sm:$0xff] %vm72_vm0, %v3852_v34  ;;  %3857 = vst.msk [vmem:[#allocation4 + $0x18] sm:$0xff] %vm72_vm0, %v3853_v36 }
 0xd2d   :  { %4627 = shalt.err (!%p4624_p4)
}
 0xd2e   :  { %s4628_s20 = scalar_lea.hbm %s5503_s17, 512 }
 0xd2f   :  { %p4629_p5 = scmp.ne.s32.totalorder %s5503_s17, %s4628_s20  ;;  %p4632_p6 = scmp.lt.u32.totalorder %s4628_s20, %s5503_s17 }
 0xd31   :  { %p4634_p7 = pnand %p4632_p6, %p4629_p5 }
 0xd33   :  { %4637 = shalt.err (!%p4634_p7)
}
 0xd34   :  { %s4657_s0 = smov 128  }
 0xd35   :  { %3869 = dma.vmem_to_hbm [thread:$0]  %s3864_s15, 512, %s5503_s17, [#allocation5], %s4657_s0, %s4657_s0, %s4648_s29  }
 0xd36   :  { %4638 = dma.done.wait [#allocation5], 512  }
 0xd37   :  { %4639 = vsyncadd [#allocation5], 4294966784 }
 0xd38   :  { %3873 = vsyncpa [#allocation5], 1 }

</bundles_post_ra>
